<compile_context>
chip_gen: v7x
topology: tpu7x:2x2x1
jax: 0.10.0
libtpu: 0.0.40
codegen_flags: <defaults>
</compile_context>

<pallas_src>
import functools

import jax
import jax.numpy as jnp
from jax import lax
from jax.experimental import pallas as pl
from jax.experimental.pallas import tpu as pltpu


# ----------------------------- Pallas kernel --------------------------------

def _residual_kernel(*refs, ho, wo, stride, use_proj):
    """Fused residual block for ONE batch element, channel-first layout."""
    if use_proj:
        (x_ref, w1_ref, s1_ref, t1_ref, w2_ref, s2_ref, t2_ref,
         w3_ref, b3_ref, o_ref, p1_ref, ypad_ref, p2_ref) = refs
    else:
        (x_ref, w1_ref, s1_ref, t1_ref, w2_ref, s2_ref, t2_ref,
         o_ref, p1_ref, ypad_ref, p2_ref) = refs

    s = stride
    cin = x_ref.shape[2]
    cout = o_ref.shape[1]
    m = ho * wo

    # ---- conv1: pack the 9 shifted windows into a (9*cin, m) patch matrix --
    # x arrives as stride-phases of the halo-padded input, so every window is
    # a static unit-stride slice.  One deep MXU matmul instead of nine K=cin.
    phase = {}
    center = None                      # tap (1,1) == x[:, s*i, s*j] (shortcut)
    for kh in range(3):
        for kw in range(3):
            pidx = (kh % s) * s + (kw % s)
            if pidx not in phase:
                phase[pidx] = x_ref[0, pidx]               # (cin, hh, wh) bf16
            a0, b0 = kh // s, kw // s
            win = phase[pidx][:, a0:a0 + ho, b0:b0 + wo].reshape(cin, m)
            tap = kh * 3 + kw
            p1_ref[tap * cin:(tap + 1) * cin, :] = win
            if kh == 1 and kw == 1:
                center = win

    acc1 = jnp.dot(w1_ref[...], p1_ref[...],
                   preferred_element_type=jnp.float32)          # (cout, m)
    y1 = jnp.maximum(acc1 * s1_ref[...] + t1_ref[...], 0.0)     # BN1+ReLU, f32

    # ---- conv2: halo-pad y1 inside VMEM (no HBM round trip), one matmul ----
    ypad_ref[...] = jnp.zeros_like(ypad_ref)
    ypad_ref[:, 1:1 + ho, 1:1 + wo] = y1.reshape(cout, ho, wo)
    y1p = ypad_ref[...]                                    # (cout, ho+2, wo+2)
    for kh in range(3):
        for kw in range(3):
            tap = kh * 3 + kw
            p2_ref[tap * cout:(tap + 1) * cout, :] = (
                y1p[:, kh:kh + ho, kw:kw + wo]
                .astype(jnp.bfloat16).reshape(cout, m))

    y2 = jnp.dot(w2_ref[...], p2_ref[...],
                 preferred_element_type=jnp.float32)            # (cout, m)
    y2 = y2 * s2_ref[...] + t2_ref[...]                         # BN2, f32

    # ---- shortcut + ReLU ----------------------------------------------------
    if use_proj:
        y2 = y2 + jnp.dot(w3_ref[...], center,
                          preferred_element_type=jnp.float32) + b3_ref[...]
    else:
        y2 = y2 + center.astype(jnp.float32)

    o_ref[0] = jnp.maximum(y2, 0.0).astype(o_ref.dtype)


def _vmem_limit_bytes():
    # 3/4 of physical VMEM: ~96 MiB on v5e/v6e (128 MiB), 48 MiB on v7x (64).
    try:
        return int(pltpu.get_tpu_info().vmem_capacity_bytes * 3 // 4)
    except Exception:
        return 48 * 1024 * 1024


def fused_residual(phases, w1, s1, t1, w2, s2, t2, *, ho, wo, stride,
                   proj=None, out_dtype=jnp.float32):
    """pallas_call wrapper: grid over batch; lane-dense (cout, m) output."""
    n, ss, cin, hh, wh = phases.shape
    cout = w1.shape[0]
    m = ho * wo

    def _cvec(v):
        return v.reshape(cout, 1).astype(jnp.float32)

    in_specs = [
        pl.BlockSpec((1, ss, cin, hh, wh), lambda i: (i, 0, 0, 0, 0)),  # x
        pl.BlockSpec(w1.shape, lambda i: (0, 0)),                       # W1
        pl.BlockSpec((cout, 1), lambda i: (0, 0)),                      # BN1 s
        pl.BlockSpec((cout, 1), lambda i: (0, 0)),                      # BN1 t
        pl.BlockSpec(w2.shape, lambda i: (0, 0)),                       # W2
        pl.BlockSpec((cout, 1), lambda i: (0, 0)),                      # BN2 s
        pl.BlockSpec((cout, 1), lambda i: (0, 0)),                      # BN2 t
    ]
    args = [phases, w1, _cvec(s1), _cvec(t1), w2, _cvec(s2), _cvec(t2)]

    use_proj = proj is not None
    if use_proj:
        w3, b3 = proj
        in_specs += [pl.BlockSpec(w3.shape, lambda i: (0, 0)),
                     pl.BlockSpec((cout, 1), lambda i: (0, 0))]
        args += [w3, _cvec(b3)]

    kernel = functools.partial(_residual_kernel, ho=ho, wo=wo,
                               stride=stride, use_proj=use_proj)

    return pl.pallas_call(
        kernel,
        out_shape=jax.ShapeDtypeStruct((n, cout, m), out_dtype),
        grid=(n,),
        in_specs=in_specs,
        out_specs=pl.BlockSpec((1, cout, m), lambda i: (i, 0, 0)),
        scratch_shapes=[
            pltpu.VMEM((9 * cin, m), jnp.bfloat16),           # conv1 patches
            pltpu.VMEM((cout, ho + 2, wo + 2), jnp.float32),  # halo-padded y1
            pltpu.VMEM((9 * cout, m), jnp.bfloat16),          # conv2 patches
        ],
        compiler_params=pltpu.CompilerParams(
            dimension_semantics=("parallel",),    # batch-parallel (v7x: 2 TCs)
            vmem_limit_bytes=_vmem_limit_bytes(),
        ),
    )(*args)


# ------------------------------- JAX glue -----------------------------------

def _stride_phases(x_nchw, ksize, stride, pad, dtype=jnp.bfloat16):
    """Halo-pad NCHW input and split into stride-phases (channel first).

    Returns (phases, ho, wo), phases of shape (N, s*s, C, Hh, Wh) such that
    the conv window for tap (kh, kw) is the unit-stride slice
      phases[:, (kh%s)*s + (kw%s), :, kh//s : kh//s+ho, kw//s : kw//s+wo].
    For stride=1 this degenerates to a plain pad (no real relayout)."""
    n, c, h, w = x_nchw.shape
    s = stride
    ho = (h + 2 * pad - ksize) // s + 1
    wo = (w + 2 * pad - ksize) // s + 1
    hh = ho + (ksize - 1) // s
    wh = wo + (ksize - 1) // s
    hp, wp = s * hh, s * wh
    xp = jnp.pad(x_nchw, ((0, 0), (0, 0), (pad, hp - h - pad),
                          (pad, wp - w - pad)))
    ph = xp.reshape(n, c, hh, s, wh, s).transpose(0, 3, 5, 1, 2, 4)
    return ph.reshape(n, s * s, c, hh, wh).astype(dtype), ho, wo


def _conv_weight_matrix(w_oihw, dtype=jnp.bfloat16):
    """(O, I, kh, kw) -> (O, 9*I), columns ordered tap-major / channel-minor
    to match the in-kernel patch-matrix row layout."""
    o, i, kh, kw = w_oihw.shape
    return jnp.transpose(w_oihw, (0, 2, 3, 1)).reshape(o, kh * kw * i).astype(dtype)


def _bn_fold(gamma, beta, mean, var, conv_bias, eps=1e-5):
    """Fold conv bias + inference BN into per-channel scale/shift (f32)."""
    scale = gamma / jnp.sqrt(var + eps)
    shift = (conv_bias - mean) * scale + beta
    return scale, shift


def residual_forward(x_nchw, p, *, use_1x1conv, stride):
    """Pallas implementation of Residual.forward (inference-mode BatchNorm)."""
    n, cin, h, w = x_nchw.shape
    cout = p["w1"].shape[0]

    phases, ho, wo = _stride_phases(x_nchw, 3, stride, 1)
    s1, t1 = _bn_fold(p["g1"], p["be1"], p["m1"], p["v1"], p["b1"])
    s2, t2 = _bn_fold(p["g2"], p["be2"], p["m2"], p["v2"], p["b2"])
    w1 = _conv_weight_matrix(p["w1"])
    w2 = _conv_weight_matrix(p["w2"])

    if use_1x1conv:
        proj = (p["w3"][:, :, 0, 0].astype(jnp.bfloat16), p["b3"])
    else:
        assert stride == 1 and cin == cout, \
            "identity shortcut requires stride == 1 and cin == cout"
        proj = None

    out = fused_residual(phases, w1, s1, t1, w2, s2, t2,
                         ho=ho, wo=wo, stride=stride, proj=proj)
    return out.reshape(n, cout, ho, wo)        # free reshape: already NCHW-major


# ------------------------- pure-JAX reference check --------------------------

def _ref_forward(x, p, *, use_1x1conv, stride, eps=1e-5):
    def conv(x, w, b, s, pad):
        y = lax.conv_general_dilated(x, w, (s, s), [(pad, pad), (pad, pad)],
                                     dimension_numbers=("NCHW", "OIHW", "NCHW"))
        return y + b[None, :, None, None]

    def bn(x, g, be, m, v):
        return ((x - m[None, :, None, None]) /
                jnp.sqrt(v[None, :, None, None] + eps)
                ) * g[None, :, None, None] + be[None, :, None, None]

    y = conv(x, p["w1"], p["b1"], stride, 1)
    y = jnp.maximum(bn(y, p["g1"], p["be1"], p["m1"], p["v1"]), 0.0)
    y = conv(y, p["w2"], p["b2"], 1, 1)
    y = bn(y, p["g2"], p["be2"], p["m2"], p["v2"])
    sc = conv(x, p["w3"], p["b3"], stride, 0) if use_1x1conv else x
    return jnp.maximum(y + sc, 0.0)


def make_params(key, cin, cout, use_1x1conv):
    keys = jax.random.split(key, 12)
    p = {
        "w1": 0.1 * jax.random.normal(keys[0], (cout, cin, 3, 3), jnp.float32),
        "b1": 0.1 * jax.random.normal(keys[1], (cout,), jnp.float32),
        "g1": 1.0 + 0.1 * jax.random.normal(keys[2], (cout,), jnp.float32),
        "be1": 0.1 * jax.random.normal(keys[3], (cout,), jnp.float32),
        "m1": 0.1 * jax.random.normal(keys[4], (cout,), jnp.float32),
        "v1": jax.random.uniform(keys[5], (cout,), jnp.float32, 0.5, 1.5),
        "w2": 0.1 * jax.random.normal(keys[6], (cout, cout, 3, 3), jnp.float32),
        "b2": 0.1 * jax.random.normal(keys[7], (cout,), jnp.float32),
        "g2": 1.0 + 0.1 * jax.random.normal(keys[8], (cout,), jnp.float32),
        "be2": 0.1 * jax.random.normal(keys[9], (cout,), jnp.float32),
        "m2": 0.1 * jax.random.normal(keys[10], (cout,), jnp.float32),
        "v2": jax.random.uniform(keys[11], (cout,), jnp.float32, 0.5, 1.5),
    }
    if use_1x1conv:
        k3 = jax.random.split(keys[0], 2)
        p["w3"] = 0.1 * jax.random.normal(k3[0], (cout, cin, 1, 1), jnp.float32)
        p["b3"] = 0.1 * jax.random.normal(k3[1], (cout,), jnp.float32)
    return p


def _max_rel_err(a, b):
    return float(jnp.max(jnp.abs(a - b))) / (float(jnp.max(jnp.abs(b))) + 1e-6)


if __name__ == "__main__":
    key = jax.random.PRNGKey(0)
    kx, kp1, kp2 = jax.random.split(key, 3)
    x = jax.random.normal(kx, (2, 4, 16, 16), jnp.float32)   # NCHW

    fwd = jax.jit(residual_forward, static_argnames=("use_1x1conv", "stride"))

    # Config A: identity shortcut (in=out=4, stride=1, no 1x1 conv)
    pA = make_params(kp1, 4, 4, use_1x1conv=False)
    outA = fwd(x, pA, use_1x1conv=False, stride=1)
    jax.block_until_ready(outA)
    refA = _ref_forward(x, pA, use_1x1conv=False, stride=1)
    assert outA.shape == (2, 4, 16, 16)
    assert _max_rel_err(outA, refA) < 3e-2   # bf16 MXU operands, f32 accumulate

    # Config B: projection shortcut (4 -> 8 channels, stride=2, 1x1 conv)
    pB = make_params(kp2, 4, 8, use_1x1conv=True)
    outB = fwd(x, pB, use_1x1conv=True, stride=2)
    jax.block_until_ready(outB)
    refB = _ref_forward(x, pB, use_1x1conv=True, stride=2)
    assert outB.shape == (2, 8, 8, 8)
    assert _max_rel_err(outB, refB) < 3e-2

    print("KERNEL_OK")
</pallas_src>

<mosaic_0001>
module attributes {stable_mosaic.version = 11 : i64} {
  func.func @_residual_kernel(%arg0: i32, %arg1: memref<1x1x4x18x18xbf16, #tpu.memory_space<vmem>>, %arg2: memref<4x36xbf16, #tpu.memory_space<vmem>>, %arg3: memref<4x1xf32, #tpu.memory_space<vmem>>, %arg4: memref<4x1xf32, #tpu.memory_space<vmem>>, %arg5: memref<4x36xbf16, #tpu.memory_space<vmem>>, %arg6: memref<4x1xf32, #tpu.memory_space<vmem>>, %arg7: memref<4x1xf32, #tpu.memory_space<vmem>>, %arg8: memref<1x4x256xf32, #tpu.memory_space<vmem>>, %arg9: memref<36x256xbf16, #tpu.memory_space<vmem>>, %arg10: memref<4x18x18xf32, #tpu.memory_space<vmem>>, %arg11: memref<36x256xbf16, #tpu.memory_space<vmem>>) attributes {dimension_semantics = [#tpu.dimension_semantics<parallel>], iteration_bounds = array<i64: 2>, scalar_prefetch = 0 : i64, scratch_operands = 3 : i64, tpu.core_type = #tpu.core_type<tc>, window_params = [{transform_indices = @transform_0, window_bounds = array<i64: 1, 1, 4, 18, 18>}, {pipeline_mode = #tpu.pipeline_mode<synchronous>, transform_indices = @transform_1, window_bounds = array<i64: 4, 36>}, {pipeline_mode = #tpu.pipeline_mode<synchronous>, transform_indices = @transform_2, window_bounds = array<i64: 4, 1>}, {pipeline_mode = #tpu.pipeline_mode<synchronous>, transform_indices = @transform_3, window_bounds = array<i64: 4, 1>}, {pipeline_mode = #tpu.pipeline_mode<synchronous>, transform_indices = @transform_4, window_bounds = array<i64: 4, 36>}, {pipeline_mode = #tpu.pipeline_mode<synchronous>, transform_indices = @transform_5, window_bounds = array<i64: 4, 1>}, {pipeline_mode = #tpu.pipeline_mode<synchronous>, transform_indices = @transform_6, window_bounds = array<i64: 4, 1>}, {transform_indices = @transform_7, window_bounds = array<i64: 1, 4, 256>}]} {
    %c0 = arith.constant 0 : index
    %c0_0 = arith.constant 0 : index
    %c0_1 = arith.constant 0 : index
    %c0_2 = arith.constant 0 : index
    %c0_3 = arith.constant 0 : index
    %0 = vector.load %arg1[%c0, %c0_0, %c0_1, %c0_2, %c0_3] : memref<1x1x4x18x18xbf16, #tpu.memory_space<vmem>>, vector<1x1x4x18x18xbf16>
    %1 = vector.shape_cast %0 : vector<1x1x4x18x18xbf16> to vector<4x18x18xbf16>
    %2 = vector.extract_strided_slice %1 {offsets = [0, 0, 0], sizes = [4, 16, 16], strides = [1, 1, 1]} : vector<4x18x18xbf16> to vector<4x16x16xbf16>
    %3 = vector.shape_cast %2 : vector<4x16x16xbf16> to vector<4x256xbf16>
    %c0_4 = arith.constant 0 : index
    %c0_5 = arith.constant 0 : index
    %4 = vector.load %arg9[%c0_4, %c0_5] : memref<36x256xbf16, #tpu.memory_space<vmem>>, vector<4x256xbf16>
    tpu.vector_store %arg9[%c0_4, %c0_5], %3 {strides = array<i32>} : memref<36x256xbf16, #tpu.memory_space<vmem>>, vector<4x256xbf16>,
    %5 = vector.extract_strided_slice %1 {offsets = [0, 0, 1], sizes = [4, 16, 16], strides = [1, 1, 1]} : vector<4x18x18xbf16> to vector<4x16x16xbf16>
    %6 = vector.shape_cast %5 : vector<4x16x16xbf16> to vector<4x256xbf16>
    %c4 = arith.constant 4 : index
    %c0_6 = arith.constant 0 : index
    %7 = vector.load %arg9[%c4, %c0_6] : memref<36x256xbf16, #tpu.memory_space<vmem>>, vector<4x256xbf16>
    tpu.vector_store %arg9[%c4, %c0_6], %6 {strides = array<i32>} : memref<36x256xbf16, #tpu.memory_space<vmem>>, vector<4x256xbf16>,
    %8 = vector.extract_strided_slice %1 {offsets = [0, 0, 2], sizes = [4, 16, 16], strides = [1, 1, 1]} : vector<4x18x18xbf16> to vector<4x16x16xbf16>
    %9 = vector.shape_cast %8 : vector<4x16x16xbf16> to vector<4x256xbf16>
    %c8 = arith.constant 8 : index
    %c0_7 = arith.constant 0 : index
    %10 = vector.load %arg9[%c8, %c0_7] : memref<36x256xbf16, #tpu.memory_space<vmem>>, vector<4x256xbf16>
    tpu.vector_store %arg9[%c8, %c0_7], %9 {strides = array<i32>} : memref<36x256xbf16, #tpu.memory_space<vmem>>, vector<4x256xbf16>,
    %11 = vector.extract_strided_slice %1 {offsets = [0, 1, 0], sizes = [4, 16, 16], strides = [1, 1, 1]} : vector<4x18x18xbf16> to vector<4x16x16xbf16>
    %12 = vector.shape_cast %11 : vector<4x16x16xbf16> to vector<4x256xbf16>
    %c12 = arith.constant 12 : index
    %c0_8 = arith.constant 0 : index
    %13 = vector.load %arg9[%c12, %c0_8] : memref<36x256xbf16, #tpu.memory_space<vmem>>, vector<4x256xbf16>
    tpu.vector_store %arg9[%c12, %c0_8], %12 {strides = array<i32>} : memref<36x256xbf16, #tpu.memory_space<vmem>>, vector<4x256xbf16>,
    %14 = vector.extract_strided_slice %1 {offsets = [0, 1, 1], sizes = [4, 16, 16], strides = [1, 1, 1]} : vector<4x18x18xbf16> to vector<4x16x16xbf16>
    %15 = vector.shape_cast %14 : vector<4x16x16xbf16> to vector<4x256xbf16>
    %c16 = arith.constant 16 : index
    %c0_9 = arith.constant 0 : index
    %16 = vector.load %arg9[%c16, %c0_9] : memref<36x256xbf16, #tpu.memory_space<vmem>>, vector<4x256xbf16>
    tpu.vector_store %arg9[%c16, %c0_9], %15 {strides = array<i32>} : memref<36x256xbf16, #tpu.memory_space<vmem>>, vector<4x256xbf16>,
    %17 = vector.extract_strided_slice %1 {offsets = [0, 1, 2], sizes = [4, 16, 16], strides = [1, 1, 1]} : vector<4x18x18xbf16> to vector<4x16x16xbf16>
    %18 = vector.shape_cast %17 : vector<4x16x16xbf16> to vector<4x256xbf16>
    %c20 = arith.constant 20 : index
    %c0_10 = arith.constant 0 : index
    %19 = vector.load %arg9[%c20, %c0_10] : memref<36x256xbf16, #tpu.memory_space<vmem>>, vector<4x256xbf16>
    tpu.vector_store %arg9[%c20, %c0_10], %18 {strides = array<i32>} : memref<36x256xbf16, #tpu.memory_space<vmem>>, vector<4x256xbf16>,
    %20 = vector.extract_strided_slice %1 {offsets = [0, 2, 0], sizes = [4, 16, 16], strides = [1, 1, 1]} : vector<4x18x18xbf16> to vector<4x16x16xbf16>
    %21 = vector.shape_cast %20 : vector<4x16x16xbf16> to vector<4x256xbf16>
    %c24 = arith.constant 24 : index
    %c0_11 = arith.constant 0 : index
    %22 = vector.load %arg9[%c24, %c0_11] : memref<36x256xbf16, #tpu.memory_space<vmem>>, vector<4x256xbf16>
    tpu.vector_store %arg9[%c24, %c0_11], %21 {strides = array<i32>} : memref<36x256xbf16, #tpu.memory_space<vmem>>, vector<4x256xbf16>,
    %23 = vector.extract_strided_slice %1 {offsets = [0, 2, 1], sizes = [4, 16, 16], strides = [1, 1, 1]} : vector<4x18x18xbf16> to vector<4x16x16xbf16>
    %24 = vector.shape_cast %23 : vector<4x16x16xbf16> to vector<4x256xbf16>
    %c28 = arith.constant 28 : index
    %c0_12 = arith.constant 0 : index
    %25 = vector.load %arg9[%c28, %c0_12] : memref<36x256xbf16, #tpu.memory_space<vmem>>, vector<4x256xbf16>
    tpu.vector_store %arg9[%c28, %c0_12], %24 {strides = array<i32>} : memref<36x256xbf16, #tpu.memory_space<vmem>>, vector<4x256xbf16>,
    %26 = vector.extract_strided_slice %1 {offsets = [0, 2, 2], sizes = [4, 16, 16], strides = [1, 1, 1]} : vector<4x18x18xbf16> to vector<4x16x16xbf16>
    %27 = vector.shape_cast %26 : vector<4x16x16xbf16> to vector<4x256xbf16>
    %c32 = arith.constant 32 : index
    %c0_13 = arith.constant 0 : index
    %28 = vector.load %arg9[%c32, %c0_13] : memref<36x256xbf16, #tpu.memory_space<vmem>>, vector<4x256xbf16>
    tpu.vector_store %arg9[%c32, %c0_13], %27 {strides = array<i32>} : memref<36x256xbf16, #tpu.memory_space<vmem>>, vector<4x256xbf16>,
    %c0_14 = arith.constant 0 : index
    %c0_15 = arith.constant 0 : index
    %29 = vector.load %arg2[%c0_14, %c0_15] : memref<4x36xbf16, #tpu.memory_space<vmem>>, vector<4x36xbf16>
    %c0_16 = arith.constant 0 : index
    %c0_17 = arith.constant 0 : index
    %30 = vector.load %arg9[%c0_16, %c0_17] : memref<36x256xbf16, #tpu.memory_space<vmem>>, vector<36x256xbf16>
    %cst = arith.constant dense<0.000000e+00> : vector<4x256xf32>
    %31 = tpu.matmul %29, %30, %cst {dimension_numbers = #tpu.dot_dimension_numbers<[1], [0], [0], [1], [0, 0, 1, 1], [], []>} : vector<4x36xbf16>, vector<36x256xbf16>, vector<4x256xf32> -> vector<4x256xf32>
    %c0_18 = arith.constant 0 : index
    %c0_19 = arith.constant 0 : index
    %32 = vector.load %arg3[%c0_18, %c0_19] : memref<4x1xf32, #tpu.memory_space<vmem>>, vector<4x1xf32>
    %33 = vector.broadcast %32 : vector<4x1xf32> to vector<4x256xf32>
    %34 = arith.mulf %31, %33 : vector<4x256xf32>
    %c0_20 = arith.constant 0 : index
    %c0_21 = arith.constant 0 : index
    %35 = vector.load %arg4[%c0_20, %c0_21] : memref<4x1xf32, #tpu.memory_space<vmem>>, vector<4x1xf32>
    %36 = vector.broadcast %35 : vector<4x1xf32> to vector<4x256xf32>
    %37 = arith.addf %34, %36 : vector<4x256xf32>
    %cst_22 = arith.constant 0.000000e+00 : f32
    %38 = vector.broadcast %cst_22 : f32 to vector<4x256xf32>
    %39 = arith.maximumf %37, %38 : vector<4x256xf32>
    %cst_23 = arith.constant 0.000000e+00 : f32
    %40 = vector.broadcast %cst_23 : f32 to vector<4x18x18xf32>
    %c0_24 = arith.constant 0 : index
    %c0_25 = arith.constant 0 : index
    %c0_26 = arith.constant 0 : index
    %41 = vector.load %arg10[%c0_24, %c0_25, %c0_26] : memref<4x18x18xf32, #tpu.memory_space<vmem>>, vector<4x18x18xf32>
    tpu.vector_store %arg10[%c0_24, %c0_25, %c0_26], %40 {strides = array<i32>} : memref<4x18x18xf32, #tpu.memory_space<vmem>>, vector<4x18x18xf32>,
    %42 = vector.shape_cast %39 : vector<4x256xf32> to vector<4x16x16xf32>
    %c0_27 = arith.constant 0 : index
    %c1 = arith.constant 1 : index
    %c1_28 = arith.constant 1 : index
    %43 = vector.load %arg10[%c0_27, %c1, %c1_28] : memref<4x18x18xf32, #tpu.memory_space<vmem>>, vector<4x16x16xf32>
    tpu.vector_store %arg10[%c0_27, %c1, %c1_28], %42 {strides = array<i32>} : memref<4x18x18xf32, #tpu.memory_space<vmem>>, vector<4x16x16xf32>,
    %c0_29 = arith.constant 0 : index
    %c0_30 = arith.constant 0 : index
    %c0_31 = arith.constant 0 : index
    %44 = vector.load %arg10[%c0_29, %c0_30, %c0_31] : memref<4x18x18xf32, #tpu.memory_space<vmem>>, vector<4x18x18xf32>
    %45 = vector.extract_strided_slice %44 {offsets = [0, 0, 0], sizes = [4, 16, 16], strides = [1, 1, 1]} : vector<4x18x18xf32> to vector<4x16x16xf32>
    %46 = arith.truncf %45 : vector<4x16x16xf32> to vector<4x16x16xbf16>
    %47 = vector.shape_cast %46 : vector<4x16x16xbf16> to vector<4x256xbf16>
    %c0_32 = arith.constant 0 : index
    %c0_33 = arith.constant 0 : index
    %48 = vector.load %arg11[%c0_32, %c0_33] : memref<36x256xbf16, #tpu.memory_space<vmem>>, vector<4x256xbf16>
    tpu.vector_store %arg11[%c0_32, %c0_33], %47 {strides = array<i32>} : memref<36x256xbf16, #tpu.memory_space<vmem>>, vector<4x256xbf16>,
    %49 = vector.extract_strided_slice %44 {offsets = [0, 0, 1], sizes = [4, 16, 16], strides = [1, 1, 1]} : vector<4x18x18xf32> to vector<4x16x16xf32>
    %50 = arith.truncf %49 : vector<4x16x16xf32> to vector<4x16x16xbf16>
    %51 = vector.shape_cast %50 : vector<4x16x16xbf16> to vector<4x256xbf16>
    %c4_34 = arith.constant 4 : index
    %c0_35 = arith.constant 0 : index
    %52 = vector.load %arg11[%c4_34, %c0_35] : memref<36x256xbf16, #tpu.memory_space<vmem>>, vector<4x256xbf16>
    tpu.vector_store %arg11[%c4_34, %c0_35], %51 {strides = array<i32>} : memref<36x256xbf16, #tpu.memory_space<vmem>>, vector<4x256xbf16>,
    %53 = vector.extract_strided_slice %44 {offsets = [0, 0, 2], sizes = [4, 16, 16], strides = [1, 1, 1]} : vector<4x18x18xf32> to vector<4x16x16xf32>
    %54 = arith.truncf %53 : vector<4x16x16xf32> to vector<4x16x16xbf16>
    %55 = vector.shape_cast %54 : vector<4x16x16xbf16> to vector<4x256xbf16>
    %c8_36 = arith.constant 8 : index
    %c0_37 = arith.constant 0 : index
    %56 = vector.load %arg11[%c8_36, %c0_37] : memref<36x256xbf16, #tpu.memory_space<vmem>>, vector<4x256xbf16>
    tpu.vector_store %arg11[%c8_36, %c0_37], %55 {strides = array<i32>} : memref<36x256xbf16, #tpu.memory_space<vmem>>, vector<4x256xbf16>,
    %57 = vector.extract_strided_slice %44 {offsets = [0, 1, 0], sizes = [4, 16, 16], strides = [1, 1, 1]} : vector<4x18x18xf32> to vector<4x16x16xf32>
    %58 = arith.truncf %57 : vector<4x16x16xf32> to vector<4x16x16xbf16>
    %59 = vector.shape_cast %58 : vector<4x16x16xbf16> to vector<4x256xbf16>
    %c12_38 = arith.constant 12 : index
    %c0_39 = arith.constant 0 : index
    %60 = vector.load %arg11[%c12_38, %c0_39] : memref<36x256xbf16, #tpu.memory_space<vmem>>, vector<4x256xbf16>
    tpu.vector_store %arg11[%c12_38, %c0_39], %59 {strides = array<i32>} : memref<36x256xbf16, #tpu.memory_space<vmem>>, vector<4x256xbf16>,
    %61 = vector.extract_strided_slice %44 {offsets = [0, 1, 1], sizes = [4, 16, 16], strides = [1, 1, 1]} : vector<4x18x18xf32> to vector<4x16x16xf32>
    %62 = arith.truncf %61 : vector<4x16x16xf32> to vector<4x16x16xbf16>
    %63 = vector.shape_cast %62 : vector<4x16x16xbf16> to vector<4x256xbf16>
    %c16_40 = arith.constant 16 : index
    %c0_41 = arith.constant 0 : index
    %64 = vector.load %arg11[%c16_40, %c0_41] : memref<36x256xbf16, #tpu.memory_space<vmem>>, vector<4x256xbf16>
    tpu.vector_store %arg11[%c16_40, %c0_41], %63 {strides = array<i32>} : memref<36x256xbf16, #tpu.memory_space<vmem>>, vector<4x256xbf16>,
    %65 = vector.extract_strided_slice %44 {offsets = [0, 1, 2], sizes = [4, 16, 16], strides = [1, 1, 1]} : vector<4x18x18xf32> to vector<4x16x16xf32>
    %66 = arith.truncf %65 : vector<4x16x16xf32> to vector<4x16x16xbf16>
    %67 = vector.shape_cast %66 : vector<4x16x16xbf16> to vector<4x256xbf16>
    %c20_42 = arith.constant 20 : index
    %c0_43 = arith.constant 0 : index
    %68 = vector.load %arg11[%c20_42, %c0_43] : memref<36x256xbf16, #tpu.memory_space<vmem>>, vector<4x256xbf16>
    tpu.vector_store %arg11[%c20_42, %c0_43], %67 {strides = array<i32>} : memref<36x256xbf16, #tpu.memory_space<vmem>>, vector<4x256xbf16>,
    %69 = vector.extract_strided_slice %44 {offsets = [0, 2, 0], sizes = [4, 16, 16], strides = [1, 1, 1]} : vector<4x18x18xf32> to vector<4x16x16xf32>
    %70 = arith.truncf %69 : vector<4x16x16xf32> to vector<4x16x16xbf16>
    %71 = vector.shape_cast %70 : vector<4x16x16xbf16> to vector<4x256xbf16>
    %c24_44 = arith.constant 24 : index
    %c0_45 = arith.constant 0 : index
    %72 = vector.load %arg11[%c24_44, %c0_45] : memref<36x256xbf16, #tpu.memory_space<vmem>>, vector<4x256xbf16>
    tpu.vector_store %arg11[%c24_44, %c0_45], %71 {strides = array<i32>} : memref<36x256xbf16, #tpu.memory_space<vmem>>, vector<4x256xbf16>,
    %73 = vector.extract_strided_slice %44 {offsets = [0, 2, 1], sizes = [4, 16, 16], strides = [1, 1, 1]} : vector<4x18x18xf32> to vector<4x16x16xf32>
    %74 = arith.truncf %73 : vector<4x16x16xf32> to vector<4x16x16xbf16>
    %75 = vector.shape_cast %74 : vector<4x16x16xbf16> to vector<4x256xbf16>
    %c28_46 = arith.constant 28 : index
    %c0_47 = arith.constant 0 : index
    %76 = vector.load %arg11[%c28_46, %c0_47] : memref<36x256xbf16, #tpu.memory_space<vmem>>, vector<4x256xbf16>
    tpu.vector_store %arg11[%c28_46, %c0_47], %75 {strides = array<i32>} : memref<36x256xbf16, #tpu.memory_space<vmem>>, vector<4x256xbf16>,
    %77 = vector.extract_strided_slice %44 {offsets = [0, 2, 2], sizes = [4, 16, 16], strides = [1, 1, 1]} : vector<4x18x18xf32> to vector<4x16x16xf32>
    %78 = arith.truncf %77 : vector<4x16x16xf32> to vector<4x16x16xbf16>
    %79 = vector.shape_cast %78 : vector<4x16x16xbf16> to vector<4x256xbf16>
    %c32_48 = arith.constant 32 : index
    %c0_49 = arith.constant 0 : index
    %80 = vector.load %arg11[%c32_48, %c0_49] : memref<36x256xbf16, #tpu.memory_space<vmem>>, vector<4x256xbf16>
    tpu.vector_store %arg11[%c32_48, %c0_49], %79 {strides = array<i32>} : memref<36x256xbf16, #tpu.memory_space<vmem>>, vector<4x256xbf16>,
    %c0_50 = arith.constant 0 : index
    %c0_51 = arith.constant 0 : index
    %81 = vector.load %arg5[%c0_50, %c0_51] : memref<4x36xbf16, #tpu.memory_space<vmem>>, vector<4x36xbf16>
    %c0_52 = arith.constant 0 : index
    %c0_53 = arith.constant 0 : index
    %82 = vector.load %arg11[%c0_52, %c0_53] : memref<36x256xbf16, #tpu.memory_space<vmem>>, vector<36x256xbf16>
    %cst_54 = arith.constant dense<0.000000e+00> : vector<4x256xf32>
    %83 = tpu.matmul %81, %82, %cst_54 {dimension_numbers = #tpu.dot_dimension_numbers<[1], [0], [0], [1], [0, 0, 1, 1], [], []>} : vector<4x36xbf16>, vector<36x256xbf16>, vector<4x256xf32> -> vector<4x256xf32>
    %c0_55 = arith.constant 0 : index
    %c0_56 = arith.constant 0 : index
    %84 = vector.load %arg6[%c0_55, %c0_56] : memref<4x1xf32, #tpu.memory_space<vmem>>, vector<4x1xf32>
    %85 = vector.broadcast %84 : vector<4x1xf32> to vector<4x256xf32>
    %86 = arith.mulf %83, %85 : vector<4x256xf32>
    %c0_57 = arith.constant 0 : index
    %c0_58 = arith.constant 0 : index
    %87 = vector.load %arg7[%c0_57, %c0_58] : memref<4x1xf32, #tpu.memory_space<vmem>>, vector<4x1xf32>
    %88 = vector.broadcast %87 : vector<4x1xf32> to vector<4x256xf32>
    %89 = arith.addf %86, %88 : vector<4x256xf32>
    %90 = arith.extf %15 : vector<4x256xbf16> to vector<4x256xf32>
    %91 = arith.addf %89, %90 : vector<4x256xf32>
    %cst_59 = arith.constant 0.000000e+00 : f32
    %92 = vector.broadcast %cst_59 : f32 to vector<4x256xf32>
    %93 = arith.maximumf %91, %92 : vector<4x256xf32>
    %c0_60 = arith.constant 0 : index
    %c0_61 = arith.constant 0 : index
    %c0_62 = arith.constant 0 : index
    %94 = vector.load %arg8[%c0_60, %c0_61, %c0_62] : memref<1x4x256xf32, #tpu.memory_space<vmem>>, vector<1x4x256xf32>
    %95 = vector.shape_cast %94 : vector<1x4x256xf32> to vector<4x256xf32>
    %96 = vector.shape_cast %93 : vector<4x256xf32> to vector<1x4x256xf32>
    tpu.vector_store %arg8[%c0_60, %c0_61, %c0_62], %96 {strides = array<i32>} : memref<1x4x256xf32, #tpu.memory_space<vmem>>, vector<1x4x256xf32>,
    return
  }
  func.func @transform_0(%arg0: i32) -> (i32, i32, i32, i32, i32) {
    %c0_i32 = arith.constant 0 : i32
    %c0_i32_0 = arith.constant 0 : i32
    %c0_i32_1 = arith.constant 0 : i32
    %c0_i32_2 = arith.constant 0 : i32
    %c0_i32_3 = arith.constant 0 : i32
    return %arg0, %c0_i32, %c0_i32_0, %c0_i32_1, %c0_i32_2 : i32, i32, i32, i32, i32
  }
  func.func @transform_1(%arg0: i32) -> (i32, i32) {
    %c0_i32 = arith.constant 0 : i32
    %c0_i32_0 = arith.constant 0 : i32
    %c0_i32_1 = arith.constant 0 : i32
    return %c0_i32, %c0_i32_0 : i32, i32
  }
  func.func @transform_2(%arg0: i32) -> (i32, i32) {
    %c0_i32 = arith.constant 0 : i32
    %c0_i32_0 = arith.constant 0 : i32
    %c0_i32_1 = arith.constant 0 : i32
    return %c0_i32, %c0_i32_0 : i32, i32
  }
  func.func @transform_3(%arg0: i32) -> (i32, i32) {
    %c0_i32 = arith.constant 0 : i32
    %c0_i32_0 = arith.constant 0 : i32
    %c0_i32_1 = arith.constant 0 : i32
    return %c0_i32, %c0_i32_0 : i32, i32
  }
  func.func @transform_4(%arg0: i32) -> (i32, i32) {
    %c0_i32 = arith.constant 0 : i32
    %c0_i32_0 = arith.constant 0 : i32
    %c0_i32_1 = arith.constant 0 : i32
    return %c0_i32, %c0_i32_0 : i32, i32
  }
  func.func @transform_5(%arg0: i32) -> (i32, i32) {
    %c0_i32 = arith.constant 0 : i32
    %c0_i32_0 = arith.constant 0 : i32
    %c0_i32_1 = arith.constant 0 : i32
    return %c0_i32, %c0_i32_0 : i32, i32
  }
  func.func @transform_6(%arg0: i32) -> (i32, i32) {
    %c0_i32 = arith.constant 0 : i32
    %c0_i32_0 = arith.constant 0 : i32
    %c0_i32_1 = arith.constant 0 : i32
    return %c0_i32, %c0_i32_0 : i32, i32
  }
  func.func @transform_7(%arg0: i32) -> (i32, i32, i32) {
    %c0_i32 = arith.constant 0 : i32
    %c0_i32_0 = arith.constant 0 : i32
    %c0_i32_1 = arith.constant 0 : i32
    return %arg0, %c0_i32, %c0_i32_0 : i32, i32, i32
  }
}

</mosaic_0001>

<bundles_post_ra>
// kernel: residual_forward.1
= control target key start
LH: loop header
LB: loop body
LE: loop exit
PB: predicated region body
PF: predicated region fallthrough
CT: control target
= control target key end

     0   :  { %s5962_s24 = smov 0   ;;  %s8892_s0 = inlined_call_operand.vmem [shape: bf16[2,1,4,18,18], index: 0, kind: input, shape index: {}]   ;;  %s8893_s1 = inlined_call_operand.vmem [shape: bf16[4,36], index: 1, kind: input, shape index: {}]   ;;  %s8894_s2 = inlined_call_operand.vmem [shape: f32[4,1], index: 2, kind: input, shape index: {}]   ;;  %s8895_s3 = inlined_call_operand.vmem [shape: f32[4,1], index: 3, kind: input, shape index: {}]   ;;  %s8896_s4 = inlined_call_operand.vmem [shape: bf16[4,36], index: 4, kind: input, shape index: {}]   ;;  %s8897_s5 = inlined_call_operand.vmem [shape: f32[4,1], index: 5, kind: input, shape index: {}]   ;;  %s8898_s6 = inlined_call_operand.vmem [shape: f32[4,1], index: 6, kind: input, shape index: {}]   ;;  %s8899_s7 = inlined_call_operand.vmem [shape: f32[2,4,256], index: 7, kind: output, shape index: {}]  }
   0x1 LB: > { %s5612_s25 = sadd.s32 4294967295, %s5906_s24   ;;  %p5616_p0 = scmp.ge.s32.totalorder %s5906_s24, 1  ;;  %s5906_s24 = sphi %s5962_s24, %s17_s24  }
   0x2   : > { %p237_p1 = scmp.lt.s32.totalorder %s5906_s24, 3 }
   0x4   : > { %p238_p2 = pnand %p5616_p0, %p237_p1 }
   0x6   : > { %241 = sbr.rel (%p238_p2) target bundleno = 1672 (0x688), region = 48 }
   0xd   : > { %p269_p3 = scmp.lt.s32.totalorder %s5612_s25, 1  ;;  %s5908_s30 = smov 127   ;;  %vm1141_vm0 = vsmask.f32 3328  ;;  %vm1142_vm1 = vsmask.f32 7440  ;;  %v320_v28 = vlaneseq }
   0xe   : > { %v5909_v26 = vmov 1983009808   ;;  %vm6047_vm2 = vmor %vm1141_vm0, %vm1142_vm1  ;;  %vm2065_vm3 = vcmask 1042432   ;;  %vm2066_vm4 = vcmask 1046532   ;;  %s5910_s8 = smov 126   ;;  %s5912_s9 = smov 16  }
   0xf   : > { %s9083_s25 = smov (!%p269_p3, %s5612_s25), 1  ;;  %v6039_v27 = vunpack.c.l.s4 %v5909_v26  ;;  %v6059_v41 = vshrl.u32 %v320_v28, 7  ;;  %vm6093_vm5 = vmor %vm2065_vm3, %vm2066_vm4  ;;  %s5913_s10 = smov 32   ;;  %vm522_vm6 = vcmask 130048   ;;  %vm526_vm7 = vcmask 261120  }
  0x10   : > { %s5859_s26 = smul.u32 48, %s9083_s25  ;;  %s5914_s11 = smov 48   ;;  %vm529_vm8 = vcmask 392192   ;;  %vm532_vm9 = vcmask 523264   ;;  %vm535_vm10 = vcmask 654336   ;;  %vm538_vm11 = vcmask 785408  }
  0x11   : > { %v319_v40 = vunpack.c.0.s8 %v6039_v27  ;;  %s5915_s12 = smov 64   ;;  %s5916_s13 = smov 80   ;;  %vm541_vm12 = vcmask 916480   ;;  %vm2965_vm13 = vcmask 1041408   ;;  %vm2961_vm14 = vcmask 293888  }
  0x12   : > { %s5976_s29 = scalar_lea.vmem %s8892_s0, %s5859_s26  ;;  %s5917_s14 = smov 96   ;;  %vm3031_vm15 = vcmask 146432   ;;  %vm3034_vm0 = vcmask 140288   ;;  %vm3257_vm1 = vcmask 138248   ;;  %vm3994_vm3 = vsmask.f32 7424 }
  0x13   : > { %v5979_v0 = vld [vmem:[%s5976_s29 + $0xc] sm:$0xf]  ;;  %v5982_v1 = vld [vmem:[%s5976_s29] sm:$0xf]  ;;  %v5989_v2 = vld [vmem:[%s5976_s29 + $0x10] sm:$0xf] }
  0x14   : > { %578 = vrot.lane.b32.xlu1 %v5979_v0, %s5908_s30  ;;  %574 = vrot.lane.b32.xlu0 %v5982_v1, %s5908_s30  ;;  %v5992_v3 = vld [vmem:[%s5976_s29 + $0x4] sm:$0xf]  ;;  %v295_v4 = vshrl.u32 %v5982_v1, 16  ;;  %v1146_v5 = vshll.u32 %v5982_v1, 16  ;;  %v294_v6 = vpack.i.b16 %v5979_v0, %v5982_v1  ;;  %v6009_v12 = vld [vmem:[%s5976_s29 + $0x1c] sm:$0xf] }
  0x15   : > { %v306_v7 = vpack.i.b16 %v5989_v2, %v5992_v3  ;;  %v307_v8 = vshrl.u32 %v5992_v3, 16  ;;  %v1151_v9 = vshll.u32 %v5992_v3, 16  ;;  %v6012_v13 = vld [vmem:[%s5976_s29 + $0x18] sm:$0xf]  ;;  %v308_v14 = vshrl.u32 %v5989_v2, 16  ;;  %s5918_s15 = smov 112  }
  0x16   : > { %v1145_v10 = vrot.slane %v295_v4, 4  ;;  %v1148_v11 = vrot.slane %v1146_v5, 5  ;;  %v1171_v15 = vshll.u32 %v5989_v2, 16  ;;  %v6021_v16 = vld [vmem:[%s5976_s29 + $0x28] sm:$0xf]  ;;  %v296_v29 = vshrl.u32 %v5979_v0, 16 }
  0x17   : > { %v6024_v17 = vld [vmem:[%s5976_s29 + $0x8] sm:$0x1]  ;;  %v1153_v18 = vrot.slane %v1151_v9, 5  ;;  %v1156_v19 = vrot.slane %v307_v8, 4  ;;  %v6029_v21 = vld [vmem:[%s5976_s29 + $0x24] sm:$0xf] }
  0x18   : > { %580 = vrot.lane.b32.xlu1 %v5989_v2, %s5908_s30  ;;  %576 = vrot.lane.b32.xlu0 %v5992_v3, %s5908_s30  ;;  %v1149_v20 = vor.u32 %v1148_v11, %v1145_v10  ;;  %v6032_v22 = vld [vmem:[%s5976_s29 + $0x14] sm:$0x1]  ;;  %v6034_v23 = vrot.slane %v1171_v15, 5  ;;  %v1176_v24 = vrot.slane %v308_v14, 4  ;;  %v1160_v25 = vshll.u32 %v6024_v17, 16  ;;  %s5921_s22 = smov 1  }
  0x19   : > { %v1157_v30 = vor.u32 %v1156_v19, %v1153_v18  ;;  %v1180_v32 = vshll.u32 %v6032_v22, 16  ;;  %v1166_v35 = vshll.u32 %v5979_v0, 16  ;;  %v6054_v36 = vld [vmem:[%s5976_s29 + $0x20] sm:$0x1]  ;;  %v1191_v37 = vshll.u32 %v6009_v12, 16 }
  0x1a   : > { %v1150_v31 = vrot.slane %v1149_v20, 4  ;;  %v1177_v34 = vor.u32 %v1176_v24, %v6034_v23  ;;  %v313_v38 = vshrl.u32 %v6009_v12, 16  ;;  %v1162_v39 = vrot.slane %v1160_v25, 5  ;;  %v291_v20 = vld [vmem:[%s5976_s29 + $0x2c] sm:$0x1] }
  0x1b   : > { %v6063_v42 = vrot.slane %v296_v29, 4  ;;  %v1158_v43 = vrot.slane %v1157_v30, 4  ;;  %v1182_v45 = vrot.slane %v1180_v32, 5  ;;  %v1200_v46 = vshll.u32 %v6054_v36, 16 }
  0x1c   : > { %584 = vrot.lane.b32.xlu1 %v6009_v12, %s5908_s30  ;;  %582 = vrot.lane.b32.xlu0 %v6012_v13, %s5908_s30  ;;  %v6071_v44 = vsel %vm6047_vm2, %v1150_v31, %v1153_v18  ;;  %v1178_v47 = vrot.slane %v1177_v34, 4  ;;  %v1168_v48 = vrot.slane %v1166_v35, 5  ;;  %v6074_v49 = vrot.slane %v1191_v37, 5 }
  0x1d   : > { %v301_v50 = vshrl.u32 %v6012_v13, 16  ;;  %v1196_v51 = vrot.slane %v313_v38, 4  ;;  %v1186_v52 = vshll.u32 %v6012_v13, 16  ;;  %v314_v53 = vshrl.u32 %v6021_v16, 16 }
  0x1e   : > { %v2070_v54 = vrot.slane %v5992_v3, 5  ;;  %v1211_v55 = vshll.u32 %v6021_v16, 16  ;;  %v302_v56 = vshrl.u32 %v6029_v21, 16  ;;  %v2073_v57 = vrot.slane %v6024_v17, 5 }
  0x1f   : > { %v2077_v58 = vrot.slane %v5989_v2, 5  ;;  %v1206_v59 = vshll.u32 %v6029_v21, 16  ;;  %v5710_v62 = vrot.slane %v5982_v1, 9  ;;  %v2080_v63 = vrot.slane %v6032_v22, 5 }
  0x20   : > { %588 = vrot.lane.b32.xlu1 %v6021_v16, %s5908_s30  ;;  %586 = vrot.lane.b32.xlu0 %v6029_v21, %s5908_s30  ;;  %v2072_v61 = vrot.slane %v2070_v54, 4  ;;  %v6101_v5 = vsel %vm6047_vm2, %v1158_v43, %v1162_v39  ;;  %v1169_v9 = vor.u32 %v1168_v48, %v6063_v42  ;;  %v5711_v11 = vrot.slane %v5979_v0, 9 }
  0x21   : > { %v2079_v10 = vrot.slane %v2077_v58, 4  ;;  %v6107_v15 = vsel %vm6047_vm2, %v1178_v47, %v1182_v45  ;;  %v1185_v17 = vrot.slane %v301_v50, 4  ;;  %v1188_v18 = vrot.slane %v1186_v52, 5 }
  0x22   : > { %v1216_v19 = vrot.slane %v314_v53, 4  ;;  %v1213_v22 = vrot.slane %v1211_v55, 5  ;;  %v1205_v24 = vrot.slane %v302_v56, 4  ;;  %v6118_v25 = vsel %vm6093_vm5, %v2072_v61, %v2073_v57 }
  0x23   : > { %v2084_v26 = vrot.slane %v6009_v12, 5  ;;  %v1208_v28 = vrot.slane %v1206_v59, 5  ;;  %v2111_v30 = vshrl.u32 %v6118_v25, 16  ;;  %v6128_v31 = vsel %vm6093_vm5, %v5710_v62, %v2070_v54 }
  0x24   : > { %860 = vrot.lane.b32.xlu1 %v5992_v3, %s5910_s8  ;;  %858 = vrot.lane.b32.xlu0 %v5982_v1, %s5910_s8  ;;  %v6132_v32 = vsel %vm6093_vm5, %v2079_v10, %v2080_v63  ;;  %v1197_v34 = vor.u32 %v1196_v51, %v6074_v49  ;;  %v2099_v35 = vshrl.u32 %v6128_v31, 16  ;;  %v6140_v39 = vsel %vm6093_vm5, %v5711_v11, %v2077_v58 }
  0x25   : > { %v2110_v37 = vpack.i.b16 %v6132_v32, %v6118_v25  ;;  %v1189_v42 = vor.u32 %v1188_v18, %v1185_v17  ;;  %v1220_v43 = vshll.u32 %v291_v20, 16  ;;  %v2112_v45 = vshrl.u32 %v6132_v32, 16 }
  0x26   : > { %v2100_v48 = vshrl.u32 %v6140_v39, 16  ;;  %v2086_v52 = vrot.slane %v2084_v26, 4  ;;  %v2087_v51 = vrot.slane %v6054_v36, 5  ;;  %v5712_v54 = vrot.slane %v6012_v13, 9 }
  0x27   : > { %v1202_v55 = vrot.slane %v1200_v46, 5  ;;  %v1217_v57 = vor.u32 %v1216_v19, %v1213_v22  ;;  %v1209_v58 = vor.u32 %v1208_v28, %v1205_v24  ;;  %v6152_v59 = vpack.i.b16 %v2112_v45, %v2111_v30 }
  0x28   : > { %864 = vrot.lane.b32.xlu1 %v5989_v2, %s5910_s8  ;;  %862 = vrot.lane.b32.xlu0 %v5979_v0, %s5910_s8  ;;  %v1170_v61 = vrot.slane %v1169_v9, 4  ;;  %v1198_v62 = vrot.slane %v1197_v34, 4  ;;  %v6154_v63 = vpack.i.b16 %v2100_v48, %v2099_v35  ;;  %v2091_v10 = vrot.slane %v6021_v16, 5 }
  0x29   : > { %8943 = vst [vmem:[#allocation5_spill] sm:$0xff] %v6152_v59  ;;  %v1222_v36 = vrot.slane %v1220_v43, 5  ;;  %v6159_v11 = vsel %vm6093_vm5, %v5712_v54, %v2084_v26  ;;  %v2094_v17 = vrot.slane %v291_v20, 5  ;;  %v5713_v18 = vrot.slane %v6029_v21, 9 }
  0x2a   : > { %8944 = vst [vmem:[#allocation6_spill] sm:$0xff] %v6154_v63  ;;  %v1190_v47 = vrot.slane %v1189_v42, 4  ;;  %v6164_v46 = vsel %vm6093_vm5, %v2086_v52, %v2087_v51  ;;  %v2105_v9 = vshrl.u32 %v6159_v11, 16  ;;  %v2093_v19 = vrot.slane %v2091_v10, 4 }
  0x2b   : > { %v1218_v24 = vrot.slane %v1217_v57, 4  ;;  %v1210_v26 = vrot.slane %v1209_v58, 4  ;;  %v2117_v20 = vshrl.u32 %v6164_v46, 16  ;;  %v6174_v28 = vsel %vm6093_vm5, %v5713_v18, %v2091_v10 }
  0x2c   : > { %868 = vrot.lane.b32.xlu1 %v6009_v12, %s5910_s8  ;;  %866 = vrot.lane.b32.xlu0 %v6012_v13, %s5910_s8  ;;  %v6179_v30 = vsel %vm6047_vm2, %v1170_v61, %v6034_v23  ;;  %v6183_v34 = vsel %vm6093_vm5, %v2093_v19, %v2094_v17  ;;  %v2106_v42 = vshrl.u32 %v6174_v28, 16  ;;  %v1238_v43 = vpack.i.b16 %v6107_v15, %v6101_v5 }
  0x2d   : > { %v2116_v45 = vpack.i.b16 %v6183_v34, %v6164_v46  ;;  %v2118_v48 = vshrl.u32 %v6183_v34, 16  ;;  %v1226_v23 = vpack.i.b16 %v6179_v30, %v6071_v44  ;;  %v1203_v60 = vsel %vm6047_vm2, %v1198_v62, %v1202_v55 }
  0x2e   : > { %v1194_v52 = vsel %vm6047_vm2, %v1190_v47, %v6074_v49  ;;  %v6200_v51 = vpack.i.b16 %v2106_v42, %v2105_v9  ;;  %v1223_v54 = vsel %vm6047_vm2, %v1218_v24, %v1222_v36  ;;  %v1214_v57 = vsel %vm6047_vm2, %v1210_v26, %v1213_v22 }
  0x2f   : > { %v6210_v58 = vpack.i.b16 %v2118_v48, %v2117_v20  ;;  %v6215_v49 = vsub.s32 %v319_v40, %v6059_v41  ;;  %v1244_v47 = vpack.i.b16 %v1223_v54, %v1203_v60  ;;  %v1232_v55 = vpack.i.b16 %v1214_v57, %v1194_v52 }
  0x30   : > { %872 = vrot.lane.b32.xlu1 %v6021_v16, %s5910_s8  ;;  %870 = vrot.lane.b32.xlu0 %v6029_v21, %s5910_s8  ;;  %8945 = vst [vmem:[#allocation7_spill] sm:$0xff] %v6200_v51  ;;  %v1227_v61 = vshrl.u32 %v6071_v44, 16  ;;  %v309_v62 = vpack.i.b16 %v308_v14, %v307_v8  ;;  %v1239_v10 = vshrl.u32 %v6101_v5, 16  ;;  %v1240_v33 = vshrl.u32 %v6107_v15, 16 }
  0x31   : > { %8946 = vst [vmem:[#allocation8_spill] sm:$0xff] %v6210_v58  ;;  %v6225_v22 = vrot.slane %v1238_v43, %v6215_v49  ;;  %v6231_v27 = vpack.i.b16 %v296_v29, %v295_v4  ;;  %v1228_v40 = vshrl.u32 %v6179_v30, 16  ;;  %v6235_v36 = vrot.slane %v1226_v23, %v6215_v49 }
  0x32   : > { %v1245_v17 = vshrl.u32 %v1203_v60, 16  ;;  %v1233_v8 = vshrl.u32 %v1194_v52, 16  ;;  %v1246_v14 = vshrl.u32 %v1223_v54, 16  ;;  %v6240_v18 = vrot.slane %v1244_v47, %v6215_v49 }
  0x33   : > { %v6243_v9 = vrot.slane %v1232_v55, %v6215_v49  ;;  %v312_v4 = vpack.i.b16 %v6021_v16, %v6009_v12  ;;  %v1234_v29 = vshrl.u32 %v1214_v57, 16  ;;  %v6251_v19 = vrot.slane %v306_v7, %v6215_v49 }
  0x34   : > { %1779 = vrot.lane.b32.xlu1 %v6101_v5, %s5910_s8  ;;  %1777 = vrot.lane.b32.xlu0 %v6071_v44, %s5910_s8  ;;  %v300_v24 = vpack.i.b16 %v6029_v21, %v6012_v13  ;;  %v6259_v26 = vrot.slane %v294_v6, %v6215_v49  ;;  %v1241_v7 = vpack.i.b16 %v1240_v33, %v1239_v10  ;;  %vm4738_vm2 = vcmask 1046528  }
  0x35   : > { %v6262_v20 = vrot.slane %v312_v4, %v6215_v49  ;;  %v1229_v1 = vpack.i.b16 %v1228_v40, %v1227_v61  ;;  %v1247_v6 = vpack.i.b16 %v1246_v14, %v1245_v17  ;;  %v1235_v43 = vpack.i.b16 %v1234_v29, %v1233_v8 }
  0x36   : > { %v6271_v3 = vrot.slane %v300_v24, %v6215_v49  ;;  %v6282_v23 = vrot.slane %v1241_v7, %v6215_v49  ;;  %v5911_v8 = vmov 1934713408   ;;  %v303_v12 = vpack.i.b16 %v302_v56, %v301_v50 }
  0x37   : > { %v400_v0 = vcombine.low %v6251_v19, %v6262_v20  ;;  %v6285_v47 = vrot.slane %v1247_v6, %v6215_v49  ;;  %v6288_v55 = vrot.slane %v1229_v1, %v6215_v49  ;;  %v6291_v61 = vrot.slane %v1235_v43, %v6215_v49 }
  0x38   : > { %1783 = vrot.lane.b32.xlu1 %v6107_v15, %s5910_s8  ;;  %1781 = vrot.lane.b32.xlu0 %v6179_v30, %s5910_s8  ;;  %v332_v48 = vcombine.low %v6259_v26, %v6271_v3  ;;  %v335_v14 = vunpack.c.l.s4 %v5911_v8  ;;  %v6358_v21 = vrot.slane %v6231_v27, %v6215_v49  ;;  %v1332_v56 = vcombine.low %v6225_v22, %v6240_v18 }
  0x3c   : > { %1787 = vrot.lane.b32.xlu1 %v1203_v60, %s5910_s8  ;;  %1785 = vrot.lane.b32.xlu0 %v1194_v52, %s5910_s8 }
  0x40   : > { %1791 = vrot.lane.b32.xlu1 %v1223_v54, %s5910_s8  ;;  %1789 = vrot.lane.b32.xlu0 %v1214_v57, %s5910_s8 }
  0x44   : > { %2365 = vrot.lane.b32.xlu1 %v6118_v25, %s5908_s30  ;;  %2363 = vrot.lane.b32.xlu0 %v6128_v31, %s5908_s30 }
  0x48   : > { %2369 = vrot.lane.b32.xlu1 %v6132_v32, %s5908_s30  ;;  %2367 = vrot.lane.b32.xlu0 %v6140_v39, %s5908_s30 }
  0x4c   : > { %2373 = vrot.lane.b32.xlu1 %v6164_v46, %s5908_s30  ;;  %2371 = vrot.lane.b32.xlu0 %v6159_v11, %s5908_s30 }
  0x50   : > { %2377 = vrot.lane.b32.xlu1 %v6183_v34, %s5908_s30  ;;  %2375 = vrot.lane.b32.xlu0 %v6174_v28, %s5908_s30 }
  0x54   : > { %1494 = vrot.lane.b32.xlu1 %v6101_v5, %s5908_s30  ;;  %1492 = vrot.lane.b32.xlu0 %v6071_v44, %s5908_s30  ;;  %v315_v44 = vpack.i.b16 %v314_v53, %v313_v38  ;;  %v336_v5 = vunpack.c.0.s8 %v335_v14  ;;  %v1366_v38 = vcombine.low %v6282_v23, %v6285_v47  ;;  %v1298_v53 = vcombine.low %v6288_v55, %v6291_v61 }
  0x56   : > { %v6344_v16 = vsub.s32 %v336_v5, %v6059_v41  ;;  %v6361_v41 = vrot.slane %v303_v12, %v6215_v49 }
  0x58   : > { %1498 = vrot.lane.b32.xlu1 %v6107_v15, %s5908_s30  ;;  %1496 = vrot.lane.b32.xlu0 %v6179_v30, %s5908_s30  ;;  %v6334_v15 = vrot.slane %v309_v62, %v6215_v49  ;;  %v6337_v30 = vrot.slane %v315_v44, %v6215_v49  ;;  %v1374_v50 = vrot.slane %v1366_v38, %v6344_v16 }
  0x59   : > { %v6376_v62 = vrot.slane %v1332_v56, %v6344_v16  ;;  %v366_v24 = vcombine.low %v6358_v21, %v6361_v41  ;;  %v6413_v12 = vrot.slane %v400_v0, %v6344_v16  ;;  %v6419_v38 = vrot.slane %v332_v48, %v6344_v16 }
  0x5a   : > { %v434_v29 = vcombine.low %v6334_v15, %v6337_v30  ;;  %v5816_v44 = vcombine.high %v1374_v50, %v1374_v50 }
  0x5b   : > { %8947 = vst [vmem:[#allocation9_spill] sm:$0xff] %v6376_v62  ;;  %v5815_v7 = vcombine.high %v6376_v62, %v6376_v62  ;;  %v6399_v43 = vrot.slane %v366_v24, %v6344_v16  ;;  %8949 = vst [vmem:[#allocation11_spill] sm:$0xff] %v6413_v12 }
  0x5c   : > { %1502 = vrot.lane.b32.xlu1 %v1203_v60, %s5908_s30  ;;  %1500 = vrot.lane.b32.xlu0 %v1194_v52, %s5908_s30  ;;  %v1264_v60 = vcombine.low %v6235_v36, %v6243_v9  ;;  %v1306_v52 = vrot.slane %v1298_v53, %v6344_v16  ;;  %v6396_v6 = vrot.slane %v434_v29, %v6344_v16 }
  0x5d   : > { %v5620_v14 = vcombine.low %v6399_v43, %v6399_v43  ;;  %8950 = vst [vmem:[#allocation12_spill] sm:$0xff] %v6419_v38  ;;  %v5791_v53 = vcombine.high %v6413_v12, %v6413_v12 }
  0x5e   : > { %v6379_v27 = vrot.slane %v1264_v60, %v6344_v16  ;;  %v5665_v4 = vcombine.low %v1306_v52, %v1306_v52  ;;  %v5627_v8 = vcombine.low %v6396_v6, %v6396_v6  ;;  %v5812_v5 = vcombine.high %v1306_v52, %v1306_v52 }
  0x60   : > { %1506 = vrot.lane.b32.xlu1 %v1223_v54, %s5908_s30  ;;  %1504 = vrot.lane.b32.xlu0 %v1214_v57, %s5908_s30  ;;  %v5672_v57 = vcombine.low %v1374_v50, %v1374_v50  ;;  %8948 = vst [vmem:[#allocation10_spill] sm:$0xff] %v6379_v27  ;;  %v5811_v1 = vcombine.high %v6379_v27, %v6379_v27 }
  0x61   : > { %v5787_v50 = vcombine.high %v6419_v38, %v6419_v38  ;;  %v8961_v27 = vcombine.high %v6235_v36, %v6243_v9 }
  0x64   : > { %2649 = vrot.lane.b32.xlu1 %v6118_v25, %s5910_s8  ;;  %2647 = vrot.lane.b32.xlu0 %v6128_v31, %s5910_s8 }
  0x68   : > { %2653 = vrot.lane.b32.xlu1 %v6132_v32, %s5910_s8  ;;  %2651 = vrot.lane.b32.xlu0 %v6140_v39, %s5910_s8 }
  0x6c   : > { %2657 = vrot.lane.b32.xlu1 %v6164_v46, %s5910_s8  ;;  %2655 = vrot.lane.b32.xlu0 %v6159_v11, %s5910_s8 }
  0x70   : > { %2661 = vrot.lane.b32.xlu1 %v6183_v34, %s5910_s8  ;;  %2659 = vrot.lane.b32.xlu0 %v6174_v28, %s5910_s8 }
  0x74   : > { %1422 = vrot.lane.b32.xlu1 %v5672_v57, %s5912_s9  ;;  %1387 = vrot.lane.b32.xlu0 %v5665_v4, %s5912_s9 }
  0x78   : > { %1427 = vrot.lane.b32.xlu1 %v5815_v7, %s5913_s10  ;;  %1392 = vrot.lane.b32.xlu0 %v5811_v1, %s5913_s10 }
  0x7c   : > { %490 = vrot.lane.b32.xlu1 %v5627_v8, %s5912_s9  ;;  %455 = vrot.lane.b32.xlu0 %v5620_v14, %s5912_s9 }
  0x80   : > { %1432 = vrot.lane.b32.xlu1 %v5816_v44, %s5914_s11  ;;  %1397 = vrot.lane.b32.xlu0 %v5812_v5, %s5914_s11 }
  0x84   : > { %495 = vrot.lane.b32.xlu1 %v5791_v53, %s5913_s10  ;;  %460 = vrot.lane.b32.xlu0 %v5787_v50, %s5913_s10 }
  0x86   : > { %v579_v0 = vpop.permute.xlu1 %578  ;;  %v575_v56 = vpop.permute.xlu0 %574 }
  0x87   : > { %v592_v4 = vpack.i.b16 %v579_v0, %v575_v56  ;;  %v594_v1 = vshrl.u32 %v579_v0, 16  ;;  %v593_v8 = vshrl.u32 %v575_v56, 16 }
  0x89   : > { %v621_v40 = vrot.slane %v592_v4, %v6215_v49  ;;  %v595_v56 = vpack.i.b16 %v594_v1, %v593_v8 }
  0x8a   : > { %v581_v60 = vpop.permute.xlu1 %580  ;;  %v577_v48 = vpop.permute.xlu0 %576 }
  0x8b   : > { %v606_v29 = vshrl.u32 %v581_v60, 16  ;;  %v604_v24 = vpack.i.b16 %v581_v60, %v577_v48  ;;  %v605_v7 = vshrl.u32 %v577_v48, 16 }
  0x8d   : > { %v607_v33 = vpack.i.b16 %v606_v29, %v605_v7  ;;  %v689_v10 = vrot.slane %v604_v24, %v6215_v49  ;;  %v6453_v7 = vrot.slane %v595_v56, %v6215_v49  ;;  %v8955_v56 = vpack.i.b16 %v6174_v28, %v6159_v11 }
  0x8e   : > { %v585_v52 = vpop.permute.xlu1 %584  ;;  %v583_v57 = vpop.permute.xlu0 %582 }
  0x8f   : > { %v611_v14 = vshrl.u32 %v585_v52, 16  ;;  %v599_v44 = vshrl.u32 %v583_v57, 16  ;;  %v6491_v25 = vrot.slane %v8955_v56, %v6215_v49 }
  0x91   : > { %8956 = vst [vmem:[#allocation16_spill] sm:$0xff] %v6491_v25 }
  0x92   : > { %v589_v5 = vpop.permute.xlu1 %588  ;;  %v587_v54 = vpop.permute.xlu0 %586 }
  0x93   : > { %v610_v13 = vpack.i.b16 %v589_v5, %v585_v52  ;;  %v612_v53 = vshrl.u32 %v589_v5, 16  ;;  %v598_v17 = vpack.i.b16 %v587_v54, %v583_v57  ;;  %v600_v50 = vshrl.u32 %v587_v54, 16 }
  0x95   : > { %v613_v2 = vpack.i.b16 %v612_v53, %v611_v14  ;;  %v697_v42 = vrot.slane %v610_v13, %v6215_v49  ;;  %v601_v60 = vpack.i.b16 %v600_v50, %v599_v44  ;;  %v629_v0 = vrot.slane %v598_v17, %v6215_v49 }
  0x96   : > { %v6433_v48 = vpop.permute.xlu1 %860  ;;  %v6435_v35 = vpop.permute.xlu0 %858  ;;  %v6444_v13 = vrot.slane %v607_v33, %v6215_v49  ;;  %v6473_v44 = vrot.slane %v2110_v37, %v6215_v49  ;;  %v8953_v50 = vpack.i.b16 %v6140_v39, %v6128_v31 }
  0x97   : > { %v698_v52 = vcombine.low %v689_v10, %v697_v42  ;;  %v699_v5 = vcombine.high %v689_v10, %v697_v42  ;;  %v6438_v54 = vrot.slane %v613_v2, %v6215_v49  ;;  %v630_v57 = vcombine.low %v621_v40, %v629_v0 }
  0x98   : > { %v631_v4 = vcombine.high %v621_v40, %v629_v0  ;;  %v6441_v29 = vrot.slane %v601_v60, %v6215_v49  ;;  %v6479_v60 = vrot.slane %v8953_v50, %v6215_v49  ;;  %v6485_v0 = vrot.slane %v2116_v45, %v6215_v49 }
  0x99   : > { %v6447_v17 = vrot.slane %v698_v52, %v6344_v16  ;;  %v6450_v24 = vrot.slane %v630_v57, %v6344_v16  ;;  %v6456_v10 = vrot.slane %v699_v5, %v6344_v16  ;;  %v732_v40 = vcombine.low %v6444_v13, %v6438_v54 }
  0x9a   : > { %v865_v42 = vpop.permute.xlu1 %864  ;;  %v863_v2 = vpop.permute.xlu0 %862  ;;  %v6465_v8 = vrot.slane %v631_v4, %v6344_v16  ;;  %v664_v14 = vcombine.low %v6453_v7, %v6441_v29  ;;  %8954 = vst [vmem:[#allocation15_spill] sm:$0xff] %v6479_v60  ;;  %v889_v37 = vshrl.u32 %v6433_v48, 16  ;;  %v877_v28 = vshrl.u32 %v6435_v35, 16 }
  0x9b   : > { %8951 = vst [vmem:[#allocation13_spill] sm:$0xff] %v6447_v17  ;;  %8952 = vst [vmem:[#allocation14_spill] sm:$0xff] %v6450_v24  ;;  %v5799_v33 = vcombine.high %v6447_v17, %v6447_v17  ;;  %v5795_v1 = vcombine.high %v6450_v24, %v6450_v24  ;;  %v890_v53 = vshrl.u32 %v865_v42, 16  ;;  %v878_v39 = vshrl.u32 %v863_v2, 16 }
  0x9c   : > { %v5645_v46 = vcombine.low %v6456_v10, %v6456_v10  ;;  %v5638_v34 = vcombine.low %v6465_v8, %v6465_v8  ;;  %v740_v45 = vrot.slane %v732_v40, %v6344_v16  ;;  %v672_v11 = vrot.slane %v664_v14, %v6344_v16 }
  0x9d   : > { %793 = vrot.lane.b32.xlu1 %v5799_v33, %s5913_s10  ;;  %758 = vrot.lane.b32.xlu0 %v5795_v1, %s5913_s10  ;;  %v888_v52 = vpack.i.b16 %v865_v42, %v6433_v48  ;;  %v891_v5 = vpack.i.b16 %v890_v53, %v889_v37  ;;  %v876_v57 = vpack.i.b16 %v863_v2, %v6435_v35 }
  0x9e   : > { %v869_v32 = vpop.permute.xlu1 %868  ;;  %v867_v31 = vpop.permute.xlu0 %866  ;;  %v879_v35 = vpack.i.b16 %v878_v39, %v877_v28  ;;  %v5642_v2 = vcombine.low %v740_v45, %v740_v45  ;;  %v5635_v37 = vcombine.low %v672_v11, %v672_v11  ;;  %v733_v63 = vcombine.high %v6444_v13, %v6438_v54 }
  0x9f   : > { %v895_v4 = vshrl.u32 %v869_v32, 16  ;;  %v883_v33 = vshrl.u32 %v867_v31, 16  ;;  %v6527_v39 = vrot.slane %v891_v5, %v6215_v49  ;;  %v6530_v28 = vrot.slane %v876_v57, %v6215_v49 }
  0xa0   : > { %v5788_v54 = vcombine.high %v6399_v43, %v6399_v43  ;;  %v8966_v43 = vcombine.high %v6282_v23, %v6285_v47  ;;  %v8968_v23 = vcombine.high %v6288_v55, %v6291_v61 }
  0xa1   : > { %803 = vrot.lane.b32.xlu1 %v5645_v46, %s5915_s12  ;;  %768 = vrot.lane.b32.xlu0 %v5638_v34, %s5915_s12 }
  0xa2   : > { %v873_v1 = vpop.permute.xlu1 %872  ;;  %v871_v50 = vpop.permute.xlu0 %870  ;;  %v6680_v47 = vrot.slane %v8968_v23, %v6344_v16 }
  0xa3   : > { %v894_v56 = vpack.i.b16 %v873_v1, %v869_v32  ;;  %v896_v48 = vshrl.u32 %v873_v1, 16  ;;  %v882_v42 = vpack.i.b16 %v871_v50, %v867_v31  ;;  %v884_v53 = vshrl.u32 %v871_v50, 16 }
  0xa4   : > { %v6524_v31 = vrot.slane %v888_v52, %v6215_v49  ;;  %v5800_v50 = vcombine.high %v740_v45, %v740_v45 }
  0xa5   : > { %v897_v38 = vpack.i.b16 %v896_v48, %v895_v4  ;;  %v6512_v46 = vrot.slane %v894_v56, %v6215_v49  ;;  %v885_v34 = vpack.i.b16 %v884_v53, %v883_v33  ;;  %v6515_v12 = vrot.slane %v882_v42, %v6215_v49  ;;  %788 = vrot.lane.b32.xlu1 %v5642_v2, %s5912_s9 }
  0xa6   : > { %753 = vrot.lane.b32.xlu0 %v5635_v37, %s5912_s9  ;;  %v6519_v14 = vpop.permute.xlu1 %1779  ;;  %v6521_v32 = vpop.permute.xlu0 %1777  ;;  %v6536_v33 = vrot.slane %v879_v35, %v6215_v49  ;;  %v5796_v56 = vcombine.high %v672_v11, %v672_v11  ;;  %v8960_v48 = vcombine.high %v6225_v22, %v6240_v18 }
  0xa7   : > { %v6533_v4 = vrot.slane %v897_v38, %v6215_v49  ;;  %v6539_v1 = vrot.slane %v885_v34, %v6215_v49  ;;  %v982_v52 = vcombine.low %v6524_v31, %v6512_v46  ;;  %v914_v38 = vcombine.low %v6530_v28, %v6515_v12 }
  0xa8   : > { %v6588_v5 = vrot.slane %v8960_v48, %v6344_v16  ;;  %v1796_v62 = vshrl.u32 %v6521_v32, 16 }
  0xa9   : > { %8957 = vst [vmem:[#allocation17_spill] sm:$0xff] %v6539_v1  ;;  %v1016_v57 = vcombine.low %v6527_v39, %v6533_v4  ;;  %798 = vrot.lane.b32.xlu1 %v5800_v50, %s5914_s11  ;;  %v948_v42 = vcombine.low %v6536_v33, %v6539_v1  ;;  %v6566_v2 = vrot.slane %v982_v52, %v6344_v16 }
  0xaa   : > { %763 = vrot.lane.b32.xlu0 %v5796_v56, %s5914_s11  ;;  %v6553_v45 = vpop.permute.xlu1 %1783  ;;  %v6555_v11 = vpop.permute.xlu0 %1781 }
  0xab   : > { %v6560_v53 = vrot.slane %v1016_v57, %v6344_v16  ;;  %v6563_v35 = vrot.slane %v948_v42, %v6344_v16  ;;  %8958 = vst [vmem:[#allocation18_spill] sm:$0xff] %v6566_v2  ;;  %v1809_v37 = vshrl.u32 %v6553_v45, 16  ;;  %v6578_v57 = vrot.slane %v914_v38, %v6344_v16 }
  0xac   : > { %v1808_v42 = vshrl.u32 %v6519_v14, 16  ;;  %v1797_v52 = vshrl.u32 %v6555_v11, 16  ;;  %v6594_v38 = vrot.slane %v8961_v27, %v6344_v16 }
  0xad   : > { %v5657_v56 = vcombine.low %v6560_v53, %v6560_v53  ;;  %v5650_v40 = vcombine.low %v6563_v35, %v6563_v35  ;;  %8959 = vst [vmem:[#allocation19_spill] sm:$0xff] %v6578_v57  ;;  %v5803_v22 = vcombine.high %v6578_v57, %v6578_v57 }
  0xae   : > { %v6569_v34 = vpop.permute.xlu1 %1787  ;;  %v6571_v50 = vpop.permute.xlu0 %1785  ;;  %v1810_v24 = vpack.i.b16 %v1809_v37, %v1808_v42  ;;  %v1798_v27 = vpack.i.b16 %v1797_v52, %v1796_v62  ;;  %v5675_v37 = vcombine.low %v6588_v5, %v6588_v5  ;;  %v5668_v42 = vcombine.low %v6594_v38, %v6594_v38 }
  0xaf   : > { %1072 = vrot.lane.b32.xlu1 %v5657_v56, %s5912_s9  ;;  %1037 = vrot.lane.b32.xlu0 %v5650_v40, %s5912_s9  ;;  %v5807_v40 = vcombine.high %v6566_v2, %v6566_v2  ;;  %v1814_v18 = vshrl.u32 %v6569_v34, 16  ;;  %v1802_v48 = vshrl.u32 %v6571_v50, 16  ;;  %v665_v62 = vcombine.high %v6453_v7, %v6441_v29 }
  0xb0   : > { %v6624_v52 = vrot.slane %v1810_v24, %v6215_v49  ;;  %v6650_v7 = vrot.slane %v733_v63, %v6344_v16 }
  0xb2   : > { %v6597_v17 = vpop.permute.xlu1 %1791  ;;  %v6599_v56 = vpop.permute.xlu0 %1789  ;;  %8962 = vst [vmem:[#allocation20_spill] sm:$0xff] %v6624_v52  ;;  %v5646_v63 = vcombine.low %v6650_v7, %v6650_v7 }
  0xb3   : > { %v1815_v36 = vshrl.u32 %v6597_v17, 16  ;;  %v1803_v9 = vshrl.u32 %v6599_v56, 16  ;;  %1077 = vrot.lane.b32.xlu1 %v5807_v40, %s5913_s10  ;;  %1042 = vrot.lane.b32.xlu0 %v5803_v22, %s5913_s10  ;;  %v5792_v22 = vcombine.high %v6396_v6, %v6396_v6 }
  0xb5   : > { %v1816_v57 = vpack.i.b16 %v1815_v36, %v1814_v18  ;;  %v1804_v2 = vpack.i.b16 %v1803_v9, %v1802_v48  ;;  %v6632_v18 = vrot.slane %v1798_v27, %v6215_v49 }
  0xb6   : > { %v6615_v58 = vpop.permute.xlu1 %2365  ;;  %v6617_v51 = vpop.permute.xlu0 %2363 }
  0xb7   : > { %v6627_v40 = vrot.slane %v1816_v57, %v6215_v49  ;;  %8964 = vst [vmem:[#allocation22_spill] sm:$0xff] %v6632_v18  ;;  %v6635_v48 = vrot.slane %v1804_v2, %v6215_v49  ;;  %1437 = vrot.lane.b32.xlu1 %v5675_v37, %s5915_s12  ;;  %1402 = vrot.lane.b32.xlu0 %v5668_v42, %s5915_s12  ;;  %v2394_v42 = vshrl.u32 %v6615_v58, 16  ;;  %v2382_v13 = vshrl.u32 %v6617_v51, 16 }
  0xb8   : > { %v6653_v2 = vrot.slane %v665_v62, %v6344_v16  ;;  %v6661_v57 = vrot.slane %v8966_v43, %v6344_v16 }
  0xb9   : > { %8963 = vst [vmem:[#allocation21_spill] sm:$0xff] %v6627_v40  ;;  %8965 = vst [vmem:[#allocation23_spill] sm:$0xff] %v6635_v48  ;;  %v1935_v55 = vcombine.low %v6624_v52, %v6627_v40  ;;  %v1867_v61 = vcombine.low %v6632_v18, %v6635_v48 }
  0xba   : > { %v6645_v6 = vpop.permute.xlu1 %2369  ;;  %v6647_v24 = vpop.permute.xlu0 %2367  ;;  %8967 = vst [vmem:[#allocation24_spill] sm:$0xff] %v6661_v57  ;;  %v5639_v37 = vcombine.low %v6653_v2, %v6653_v2  ;;  %v5676_v43 = vcombine.low %v6661_v57, %v6661_v57 }
  0xbb   : > { %500 = vrot.lane.b32.xlu1 %v5792_v22, %s5914_s11  ;;  %465 = vrot.lane.b32.xlu0 %v5788_v54, %s5914_s11  ;;  %v2395_v36 = vshrl.u32 %v6645_v6, 16  ;;  %v2383_v62 = vshrl.u32 %v6647_v24, 16  ;;  %v5808_v22 = vcombine.high %v6560_v53, %v6560_v53  ;;  %v5804_v54 = vcombine.high %v6563_v35, %v6563_v35 }
  0xbc   : > { %v6708_v40 = vrot.slane %v1935_v55, %v6344_v16  ;;  %v6711_v52 = vrot.slane %v1867_v61, %v6344_v16 }
  0xbd   : > { %v2384_v59 = vpack.i.b16 %v2383_v62, %v2382_v13 }
  0xbe   : > { %v6664_v9 = vpop.permute.xlu1 %2373  ;;  %v6666_v27 = vpop.permute.xlu0 %2371 }
  0xbf   : > { %808 = vrot.lane.b32.xlu1 %v5646_v63, %s5916_s13  ;;  %773 = vrot.lane.b32.xlu0 %v5639_v37, %s5916_s13  ;;  %v2396_v63 = vpack.i.b16 %v2395_v36, %v2394_v42  ;;  %v2400_v53 = vshrl.u32 %v6664_v9, 16  ;;  %v2388_v35 = vshrl.u32 %v6666_v27, 16  ;;  %v5669_v36 = vcombine.low %v6680_v47, %v6680_v47 }
  0xc2   : > { %v6689_v29 = vpop.permute.xlu1 %2377  ;;  %v6691_v37 = vpop.permute.xlu0 %2375 }
  0xc3   : > { %v2401_v23 = vshrl.u32 %v6689_v29, 16  ;;  %v2389_v57 = vshrl.u32 %v6691_v37, 16  ;;  %1082 = vrot.lane.b32.xlu1 %v5808_v22, %s5914_s11  ;;  %1047 = vrot.lane.b32.xlu0 %v5804_v54, %s5914_s11  ;;  %v6720_v22 = vrot.slane %v2396_v63, %v6215_v49 }
  0xc5   : > { %v2402_v48 = vpack.i.b16 %v2401_v23, %v2400_v53  ;;  %v2390_v18 = vpack.i.b16 %v2389_v57, %v2388_v35  ;;  %8969 = vst [vmem:[#allocation25_spill] sm:$0xff] %v6720_v22  ;;  %v6726_v57 = vrot.slane %v2384_v59, %v6215_v49  ;;  %v5702_v59 = vcombine.low %v6708_v40, %v6708_v40 }
  0xc6   : > { %v6713_v1 = vpop.permute.xlu1 %1494  ;;  %v6715_v13 = vpop.permute.xlu0 %1492 }
  0xc7   : > { %v6723_v54 = vrot.slane %v2402_v48, %v6215_v49  ;;  %8971 = vst [vmem:[#allocation27_spill] sm:$0xff] %v6726_v57  ;;  %v6729_v55 = vrot.slane %v2390_v18, %v6215_v49  ;;  %1442 = vrot.lane.b32.xlu1 %v5676_v43, %s5916_s13  ;;  %1407 = vrot.lane.b32.xlu0 %v5669_v36, %s5916_s13 }
  0xc8   : > { %v5695_v18 = vcombine.low %v6711_v52, %v6711_v52  ;;  %v8973_v36 = vcombine.high %v6251_v19, %v6262_v20  ;;  %v8974_v48 = vcombine.high %v6259_v26, %v6271_v3  ;;  %v1523_v19 = vshrl.u32 %v6713_v1, 16 }
  0xc9   : > { %8970 = vst [vmem:[#allocation26_spill] sm:$0xff] %v6723_v54  ;;  %8972 = vst [vmem:[#allocation28_spill] sm:$0xff] %v6729_v55  ;;  %v2521_v63 = vcombine.low %v6720_v22, %v6723_v54  ;;  %v2453_v43 = vcombine.low %v6726_v57, %v6729_v55  ;;  %v983_v3 = vcombine.high %v6524_v31, %v6512_v46 }
  0xca   : > { %v6745_v53 = vpop.permute.xlu1 %1498  ;;  %v6747_v35 = vpop.permute.xlu0 %1496  ;;  %v6756_v62 = vrot.slane %v8973_v36, %v6344_v16  ;;  %v6767_v61 = vrot.slane %v8974_v48, %v6344_v16  ;;  %v915_v48 = vcombine.high %v6530_v28, %v6515_v12  ;;  %v1813_v54 = vpack.i.b16 %v6597_v17, %v6569_v34 }
  0xcb   : > { %v6750_v23 = vrot.slane %v2521_v63, %v6344_v16  ;;  %1991 = vrot.lane.b32.xlu1 %v5702_v59, %s5912_s9  ;;  %1956 = vrot.lane.b32.xlu0 %v5695_v18, %s5912_s9  ;;  %v6761_v42 = vrot.slane %v2453_v43, %v6344_v16  ;;  %v1524_v20 = vshrl.u32 %v6745_v53, 16  ;;  %v1511_v18 = vshrl.u32 %v6715_v13, 16 }
  0xcc   : > { %v1512_v43 = vshrl.u32 %v6747_v35, 16  ;;  %v5630_v26 = vcombine.low %v6756_v62, %v6756_v62  ;;  %v5623_v57 = vcombine.low %v6767_v61, %v6767_v61  ;;  %v1801_v46 = vpack.i.b16 %v6599_v56, %v6571_v50 }
  0xcd   : > { %v5736_v63 = vcombine.low %v6750_v23, %v6750_v23  ;;  %v5729_v59 = vcombine.low %v6761_v42, %v6761_v42  ;;  %v1525_v22 = vpack.i.b16 %v1524_v20, %v1523_v19  ;;  %v5801_v12 = vcombine.high %v6456_v10, %v6456_v10 }
  0xce   : > { %v6777_v36 = vpop.permute.xlu1 %1502  ;;  %v6779_v55 = vpop.permute.xlu0 %1500  ;;  %v1513_v31 = vpack.i.b16 %v1512_v43, %v1511_v18  ;;  %v1795_v17 = vpack.i.b16 %v6555_v11, %v6521_v32  ;;  %v5797_v10 = vcombine.high %v6465_v8, %v6465_v8  ;;  %v6814_v50 = vrot.slane %v983_v3, %v6344_v16 }
  0xcf   : > { %2577 = vrot.lane.b32.xlu1 %v5736_v63, %s5912_s9  ;;  %2542 = vrot.lane.b32.xlu0 %v5729_v59, %s5912_s9  ;;  %v1529_v25 = vshrl.u32 %v6777_v36, 16  ;;  %v1517_v60 = vshrl.u32 %v6779_v55, 16  ;;  %v1807_v59 = vpack.i.b16 %v6553_v45, %v6519_v14  ;;  %v6817_v56 = vrot.slane %v915_v48, %v6344_v16 }
  0xd0   : > { %v6820_v14 = vrot.slane %v1813_v54, %v6215_v49  ;;  %v6823_v32 = vrot.slane %v1525_v22, %v6215_v49  ;;  %v6826_v20 = vrot.slane %v1801_v46, %v6215_v49  ;;  %v2399_v8 = vpack.i.b16 %v6689_v29, %v6664_v9 }
  0xd1   : > { %v6833_v18 = vrot.slane %v1513_v31, %v6215_v49  ;;  %v6836_v54 = vrot.slane %v1807_v59, %v6215_v49  ;;  %v6839_v22 = vrot.slane %v1795_v17, %v6215_v49  ;;  %v2381_v29 = vpack.i.b16 %v6647_v24, %v6617_v51 }
  0xd2   : > { %v6799_v28 = vpop.permute.xlu1 %1506  ;;  %v6801_v63 = vpop.permute.xlu0 %1504  ;;  %v6864_v24 = vrot.slane %v2399_v8, %v6215_v49  ;;  %v5817_v3 = vcombine.high %v6588_v5, %v6588_v5  ;;  %v5813_v31 = vcombine.high %v6594_v38, %v6594_v38  ;;  %v8979_v8 = vcombine.high %v6334_v15, %v6337_v30 }
  0xd3   : > { %v1530_v34 = vshrl.u32 %v6799_v28, 16  ;;  %v1518_v19 = vshrl.u32 %v6801_v63, 16  ;;  %505 = vrot.lane.b32.xlu1 %v5630_v26, %s5915_s12  ;;  %470 = vrot.lane.b32.xlu0 %v5623_v57, %s5915_s12  ;;  %v2387_v57 = vpack.i.b16 %v6691_v37, %v6666_v27  ;;  %v1901_v27 = vcombine.low %v6836_v54, %v6820_v14 }
  0xd4   : > { %v5660_v37 = vcombine.low %v6814_v50, %v6814_v50  ;;  %v6877_v46 = vrot.slane %v2381_v29, %v6215_v49  ;;  %v5814_v26 = vcombine.high %v6680_v47, %v6680_v47 }
  0xd5   : > { %v1531_v45 = vpack.i.b16 %v1530_v34, %v1529_v25  ;;  %v1519_v11 = vpack.i.b16 %v1518_v19, %v1517_v60  ;;  %v2393_v25 = vpack.i.b16 %v6645_v6, %v6615_v58  ;;  %v5653_v58 = vcombine.low %v6817_v56, %v6817_v56 }
  0xd6   : > { %v1833_v6 = vcombine.low %v6839_v22, %v6826_v20  ;;  %v6867_v43 = vrot.slane %v2387_v57, %v6215_v49  ;;  %v6888_v5 = vrot.slane %v1901_v27, %v6344_v16  ;;  %v6895_v34 = vpop.permute.xlu1 %2649  ;;  %v6897_v19 = vpop.permute.xlu0 %2647  ;;  %v6915_v57 = vrot.slane %v8979_v8, %v6344_v16 }
  0xd7   : > { %v6842_v60 = vrot.slane %v1531_v45, %v6215_v49  ;;  %813 = vrot.lane.b32.xlu1 %v5801_v12, %s5917_s14  ;;  %778 = vrot.lane.b32.xlu0 %v5797_v10, %s5917_s14  ;;  %v6851_v9 = vrot.slane %v1519_v11, %v6215_v49  ;;  %v6874_v48 = vrot.slane %v2393_v25, %v6215_v49 }
  0xd8   : > { %v2419_v59 = vcombine.low %v6877_v46, %v6867_v43  ;;  %8975 = vst [vmem:[#allocation29_spill] sm:$0xff] %v6888_v5  ;;  %v6891_v17 = vrot.slane %v1833_v6, %v6344_v16  ;;  %v5831_v38 = vcombine.high %v6888_v5, %v6888_v5  ;;  %v8980_v25 = vcombine.high %v6358_v21, %v6361_v41 }
  0xd9   : > { %v2487_v12 = vcombine.low %v6874_v48, %v6864_v24  ;;  %v5631_v15 = vcombine.low %v6915_v57, %v6915_v57 }
  0xda   : > { %8976 = vst [vmem:[#allocation30_spill] sm:$0xff] %v6891_v17  ;;  %v5827_v10 = vcombine.high %v6891_v17, %v6891_v17  ;;  %v6907_v11 = vrot.slane %v2419_v59, %v6344_v16  ;;  %v6921_v29 = vrot.slane %v8980_v25, %v6344_v16  ;;  %v6923_v27 = vpop.permute.xlu1 %2653 }
  0xdb   : > { %1087 = vrot.lane.b32.xlu1 %v5660_v37, %s5915_s12  ;;  %1052 = vrot.lane.b32.xlu0 %v5653_v58, %s5915_s12  ;;  %v6904_v45 = vrot.slane %v2487_v12, %v6344_v16  ;;  %v6925_v37 = vpop.permute.xlu0 %2651  ;;  %v8981_v12 = vcombine.high %v6527_v39, %v6533_v4 }
  0xdc   : > { %8978 = vst [vmem:[#allocation32_spill] sm:$0xff] %v6907_v11  ;;  %v5843_v6 = vcombine.high %v6907_v11, %v6907_v11  ;;  %v5624_v30 = vcombine.low %v6921_v29, %v6921_v29  ;;  %v5832_v11 = vcombine.high %v6708_v40, %v6708_v40  ;;  %v1528_v40 = vpack.i.b16 %v6799_v28, %v6777_v36 }
  0xdd   : > { %8977 = vst [vmem:[#allocation31_spill] sm:$0xff] %v6904_v45  ;;  %v5847_v58 = vcombine.high %v6904_v45, %v6904_v45  ;;  %v6951_v59 = vrot.slane %v8981_v12, %v6344_v16  ;;  %v8987_v12 = vld [vmem:[#allocation8_spill] sm:$0xff]  ;;  %v5828_v45 = vcombine.high %v6711_v52, %v6711_v52  ;;  %v1516_v52 = vpack.i.b16 %v6801_v63, %v6779_v55 }
  0xde   : > { %v6937_v21 = vpop.permute.xlu1 %2657  ;;  %v5848_v55 = vcombine.high %v6750_v23, %v6750_v23  ;;  %v5793_v63 = vcombine.high %v6756_v62, %v6756_v62  ;;  %v5809_v62 = vcombine.high %v6814_v50, %v6814_v50 }
  0xdf   : > { %1447 = vrot.lane.b32.xlu1 %v5817_v3, %s5917_s14  ;;  %1412 = vrot.lane.b32.xlu0 %v5813_v31, %s5917_s14  ;;  %v6939_v41 = vpop.permute.xlu0 %2655  ;;  %v5802_v3 = vcombine.high %v6650_v7, %v6650_v7  ;;  %v5798_v31 = vcombine.high %v6653_v2, %v6653_v2  ;;  %v1650_v7 = vcombine.low %v6823_v32, %v6842_v60 }
  0xe0   : > { %v1582_v2 = vcombine.low %v6833_v18, %v6851_v9 }
  0xe2   : > { %v6965_v39 = vpop.permute.xlu1 %2661 }
  0xe3   : > { %1996 = vrot.lane.b32.xlu1 %v5831_v38, %s5913_s10  ;;  %1961 = vrot.lane.b32.xlu0 %v5827_v10, %s5913_s10  ;;  %v8982_v38 = vld [vmem:[#allocation17_spill] sm:$0xff]  ;;  %v6967_v4 = vpop.permute.xlu0 %2659 }
  0xe4   : > { %v8983_v10 = vcombine.high %v6536_v33, %v8982_v38  ;;  %v5661_v33 = vcombine.low %v6951_v59, %v6951_v59  ;;  %v6987_v38 = vrot.slane %v8987_v12, %v6215_v49  ;;  %v7003_v12 = vrot.slane %v1582_v2, %v6344_v16 }
  0xe6   : > { %v6957_v8 = vrot.slane %v8983_v10, %v6344_v16  ;;  %v8988_v10 = vld [vmem:[#allocation24_spill] sm:$0xff] }
  0xe7   : > { %2582 = vrot.lane.b32.xlu1 %v5847_v58, %s5913_s10  ;;  %2547 = vrot.lane.b32.xlu0 %v5843_v6, %s5913_s10  ;;  %v8984_v58 = vld [vmem:[#allocation5_spill] sm:$0xff]  ;;  %v6997_v51 = vpop.permute.xlu0 %1387 }
  0xe8   : > { %v5654_v25 = vcombine.low %v6957_v8, %v6957_v8  ;;  %v6975_v6 = vrot.slane %v8984_v58, %v6215_v49  ;;  %v5818_v58 = vcombine.high %v8988_v10, %v8988_v10 }
  0xeb   : > { %510 = vrot.lane.b32.xlu1 %v5631_v15, %s5916_s13  ;;  %475 = vrot.lane.b32.xlu0 %v5624_v30, %s5916_s13  ;;  %v8985_v15 = vld [vmem:[#allocation6_spill] sm:$0xff]  ;;  %v7017_v2 = vpop.permute.xlu0 %1392 }
  0xec   : > { %v6979_v30 = vrot.slane %v8985_v15, %v6215_v49  ;;  %v6995_v15 = vpop.permute.xlu1 %1422 }
  0xef   : > { %818 = vrot.lane.b32.xlu1 %v5802_v3, %s5918_s15  ;;  %783 = vrot.lane.b32.xlu0 %v5798_v31, %s5918_s15  ;;  %v8986_v3 = vld [vmem:[#allocation7_spill] sm:$0xff] }
  0xf0   : > { %v6983_v31 = vrot.slane %v8986_v3, %v6215_v49  ;;  %v7000_v3 = vrot.slane %v1650_v7, %v6344_v16  ;;  %v5680_v7 = vcombine.low %v7003_v12, %v7003_v12  ;;  %v7015_v10 = vpop.permute.xlu1 %1427 }
  0xf2   : > { %v2170_v47 = vcombine.low %v6979_v30, %v6983_v31 }
  0xf3   : > { %1092 = vrot.lane.b32.xlu1 %v5661_v33, %s5916_s13  ;;  %1057 = vrot.lane.b32.xlu0 %v5654_v25, %s5916_s13  ;;  %v2238_v33 = vcombine.low %v6975_v6, %v6987_v38  ;;  %v5687_v25 = vcombine.low %v7000_v3, %v7000_v3 }
  0xf7   : > { %1452 = vrot.lane.b32.xlu1 %v5818_v58, %s5918_s15  ;;  %1417 = vrot.lane.b32.xlu0 %v5814_v26, %s5918_s15  ;;  %v7022_v26 = vrot.slane %v2238_v33, %v6344_v16  ;;  %v7025_v58 = vrot.slane %v2170_v47, %v6344_v16  ;;  %v1522_v47 = vpack.i.b16 %v6745_v53, %v6713_v1 }
  0xf8   : > { %v7061_v53 = vrot.slane %v1516_v52, %v6215_v49 }
  0xf9   : > { %v5714_v33 = vcombine.low %v7025_v58, %v7025_v58  ;;  %v7052_v17 = vrot.slane %v1522_v47, %v6215_v49 }
  0xfb   : > { %1706 = vrot.lane.b32.xlu1 %v5687_v25, %s5912_s9  ;;  %1671 = vrot.lane.b32.xlu0 %v5680_v7, %s5912_s9  ;;  %v5721_v25 = vcombine.low %v7022_v26, %v7022_v26  ;;  %v1510_v7 = vpack.i.b16 %v6747_v35, %v6715_v13  ;;  %v7058_v13 = vrot.slane %v1528_v40, %v6215_v49 }
  0xfc   : > { %v5844_v35 = vcombine.high %v6761_v42, %v6761_v42  ;;  %v1834_v40 = vcombine.high %v6839_v22, %v6826_v20 }
  0xfd   : > { %v7055_v1 = vrot.slane %v1510_v7, %v6215_v49  ;;  %v1616_v23 = vcombine.low %v7052_v17, %v7058_v13  ;;  %v1902_v7 = vcombine.high %v6836_v54, %v6820_v14 }
  0xfe   : > { %v7115_v54 = vrot.slane %v1834_v40, %v6344_v16  ;;  %v2488_v40 = vcombine.high %v6874_v48, %v6864_v24 }
  0xff   : > { %2001 = vrot.lane.b32.xlu1 %v5832_v11, %s5914_s11  ;;  %1966 = vrot.lane.b32.xlu0 %v5828_v45, %s5914_s11  ;;  %v7045_v11 = vpop.permute.xlu1 %490  ;;  %v7047_v45 = vpop.permute.xlu0 %455  ;;  %v1548_v42 = vcombine.low %v7055_v1, %v7061_v53  ;;  %v7096_v52 = vrot.slane %v1616_v23, %v6344_v16  ;;  %v7112_v20 = vrot.slane %v1902_v7, %v6344_v16 }
 0x100   : > { %8989 = vst [vmem:[#allocation17_spill] sm:$0xff] %v7045_v11  ;;  %8990 = vst [vmem:[#allocation5_spill] sm:$0xff] %v7047_v45  ;;  %v7154_v48 = vrot.slane %v2488_v40, %v6344_v16  ;;  %v5794_v40 = vcombine.high %v6915_v57, %v6915_v57  ;;  %v5806_v57 = vcombine.high %v6957_v8, %v6957_v8  ;;  %v9008_v8 = vld [vmem:[#allocation22_spill] sm:$0xff] }
 0x101   : > { %8993 = vst [vmem:[#allocation8_spill] sm:$0xff] %v7096_v52 }
 0x103   : > { %2294 = vrot.lane.b32.xlu1 %v5721_v25, %s5912_s9  ;;  %2259 = vrot.lane.b32.xlu0 %v5714_v33, %s5912_s9  ;;  %v7067_v36 = vpop.permute.xlu1 %1432  ;;  %v7069_v28 = vpop.permute.xlu0 %1397  ;;  %v5789_v25 = vcombine.high %v6767_v61, %v6767_v61  ;;  %v5805_v61 = vcombine.high %v6817_v56, %v6817_v56  ;;  %v5823_v56 = vcombine.high %v7096_v52, %v7096_v52 }
 0x107   : > { %2587 = vrot.lane.b32.xlu1 %v5848_v55, %s5914_s11  ;;  %2552 = vrot.lane.b32.xlu0 %v5844_v35, %s5914_s11  ;;  %v7081_v33 = vpop.permute.xlu1 %495  ;;  %v7083_v47 = vpop.permute.xlu0 %460  ;;  %v7099_v55 = vrot.slane %v1548_v42, %v6344_v16  ;;  %v8997_v42 = vld [vmem:[#allocation15_spill] sm:$0xff] }
 0x108   : > { %8991 = vst [vmem:[#allocation6_spill] sm:$0xff] %v7081_v33  ;;  %8992 = vst [vmem:[#allocation7_spill] sm:$0xff] %v7083_v47 }
 0x109   : > { %8994 = vst [vmem:[#allocation24_spill] sm:$0xff] %v7099_v55  ;;  %v5819_v14 = vcombine.high %v7099_v55, %v7099_v55  ;;  %v5698_v55 = vcombine.low %v7115_v54, %v7115_v54 }
 0x10b   : > { %515 = vrot.lane.b32.xlu1 %v5793_v63, %s5917_s14  ;;  %480 = vrot.lane.b32.xlu0 %v5789_v25, %s5917_s14  ;;  %v8995_v25 = vcombine.low %v6473_v44, %v6485_v0 }
 0x10d   : > { %v7127_v23 = vrot.slane %v8995_v25, %v6344_v16 }
 0x10f   : > { %1097 = vrot.lane.b32.xlu1 %v5809_v62, %s5917_s14  ;;  %v7102_v35 = vpop.permute.xlu1 %793  ;;  %1062 = vrot.lane.b32.xlu0 %v5805_v61, %s5917_s14  ;;  %v7105_v50 = vpop.permute.xlu0 %758  ;;  %8996 = vst [vmem:[#allocation33_spill] sm:$0xff] %v7127_v23  ;;  %v8998_v62 = vld [vmem:[#allocation16_spill] sm:$0xff]  ;;  %v5839_v24 = vcombine.high %v7127_v23, %v7127_v23  ;;  %v5739_v23 = vcombine.low %v7154_v48, %v7154_v48 }
 0x110   : > { %v8999_v61 = vcombine.low %v8997_v42, %v8998_v62 }
 0x112   : > { %v7133_v7 = vrot.slane %v8999_v61, %v6344_v16 }
 0x113   : > { %1711 = vrot.lane.b32.xlu1 %v5823_v56, %s5913_s10  ;;  %v7118_v22 = vpop.permute.xlu1 %803  ;;  %1676 = vrot.lane.b32.xlu0 %v5819_v14, %s5913_s10  ;;  %v7121_v63 = vpop.permute.xlu0 %768  ;;  %v2420_v56 = vcombine.high %v6877_v46, %v6867_v43  ;;  %v5705_v14 = vcombine.low %v7112_v20, %v7112_v20 }
 0x114   : > { %9000 = vst [vmem:[#allocation15_spill] sm:$0xff] %v7133_v7  ;;  %v5835_v43 = vcombine.high %v7133_v7, %v7133_v7 }
 0x115   : > { %v7157_v46 = vrot.slane %v2420_v56, %v6344_v16  ;;  %v5790_v56 = vcombine.high %v6921_v29, %v6921_v29 }
 0x117   : > { %2006 = vrot.lane.b32.xlu1 %v5705_v14, %s5915_s12  ;;  %v7144_v25 = vpop.permute.xlu1 %788  ;;  %1971 = vrot.lane.b32.xlu0 %v5698_v55, %s5915_s12  ;;  %v5732_v7 = vcombine.low %v7157_v46, %v7157_v46 }
 0x118   : > { %v7147_v61 = vpop.permute.xlu0 %753 }
 0x11b   : > { %2299 = vrot.lane.b32.xlu1 %v5839_v24, %s5913_s10  ;;  %2264 = vrot.lane.b32.xlu0 %v5835_v43, %s5913_s10  ;;  %v7161_v14 = vpop.permute.xlu1 %798 }
 0x11c   : > { %v7163_v55 = vpop.permute.xlu0 %763 }
 0x11f   : > { %2592 = vrot.lane.b32.xlu1 %v5739_v23, %s5915_s12  ;;  %2557 = vrot.lane.b32.xlu0 %v5732_v7, %s5915_s12  ;;  %v5810_v23 = vcombine.high %v6951_v59, %v6951_v59  ;;  %v9006_v59 = vld [vmem:[#allocation21_spill] sm:$0xff] }
 0x121   : > { %v7175_v24 = vpop.permute.xlu1 %1072  ;;  %v7177_v43 = vpop.permute.xlu0 %1037 }
 0x122   : > { %9001 = vst [vmem:[#allocation16_spill] sm:$0xff] %v7175_v24  ;;  %9002 = vst [vmem:[#allocation34_spill] sm:$0xff] %v7177_v43 }
 0x123   : > { %520 = vrot.lane.b32.xlu1 %v5794_v40, %s5918_s15  ;;  %485 = vrot.lane.b32.xlu0 %v5790_v56, %s5918_s15  ;;  %v5824_v40 = vcombine.high %v7000_v3, %v7000_v3  ;;  %v5820_v56 = vcombine.high %v7003_v12, %v7003_v12 }
 0x125   : > { %v7181_v52 = vpop.permute.xlu1 %1077  ;;  %v7183_v5 = vpop.permute.xlu0 %1042 }
 0x126   : > { %9003 = vst [vmem:[#allocation35_spill] sm:$0xff] %v7181_v52  ;;  %9004 = vst [vmem:[#allocation36_spill] sm:$0xff] %v7183_v5  ;;  %v9005_v5 = vld [vmem:[#allocation20_spill] sm:$0xff] }
 0x127   : > { %1102 = vrot.lane.b32.xlu1 %v5810_v23, %s5918_s15  ;;  %1067 = vrot.lane.b32.xlu0 %v5806_v57, %s5918_s15  ;;  %v9007_v52 = vcombine.high %v9005_v5, %v9006_v59  ;;  %v9009_v23 = vld [vmem:[#allocation23_spill] sm:$0xff]  ;;  %v1549_v59 = vcombine.high %v7055_v1, %v7061_v53 }
 0x128   : > { %v9010_v57 = vcombine.high %v9008_v8, %v9009_v23 }
 0x129   : > { %v7191_v29 = vpop.permute.xlu1 %1437  ;;  %v7193_v7 = vpop.permute.xlu0 %1402  ;;  %v7203_v43 = vrot.slane %v9007_v52, %v6344_v16  ;;  %v5840_v52 = vcombine.high %v7022_v26, %v7022_v26  ;;  %v9016_v26 = vld [vmem:[#allocation27_spill] sm:$0xff] }
 0x12a   : > { %v7209_v24 = vrot.slane %v9010_v57, %v6344_v16  ;;  %v9013_v57 = vld [vmem:[#allocation25_spill] sm:$0xff] }
 0x12b   : > { %1716 = vrot.lane.b32.xlu1 %v5824_v40, %s5914_s11  ;;  %1681 = vrot.lane.b32.xlu0 %v5820_v56, %s5914_s11  ;;  %v5706_v12 = vcombine.low %v7203_v43, %v7203_v43  ;;  %v5836_v40 = vcombine.high %v7025_v58, %v7025_v58  ;;  %v1617_v56 = vcombine.high %v7052_v17, %v7058_v13 }
 0x12c   : > { %v5699_v5 = vcombine.low %v7209_v24, %v7209_v24 }
 0x12d   : > { %v7213_v3 = vpop.permute.xlu1 %500  ;;  %v7215_v47 = vpop.permute.xlu0 %465 }
 0x12e   : > { %9011 = vst [vmem:[#allocation20_spill] sm:$0xff] %v7213_v3  ;;  %9012 = vst [vmem:[#allocation21_spill] sm:$0xff] %v7215_v47  ;;  %v9017_v3 = vld [vmem:[#allocation28_spill] sm:$0xff] }
 0x12f   : > { %2011 = vrot.lane.b32.xlu1 %v5706_v12, %s5916_s13  ;;  %1976 = vrot.lane.b32.xlu0 %v5699_v5, %s5916_s13  ;;  %v9014_v12 = vld [vmem:[#allocation26_spill] sm:$0xff]  ;;  %v9018_v58 = vcombine.high %v9016_v26, %v9017_v3  ;;  %v7261_v3 = vrot.slane %v1549_v59, %v6344_v16  ;;  %v9023_v26 = vcombine.high %v8997_v42, %v8998_v62 }
 0x130   : > { %v9015_v5 = vcombine.high %v9013_v57, %v9014_v12  ;;  %v7258_v57 = vrot.slane %v1617_v56, %v6344_v16  ;;  %v9022_v56 = vcombine.high %v6473_v44, %v6485_v0 }
 0x131   : > { %v7231_v8 = vpop.permute.xlu1 %808  ;;  %v7233_v23 = vpop.permute.xlu0 %773  ;;  %v7245_v33 = vrot.slane %v9018_v58, %v6344_v16  ;;  %v7285_v58 = vrot.slane %v9023_v26, %v6344_v16  ;;  %v5845_v26 = vcombine.high %v7157_v46, %v7157_v46 }
 0x132   : > { %v7239_v47 = vrot.slane %v9015_v5, %v6344_v16  ;;  %v5690_v12 = vcombine.low %v7258_v57, %v7258_v57  ;;  %v5683_v5 = vcombine.low %v7261_v3, %v7261_v3  ;;  %v7279_v59 = vrot.slane %v9022_v56, %v6344_v16 }
 0x133   : > { %2304 = vrot.lane.b32.xlu1 %v5840_v52, %s5914_s11  ;;  %2269 = vrot.lane.b32.xlu0 %v5836_v40, %s5914_s11  ;;  %v5733_v53 = vcombine.low %v7245_v33, %v7245_v33  ;;  %v5717_v0 = vcombine.low %v7285_v58, %v7285_v58  ;;  %v2678_v56 = vshrl.u32 %v6895_v34, 16 }
 0x134   : > { %v5740_v13 = vcombine.low %v7239_v47, %v7239_v47  ;;  %v5724_v44 = vcombine.low %v7279_v59, %v7279_v59 }
 0x135   : > { %v7249_v17 = vpop.permute.xlu1 %1082  ;;  %v7251_v1 = vpop.permute.xlu0 %1047 }
 0x136   : > { %9019 = vst [vmem:[#allocation22_spill] sm:$0xff] %v7249_v17  ;;  %9020 = vst [vmem:[#allocation23_spill] sm:$0xff] %v7251_v1  ;;  %v9031_v1 = vcombine.high %v6833_v18, %v6851_v9 }
 0x137   : > { %2597 = vrot.lane.b32.xlu1 %v5740_v13, %s5916_s13  ;;  %2562 = vrot.lane.b32.xlu0 %v5733_v53, %s5916_s13 }
 0x138   : > { %v7333_v17 = vrot.slane %v9031_v1, %v6344_v16 }
 0x139   : > { %v7265_v52 = vpop.permute.xlu1 %1442  ;;  %v7267_v40 = vpop.permute.xlu0 %1407 }
 0x13a   : > { %9021 = vst [vmem:[#allocation25_spill] sm:$0xff] %v7267_v40  ;;  %v5684_v9 = vcombine.low %v7333_v17, %v7333_v17 }
 0x13b   : > { %1721 = vrot.lane.b32.xlu1 %v5690_v12, %s5915_s12  ;;  %1686 = vrot.lane.b32.xlu0 %v5683_v5, %s5915_s12  ;;  %v5833_v12 = vcombine.high %v7112_v20, %v7112_v20  ;;  %v5829_v5 = vcombine.high %v7115_v54, %v7115_v54  ;;  %v2666_v20 = vshrl.u32 %v6897_v19, 16  ;;  %v5849_v54 = vcombine.high %v7154_v48, %v7154_v48 }
 0x13c   : > { %v9030_v48 = vcombine.high %v6823_v32, %v6842_v60 }
 0x13d   : > { %v7287_v13 = vpop.permute.xlu1 %1991  ;;  %v7289_v53 = vpop.permute.xlu0 %1956 }
 0x13e   : > { %9024 = vst [vmem:[#allocation26_spill] sm:$0xff] %v7287_v13  ;;  %9025 = vst [vmem:[#allocation27_spill] sm:$0xff] %v7289_v53  ;;  %v2685_v53 = vshrl.u32 %v6965_v39, 16  ;;  %v7327_v46 = vrot.slane %v9030_v48, %v6344_v16 }
 0x13f   : > { %2016 = vrot.lane.b32.xlu1 %v5833_v12, %s5917_s14  ;;  %1981 = vrot.lane.b32.xlu0 %v5829_v5, %s5917_s14  ;;  %v2679_v12 = vshrl.u32 %v6923_v27, 16  ;;  %v2667_v5 = vshrl.u32 %v6925_v37, 16 }
 0x140   : > { %v5691_v18 = vcombine.low %v7327_v46, %v7327_v46 }
 0x141   : > { %v7301_v42 = vpop.permute.xlu1 %2577  ;;  %v7303_v62 = vpop.permute.xlu0 %2542  ;;  %v2680_v45 = vpack.i.b16 %v2679_v12, %v2678_v56  ;;  %v2668_v32 = vpack.i.b16 %v2667_v5, %v2666_v20  ;;  %v2677_v12 = vpack.i.b16 %v6923_v27, %v6895_v34  ;;  %v2665_v5 = vpack.i.b16 %v6925_v37, %v6897_v19 }
 0x142   : > { %9026 = vst [vmem:[#allocation28_spill] sm:$0xff] %v7301_v42  ;;  %9027 = vst [vmem:[#allocation37_spill] sm:$0xff] %v7303_v62  ;;  %v2684_v62 = vshrl.u32 %v6937_v21, 16  ;;  %v2672_v42 = vshrl.u32 %v6939_v41, 16 }
 0x143   : > { %2309 = vrot.lane.b32.xlu1 %v5724_v44, %s5915_s12  ;;  %2274 = vrot.lane.b32.xlu0 %v5717_v0, %s5915_s12  ;;  %v2673_v44 = vshrl.u32 %v6967_v4, 16  ;;  %v7362_v1 = vrot.slane %v2680_v45, %v6215_v49  ;;  %v7418_v27 = vrot.slane %v2677_v12, %v6215_v49  ;;  %v7421_v37 = vrot.slane %v2665_v5, %v6215_v49 }
 0x144   : > { %v2686_v60 = vpack.i.b16 %v2685_v53, %v2684_v62  ;;  %v7365_v53 = vrot.slane %v2668_v32, %v6215_v49  ;;  %v2683_v32 = vpack.i.b16 %v6965_v39, %v6937_v21  ;;  %v9032_v21 = vld [vmem:[#allocation13_spill] sm:$0xff]  ;;  %v9033_v39 = vld [vmem:[#allocation14_spill] sm:$0xff]  ;;  %v5825_v5 = vcombine.high %v7258_v57, %v7258_v57 }
 0x145   : > { %v7319_v13 = vpop.permute.xlu1 %505  ;;  %v7321_v0 = vpop.permute.xlu0 %470  ;;  %v2674_v48 = vpack.i.b16 %v2673_v44, %v2672_v42  ;;  %v5850_v44 = vcombine.high %v7239_v47, %v7239_v47  ;;  %v5837_v57 = vcombine.high %v7285_v58, %v7285_v58 }
 0x146   : > { %9028 = vst [vmem:[#allocation38_spill] sm:$0xff] %v7319_v13  ;;  %9029 = vst [vmem:[#allocation39_spill] sm:$0xff] %v7321_v0  ;;  %v2239_v13 = vcombine.high %v6975_v6, %v6987_v38  ;;  %v2171_v0 = vcombine.high %v6979_v30, %v6983_v31  ;;  %v5834_v31 = vcombine.high %v7203_v43, %v7203_v43 }
 0x147   : > { %2602 = vrot.lane.b32.xlu1 %v5849_v54, %s5917_s14  ;;  %2567 = vrot.lane.b32.xlu0 %v5845_v26, %s5917_s14  ;;  %v5830_v38 = vcombine.high %v7209_v24, %v7209_v24  ;;  %v7368_v42 = vrot.slane %v2686_v60, %v6215_v49  ;;  %v2671_v60 = vpack.i.b16 %v6967_v4, %v6939_v41 }
 0x148   : > { %v7352_v6 = vrot.slane %v2239_v13, %v6344_v16  ;;  %v7355_v30 = vrot.slane %v2171_v0, %v6344_v16  ;;  %v7371_v13 = vrot.slane %v2674_v48, %v6215_v49  ;;  %v5846_v0 = vcombine.high %v7245_v33, %v7245_v33 }
 0x149   : > { %v7341_v11 = vpop.permute.xlu1 %813  ;;  %v7343_v40 = vpop.permute.xlu0 %778  ;;  %v2805_v43 = vcombine.low %v7362_v1, %v7368_v42  ;;  %v837_v41 = vsel %vm522_vm6, %v9032_v21, %v7144_v25  ;;  %v822_v4 = vsel %vm522_vm6, %v9033_v39, %v7147_v61  ;;  %v7430_v33 = vrot.slane %v2683_v32, %v6215_v49 }
 0x14a   : > { %v5725_v45 = vcombine.low %v7352_v6, %v7352_v6  ;;  %v5718_v24 = vcombine.low %v7355_v30, %v7355_v30  ;;  %v2737_v20 = vcombine.low %v7365_v53, %v7371_v13  ;;  %v7433_v47 = vrot.slane %v2671_v60, %v6215_v49 }
 0x14b   : > { %1726 = vrot.lane.b32.xlu1 %v5691_v18, %s5916_s13  ;;  %1691 = vrot.lane.b32.xlu0 %v5684_v9, %s5916_s13  ;;  %v7410_v34 = vrot.slane %v2805_v43, %v6344_v16  ;;  %v839_v61 = vsel %vm526_vm7, %v837_v41, %v7102_v35 }
 0x14c   : > { %v7413_v19 = vrot.slane %v2737_v20, %v6344_v16  ;;  %v2771_v20 = vcombine.low %v7418_v27, %v7430_v33  ;;  %v2703_v35 = vcombine.low %v7421_v37, %v7433_v47 }
 0x14d   : > { %v7373_v62 = vpop.permute.xlu1 %1087  ;;  %v7375_v56 = vpop.permute.xlu0 %1052 }
 0x14e   : > { %v5744_v25 = vcombine.low %v7413_v19, %v7413_v19 }
 0x14f   : > { %2021 = vrot.lane.b32.xlu1 %v5834_v31, %s5918_s15  ;;  %1986 = vrot.lane.b32.xlu0 %v5830_v38, %s5918_s15  ;;  %v5751_v38 = vcombine.low %v7410_v34, %v7410_v34 }
 0x151   : > { %v7387_v54 = vpop.permute.xlu1 %1447  ;;  %v7389_v26 = vpop.permute.xlu0 %1412 }
 0x153   : > { %2314 = vrot.lane.b32.xlu1 %v5725_v45, %s5916_s13  ;;  %2279 = vrot.lane.b32.xlu0 %v5718_v24, %s5916_s13  ;;  %v824_v45 = vsel %vm526_vm7, %v822_v4, %v7105_v50  ;;  %v841_v24 = vsel %vm529_vm8, %v839_v61, %v7161_v14  ;;  %v5821_v14 = vcombine.high %v7261_v3, %v7261_v3  ;;  %v9034_v3 = vld [vmem:[#allocation9_spill] sm:$0xff] }
 0x154   : > { %v826_v43 = vsel %vm529_vm8, %v824_v45, %v7163_v55  ;;  %v5841_v55 = vcombine.high %v7279_v59, %v7279_v59  ;;  %v1471_v32 = vsel %vm522_vm6, %v9034_v3, %v6995_v15  ;;  %v9035_v59 = vld [vmem:[#allocation10_spill] sm:$0xff]  ;;  %v7490_v15 = vrot.slane %v2771_v20, %v6344_v16 }
 0x155   : > { %v7405_v48 = vpop.permute.xlu1 %1996  ;;  %v7407_v18 = vpop.permute.xlu0 %1961  ;;  %v1456_v60 = vsel %vm522_vm6, %v9035_v59, %v6997_v51  ;;  %v7493_v4 = vrot.slane %v2703_v35, %v6344_v16 }
 0x156   : > { %v5855_v45 = vcombine.high %v7490_v15, %v7490_v15 }
 0x157   : > { %2607 = vrot.lane.b32.xlu1 %v5850_v44, %s5918_s15  ;;  %2572 = vrot.lane.b32.xlu0 %v5846_v0, %s5918_s15  ;;  %v843_v44 = vsel %vm532_vm9, %v841_v24, %v7118_v22  ;;  %v828_v0 = vsel %vm532_vm9, %v826_v43, %v7121_v63  ;;  %v5851_v24 = vcombine.high %v7493_v4, %v7493_v4 }
 0x158   : > { %v845_v22 = vsel %vm535_vm10, %v843_v44, %v7231_v8  ;;  %v830_v63 = vsel %vm535_vm10, %v828_v0, %v7233_v23  ;;  %v1473_v23 = vsel %vm526_vm7, %v1471_v32, %v7015_v10  ;;  %v5822_v44 = vcombine.high %v7333_v17, %v7333_v17 }
 0x159   : > { %v7435_v9 = vpop.permute.xlu1 %2582  ;;  %v7437_v31 = vpop.permute.xlu0 %2547  ;;  %v847_v21 = vsel %vm538_vm11, %v845_v22, %v7341_v11  ;;  %v832_v58 = vsel %vm538_vm11, %v830_v63, %v7343_v40  ;;  %v1458_v11 = vsel %vm526_vm7, %v1456_v60, %v7017_v2  ;;  %v1475_v10 = vsel %vm529_vm8, %v1473_v23, %v7067_v36 }
 0x15a   : > { %v1460_v2 = vsel %vm529_vm8, %v1458_v11, %v7069_v28  ;;  %v1477_v43 = vsel %vm532_vm9, %v1475_v10, %v7191_v29  ;;  %v2704_v17 = vcombine.high %v7421_v37, %v7433_v47  ;;  %v5856_v37 = vcombine.high %v7410_v34, %v7410_v34 }
 0x15b   : > { %2861 = vrot.lane.b32.xlu1 %v5751_v38, %s5912_s9  ;;  %2826 = vrot.lane.b32.xlu0 %v5744_v25, %s5912_s9  ;;  %v1462_v20 = vsel %vm532_vm9, %v1460_v2, %v7193_v7  ;;  %v1479_v35 = vsel %vm535_vm10, %v1477_v43, %v7265_v52  ;;  %v5826_v7 = vcombine.high %v7327_v46, %v7327_v46  ;;  %v8930_v2 = vmov 0   ;;  %v3013_v43 = vld [vmem:[%s8894_s2] sm:$0xf] }
 0x15c   : > { %v1481_v28 = vsel %vm538_vm11, %v1479_v35, %v7387_v54  ;;  %v5842_v54 = vcombine.high %v7352_v6, %v7352_v6  ;;  %v2772_v46 = vcombine.high %v7418_v27, %v7430_v33  ;;  %v2806_v6 = vcombine.high %v7362_v1, %v7368_v42  ;;  %3004 = vmatprep.mubr.bf16.mxu0 %v8930_v2 }
 0x15d   : > { %v7457_v12 = vpop.permute.xlu1 %510  ;;  %v7459_v50 = vpop.permute.xlu0 %475  ;;  %v5852_v47 = vcombine.high %v7413_v19, %v7413_v19  ;;  %v2718_v22 = vrot.slane %v2704_v17, %v6344_v16  ;;  %5882 = vset.pattern.permute.xlu0 %v8930_v2  ;;  %5883 = vset.pattern.permute.xlu1 %v8930_v2 }
 0x15e   : > { %v2786_v60 = vrot.slane %v2772_v46, %v6344_v16  ;;  %v2820_v63 = vrot.slane %v2806_v6, %v6344_v16  ;;  %5521 = vmatprep.mubr.bf16.mxu1 %v8930_v2 }
 0x15f   : > { %1731 = vrot.lane.b32.xlu1 %v5825_v5, %s5917_s14  ;;  %1696 = vrot.lane.b32.xlu0 %v5821_v14, %s5917_s14  ;;  %v9036_v5 = vld [vmem:[#allocation25_spill] sm:$0xff]  ;;  %v5853_v23 = vcombine.high %v2718_v22, %v2718_v22 }
 0x160   : > { %v1464_v36 = vsel %vm535_vm10, %v1462_v20, %v9036_v5  ;;  %v5754_v42 = vcombine.low %v2786_v60, %v2786_v60  ;;  %v3021_v20 = vld [vmem:[%s8895_s3] sm:$0xf] }
 0x161   : > { %v819_v41 = vpop.permute.xlu1 %818  ;;  %v784_v39 = vpop.permute.xlu0 %783  ;;  %v1466_v29 = vsel %vm538_vm11, %v1464_v36, %v7389_v26  ;;  %v5838_v26 = vcombine.high %v7355_v30, %v7355_v30  ;;  %v2738_v30 = vcombine.high %v7365_v53, %v7371_v13  ;;  %v5747_v13 = vcombine.low %v2718_v22, %v2718_v22  ;;  %v9046_v22 = vld [vmem:[#allocation39_spill] sm:$0xff] }
 0x162   : > { %v849_v51 = vsel %vm541_vm12, %v847_v21, %v819_v41  ;;  %v834_v8 = vsel %vm541_vm12, %v832_v58, %v784_v39  ;;  %v5755_v58 = vcombine.low %v2820_v63, %v2820_v63 }
 0x163   : > { %v5649_v38 = vcombine.low %v834_v8, %v849_v51  ;;  %2319 = vrot.lane.b32.xlu1 %v5841_v55, %s5917_s14  ;;  %2284 = vrot.lane.b32.xlu0 %v5837_v57, %s5917_s14  ;;  %v2752_v34 = vrot.slane %v2738_v30, %v6344_v16  ;;  %v5857_v8 = vcombine.high %v2786_v60, %v2786_v60  ;;  %v9044_v30 = vld [vmem:[#allocation21_spill] sm:$0xff] }
 0x165   : > { %v855_v40 = vrot.slane %v5649_v38, 6  ;;  %v7503_v25 = vpop.permute.xlu1 %1092  ;;  %v7505_v61 = vpop.permute.xlu0 %1057  ;;  %v5748_v41 = vcombine.low %v2752_v34, %v2752_v34 }
 0x167   : > { %857 = vst [vmem:[#allocation2] sm:$0xcc] %v855_v40  ;;  %2866 = vrot.lane.b32.xlu1 %v5855_v45, %s5913_s10  ;;  %2831 = vrot.lane.b32.xlu0 %v5851_v24, %s5913_s10  ;;  %v5858_v40 = vcombine.high %v2820_v63, %v2820_v63  ;;  %v5854_v45 = vcombine.high %v2752_v34, %v2752_v34  ;;  %v9048_v63 = vld [vmem:[#allocation18_spill] sm:$0xff] }
 0x169   : > { %v1453_v14 = vpop.permute.xlu1 %1452  ;;  %v1418_v55 = vpop.permute.xlu0 %1417 }
 0x16a   : > { %v1483_v0 = vsel %vm541_vm12, %v1481_v28, %v1453_v14  ;;  %v1468_v52 = vsel %vm541_vm12, %v1466_v29, %v1418_v55  ;;  %v9037_v29 = vld [vmem:[#allocation17_spill] sm:$0xff]  ;;  %v9038_v14 = vld [vmem:[#allocation11_spill] sm:$0xff] }
 0x16b   : > { %v5679_v57 = vcombine.low %v1468_v52, %v1483_v0  ;;  %1736 = vrot.lane.b32.xlu1 %v5826_v7, %s5918_s15  ;;  %1701 = vrot.lane.b32.xlu0 %v5822_v44, %s5918_s15  ;;  %v546_v55 = vsel %vm522_vm6, %v9038_v14, %v9037_v29  ;;  %v9039_v7 = vld [vmem:[#allocation5_spill] sm:$0xff]  ;;  %v9040_v44 = vld [vmem:[#allocation12_spill] sm:$0xff]  ;;  %v9041_v52 = vld [vmem:[#allocation6_spill] sm:$0xff] }
 0x16c   : > { %v525_v0 = vsel %vm522_vm6, %v9040_v44, %v9039_v7 }
 0x16d   : > { %v1489_v3 = vrot.slane %v5679_v57, 6  ;;  %v7545_v32 = vpop.permute.xlu1 %1706  ;;  %v7547_v59 = vpop.permute.xlu0 %1671  ;;  %v548_v57 = vsel %vm526_vm7, %v546_v55, %v9041_v52 }
 0x16f   : > { %1491 = vst [vmem:[#allocation2 + $0x8] sm:$0xcc] %v1489_v3  ;;  %2324 = vrot.lane.b32.xlu1 %v5842_v54, %s5918_s15  ;;  %2289 = vrot.lane.b32.xlu0 %v5838_v26, %s5918_s15  ;;  %v9042_v54 = vld [vmem:[#allocation7_spill] sm:$0xff]  ;;  %v9043_v3 = vld [vmem:[#allocation20_spill] sm:$0xff] }
 0x170   : > { %v528_v26 = vsel %vm526_vm7, %v525_v0, %v9042_v54  ;;  %v550_v6 = vsel %vm529_vm8, %v548_v57, %v9043_v3  ;;  %v9053_v0 = vld [vmem:[#allocation22_spill] sm:$0xff]  ;;  %v9054_v57 = vld [vmem:[#allocation23_spill] sm:$0xff] }
 0x171   : > { %v7555_v27 = vpop.permute.xlu1 %2001  ;;  %v7557_v33 = vpop.permute.xlu0 %1966 }
 0x173   : > { %2871 = vrot.lane.b32.xlu1 %v5856_v37, %s5914_s11  ;;  %2836 = vrot.lane.b32.xlu0 %v5852_v47, %s5914_s11  ;;  %v531_v37 = vsel %vm529_vm8, %v528_v26, %v9044_v30  ;;  %v9045_v47 = vld [vmem:[#allocation38_spill] sm:$0xff] }
 0x174   : > { %v552_v60 = vsel %vm532_vm9, %v550_v6, %v9045_v47 }
 0x175   : > { %v7567_v1 = vpop.permute.xlu1 %2294  ;;  %v7569_v53 = vpop.permute.xlu0 %2259 }
 0x177   : > { %2876 = vrot.lane.b32.xlu1 %v5754_v42, %s5915_s12  ;;  %2841 = vrot.lane.b32.xlu0 %v5747_v13, %s5915_s12  ;;  %v534_v42 = vsel %vm532_vm9, %v531_v37, %v9046_v22  ;;  %v9047_v13 = vld [vmem:[#allocation16_spill] sm:$0xff] }
 0x178   : > { %v1121_v34 = vsel %vm522_vm6, %v9048_v63, %v9047_v13 }
 0x179   : > { %v7575_v19 = vpop.permute.xlu1 %2587  ;;  %v7577_v21 = vpop.permute.xlu0 %2552 }
 0x17b   : > { %2881 = vrot.lane.b32.xlu1 %v5755_v58, %s5916_s13  ;;  %2846 = vrot.lane.b32.xlu0 %v5748_v41, %s5916_s13  ;;  %v9049_v58 = vld [vmem:[#allocation34_spill] sm:$0xff]  ;;  %v9050_v41 = vld [vmem:[#allocation19_spill] sm:$0xff] }
 0x17d   : > { %v516_v39 = vpop.permute.xlu1 %515  ;;  %v481_v51 = vpop.permute.xlu0 %480 }
 0x17f   : > { %2886 = vrot.lane.b32.xlu1 %v5857_v8, %s5917_s14  ;;  %2851 = vrot.lane.b32.xlu0 %v5853_v23, %s5917_s14  ;;  %v1106_v8 = vsel %vm522_vm6, %v9050_v41, %v9049_v58  ;;  %v554_v23 = vsel %vm535_vm10, %v552_v60, %v7457_v12 }
 0x180   : > { %v556_v14 = vsel %vm538_vm11, %v554_v23, %v516_v39 }
 0x181   : > { %v1098_v11 = vpop.permute.xlu1 %1097  ;;  %v1063_v38 = vpop.permute.xlu0 %1062 }
 0x183   : > { %2891 = vrot.lane.b32.xlu1 %v5858_v40, %s5918_s15  ;;  %2856 = vrot.lane.b32.xlu0 %v5854_v45, %s5918_s15  ;;  %v537_v40 = vsel %vm535_vm10, %v534_v42, %v7459_v50  ;;  %v9051_v45 = vld [vmem:[#allocation35_spill] sm:$0xff] }
 0x184   : > { %v540_v55 = vsel %vm538_vm11, %v537_v40, %v481_v51 }
 0x185   : > { %v7585_v24 = vpop.permute.xlu1 %1711  ;;  %v7587_v10 = vpop.permute.xlu0 %1676 }
 0x187   : > { %3016 = vperm.xlu0 %5882, %v3013_v43   ;;  %3024 = vperm.xlu1 %5883, %v3021_v20   ;;  %v1123_v43 = vsel %vm526_vm7, %v1121_v34, %v9051_v45  ;;  %v9052_v20 = vld [vmem:[#allocation36_spill] sm:$0xff] }
 0x188   : > { %v1108_v29 = vsel %vm526_vm7, %v1106_v8, %v9052_v20  ;;  %v1125_v52 = vsel %vm529_vm8, %v1123_v43, %v9053_v0  ;;  %v9057_v0 = vld [vmem:[#allocation27_spill] sm:$0xff] }
 0x189   : > { %v7599_v35 = vpop.permute.xlu1 %2006  ;;  %v7601_v5 = vpop.permute.xlu0 %1971  ;;  %v1110_v12 = vsel %vm529_vm8, %v1108_v29, %v9054_v57  ;;  %v1127_v26 = vsel %vm532_vm9, %v1125_v52, %v7373_v62  ;;  %v9058_v52 = vld [vmem:[#allocation30_spill] sm:$0xff] }
 0x18a   : > { %v1112_v39 = vsel %vm532_vm9, %v1110_v12, %v7375_v56  ;;  %v1129_v51 = vsel %vm535_vm10, %v1127_v26, %v7503_v25  ;;  %v2025_v57 = vsel %vm522_vm6, %v9058_v52, %v9057_v0 }
 0x18b   : > { %v1114_v6 = vsel %vm535_vm10, %v1112_v39, %v7505_v61  ;;  %v1131_v30 = vsel %vm538_vm11, %v1129_v51, %v1098_v11 }
 0x18c   : > { %v1116_v37 = vsel %vm538_vm11, %v1114_v6, %v1063_v38 }
 0x18d   : > { %v7603_v36 = vpop.permute.xlu1 %2299  ;;  %v7605_v28 = vpop.permute.xlu0 %2264 }
 0x191   : > { %v7617_v46 = vpop.permute.xlu1 %2592  ;;  %v7619_v17 = vpop.permute.xlu0 %2557 }
 0x195   : > { %v521_v7 = vpop.permute.xlu1 %520  ;;  %v486_v44 = vpop.permute.xlu0 %485 }
 0x196   : > { %v558_v50 = vsel %vm541_vm12, %v556_v14, %v521_v7  ;;  %v543_v54 = vsel %vm541_vm12, %v540_v55, %v486_v44  ;;  %v9055_v55 = vld [vmem:[#allocation26_spill] sm:$0xff]  ;;  %v9056_v7 = vld [vmem:[#allocation29_spill] sm:$0xff] }
 0x197   : > { %v5634_v3 = vcombine.low %v543_v54, %v558_v50  ;;  %v2040_v44 = vsel %vm522_vm6, %v9056_v7, %v9055_v55  ;;  %v2027_v50 = vsel %vm526_vm7, %v2025_v57, %v7407_v18 }
 0x198   : > { %v2042_v12 = vsel %vm526_vm7, %v2040_v44, %v7405_v48 }
 0x199   : > { %565 = vst [vmem:[#allocation2] sm:$0x33] %v5634_v3  ;;  %v1103_v47 = vpop.permute.xlu1 %1102  ;;  %v1068_v60 = vpop.permute.xlu0 %1067  ;;  %v2044_v39 = vsel %vm529_vm8, %v2042_v12, %v7555_v27  ;;  %v2029_v3 = vsel %vm529_vm8, %v2027_v50, %v7557_v33 }
 0x19a   : > { %v1133_v22 = vsel %vm541_vm12, %v1131_v30, %v1103_v47  ;;  %v1118_v62 = vsel %vm541_vm12, %v1116_v37, %v1068_v60  ;;  %v2046_v51 = vsel %vm532_vm9, %v2044_v39, %v7599_v35  ;;  %v2031_v6 = vsel %vm532_vm9, %v2029_v3, %v7601_v5  ;;  %v9060_v35 = vld [vmem:[#allocation31_spill] sm:$0xff]  ;;  %v9061_v5 = vld [vmem:[#allocation37_spill] sm:$0xff] }
 0x19b   : > { %v5664_v42 = vcombine.low %v1118_v62, %v1133_v22  ;;  %v9059_v62 = vld [vmem:[#allocation28_spill] sm:$0xff] }
 0x19d   : > { %1140 = vst [vmem:[#allocation2 + $0x8] sm:$0x33] %v5664_v42  ;;  %v7663_v56 = vpop.permute.xlu1 %1716  ;;  %v7665_v13 = vpop.permute.xlu0 %1681  ;;  %v2626_v42 = vsel %vm522_vm6, %v9060_v35, %v9059_v62  ;;  %v9065_v62 = vld [vmem:[#allocation33_spill] sm:$0xff] }
 0x1a1   : > { %v2012_v25 = vpop.permute.xlu1 %2011  ;;  %v1977_v63 = vpop.permute.xlu0 %1976 }
 0x1a2   : > { %v2048_v30 = vsel %vm535_vm10, %v2046_v51, %v2012_v25  ;;  %v2033_v48 = vsel %vm535_vm10, %v2031_v6, %v1977_v63  ;;  %v2628_v63 = vsel %vm526_vm7, %v2626_v42, %v7435_v9 }
 0x1a3   : > { %v2630_v7 = vsel %vm529_vm8, %v2628_v63, %v7575_v19 }
 0x1a4   : > { %v5884_v61 = vld [vmem:[#allocation2 + $0x4] ss:$8 sps:$4 sm:$0xff]   ;;  %v5886_v34 = vld [vmem:[#allocation2] ss:$8 sps:$4 sm:$0xff]   ;;  %v2632_v0 = vsel %vm532_vm9, %v2630_v7, %v7617_v46 }
 0x1a5   : > { %v7667_v11 = vpop.permute.xlu1 %2304  ;;  %v7669_v38 = vpop.permute.xlu0 %2269  ;;  %2972 = vmatprep.subr.bf16.mxu0 %v5884_v61  ;;  %v9062_v61 = vld [vmem:[#allocation32_spill] sm:$0xff] }
 0x1a6   : > { %2973 = vmatpush1.bf16.msra.mxu0 %v5886_v34  ;;  %v2611_v25 = vsel %vm522_vm6, %v9062_v61, %v9061_v5 }
 0x1a7   : > { %v2613_v34 = vsel %vm526_vm7, %v2611_v25, %v7437_v31 }
 0x1a8   : > { %v2615_v44 = vsel %vm529_vm8, %v2613_v34, %v7577_v21 }
 0x1a9   : > { %v2598_v58 = vpop.permute.xlu1 %2597  ;;  %v2563_v41 = vpop.permute.xlu0 %2562  ;;  %v2617_v52 = vsel %vm532_vm9, %v2615_v44, %v7619_v17 }
 0x1aa   : > { %v2634_v9 = vsel %vm535_vm10, %v2632_v0, %v2598_v58  ;;  %v2619_v31 = vsel %vm535_vm10, %v2617_v52, %v2563_v41  ;;  %v9063_v41 = vld [vmem:[#allocation8_spill] sm:$0xff] }
 0x1ad   : > { %v7671_v8 = vpop.permute.xlu1 %1721  ;;  %v7673_v23 = vpop.permute.xlu0 %1686 }
 0x1b1   : > { %v2017_v40 = vpop.permute.xlu1 %2016  ;;  %v1982_v45 = vpop.permute.xlu0 %1981 }
 0x1b2   : > { %v2050_v18 = vsel %vm538_vm11, %v2048_v30, %v2017_v40  ;;  %v2035_v37 = vsel %vm538_vm11, %v2033_v48, %v1982_v45 }
 0x1b5   : > { %v7675_v43 = vpop.permute.xlu1 %2309  ;;  %v7677_v20 = vpop.permute.xlu0 %2274 }
 0x1b9   : > { %v2603_v29 = vpop.permute.xlu1 %2602  ;;  %v2568_v14 = vpop.permute.xlu0 %2567 }
 0x1ba   : > { %v2636_v57 = vsel %vm538_vm11, %v2634_v9, %v2603_v29  ;;  %v2621_v12 = vsel %vm538_vm11, %v2619_v31, %v2568_v14  ;;  %v1756_v29 = vsel %vm522_vm6, %v9063_v41, %v7545_v32  ;;  %v9064_v14 = vld [vmem:[#allocation24_spill] sm:$0xff] }
 0x1bd   : > { %v1727_v54 = vpop.permute.xlu1 %1726  ;;  %v1692_v26 = vpop.permute.xlu0 %1691 }
 0x1c1   : > { %v2022_v47 = vpop.permute.xlu1 %2021  ;;  %v1987_v60 = vpop.permute.xlu0 %1986 }
 0x1c2   : > { %v2052_v27 = vsel %vm541_vm12, %v2050_v18, %v2022_v47  ;;  %v2037_v33 = vsel %vm541_vm12, %v2035_v37, %v1987_v60  ;;  %v1740_v18 = vsel %vm522_vm6, %v9064_v14, %v7547_v59  ;;  %v1758_v37 = vsel %vm526_vm7, %v1756_v29, %v7585_v24 }
 0x1c3   : > { %v5709_v22 = vcombine.low %v2037_v33, %v2052_v27  ;;  %v1742_v47 = vsel %vm526_vm7, %v1740_v18, %v7587_v10  ;;  %v1760_v33 = vsel %vm529_vm8, %v1758_v37, %v7663_v56  ;;  %v2343_v24 = vsel %vm522_vm6, %v9065_v62, %v7567_v1  ;;  %v9066_v10 = vld [vmem:[#allocation15_spill] sm:$0xff] }
 0x1c4   : > { %v1762_v32 = vsel %vm532_vm9, %v1760_v33, %v7671_v8  ;;  %v2328_v35 = vsel %vm522_vm6, %v9066_v10, %v7569_v53 }
 0x1c5   : > { %v2058_v40 = vrot.slane %v5709_v22, 6  ;;  %v2315_v45 = vpop.permute.xlu1 %2314  ;;  %v2280_v55 = vpop.permute.xlu0 %2279  ;;  %v1744_v22 = vsel %vm529_vm8, %v1742_v47, %v7665_v13  ;;  %v1764_v42 = vsel %vm535_vm10, %v1762_v32, %v1727_v54  ;;  %v2345_v13 = vsel %vm526_vm7, %v2343_v24, %v7603_v36  ;;  %v2930_v32 = vld [vmem:[%s8893_s1] sm:$0x3] }
 0x1c6   : > { %v1746_v59 = vsel %vm532_vm9, %v1744_v22, %v7673_v23  ;;  %v2330_v8 = vsel %vm526_vm7, %v2328_v35, %v7605_v28  ;;  %v2347_v25 = vsel %vm529_vm8, %v2345_v13, %v7667_v11 }
 0x1c7   : > { %2060 = vst [vmem:[#allocation2 + $0x10] sm:$0xcc] %v2058_v40  ;;  %v1748_v56 = vsel %vm535_vm10, %v1746_v59, %v1692_v26  ;;  %v2332_v53 = vsel %vm529_vm8, %v2330_v8, %v7669_v38  ;;  %v2349_v28 = vsel %vm532_vm9, %v2347_v25, %v7675_v43 }
 0x1c8   : > { %v2334_v26 = vsel %vm532_vm9, %v2332_v53, %v7677_v20  ;;  %v2351_v11 = vsel %vm535_vm10, %v2349_v28, %v2315_v45 }
 0x1c9   : > { %v2608_v50 = vpop.permute.xlu1 %2607  ;;  %v2573_v19 = vpop.permute.xlu0 %2572  ;;  %v2336_v34 = vsel %vm535_vm10, %v2334_v26, %v2280_v55 }
 0x1ca   : > { %v2638_v39 = vsel %vm541_vm12, %v2636_v57, %v2608_v50  ;;  %v2623_v21 = vsel %vm541_vm12, %v2621_v12, %v2573_v19 }
 0x1cb   : > { %v5743_v3 = vcombine.low %v2623_v21, %v2638_v39 }
 0x1cd   : > { %v2644_v46 = vrot.slane %v5743_v3, 6  ;;  %v2862_v51 = vpop.permute.xlu1 %2861  ;;  %v2827_v6 = vpop.permute.xlu0 %2826 }
 0x1ce   : > { %v2910_v19 = vsel %vm522_vm6, %v7490_v15, %v2862_v51  ;;  %v2895_v39 = vsel %vm522_vm6, %v7493_v4, %v2827_v6 }
 0x1cf   : > { %2646 = vst [vmem:[#allocation2 + $0x18] sm:$0xcc] %v2644_v46 }
 0x1d1   : > { %v1732_v17 = vpop.permute.xlu1 %1731  ;;  %v1697_v30 = vpop.permute.xlu0 %1696 }
 0x1d2   : > { %v1766_v23 = vsel %vm538_vm11, %v1764_v42, %v1732_v17  ;;  %v1750_v5 = vsel %vm538_vm11, %v1748_v56, %v1697_v30 }
 0x1d5   : > { %v2320_v58 = vpop.permute.xlu1 %2319  ;;  %v2285_v48 = vpop.permute.xlu0 %2284 }
 0x1d6   : > { %v2353_v38 = vsel %vm538_vm11, %v2351_v11, %v2320_v58  ;;  %v2338_v40 = vsel %vm538_vm11, %v2336_v34, %v2285_v48 }
 0x1d9   : > { %v2867_v60 = vpop.permute.xlu1 %2866  ;;  %v2832_v27 = vpop.permute.xlu0 %2831 }
 0x1da   : > { %v2912_v21 = vsel %vm526_vm7, %v2910_v19, %v2867_v60  ;;  %v2897_v3 = vsel %vm526_vm7, %v2895_v39, %v2832_v27 }
 0x1dd   : > { %v1737_v61 = vpop.permute.xlu1 %1736  ;;  %v1702_v1 = vpop.permute.xlu0 %1701 }
 0x1de   : > { %v7764_v54 = vsel %vm541_vm12, %v1766_v23, %v1737_v61  ;;  %v7767_v36 = vsel %vm541_vm12, %v1750_v5, %v1702_v1  ;;  %v5920_v1 = vmov 0.0  }
 0x1df   : > { %9067 = vst [vmem:[#allocation13_spill] sm:$0xff] %v7764_v54  ;;  %9068 = vst [vmem:[#allocation14_spill] sm:$0xff] %v7767_v36  ;;  %v5694_v63 = vcombine.low %v7767_v36, %v7764_v54  ;;  %v9074_v36 = vmov 0  }
 0x1e0   : > { %3032 = vst.msk [vmem:[#allocation3] sm:$0xff] %vm3031_vm15, %v5920_v1  ;;  %3033 = vst.msk [vmem:[#allocation3 + $0x8] sm:$0xff] %vm3031_vm15, %v5920_v1 }
 0x1e1   : > { %1776 = vst [vmem:[#allocation2 + $0x10] sm:$0x33] %v5694_v63  ;;  %v2325_v7 = vpop.permute.xlu1 %2324  ;;  %v2290_v44 = vpop.permute.xlu0 %2289  ;;  %3036 = vst.msk [vmem:[#allocation3 + $0x18] sm:$0xff] %vm3031_vm15, %v5920_v1 }
 0x1e2   : > { %v2355_v0 = vsel %vm541_vm12, %v2353_v38, %v2325_v7  ;;  %v2340_v43 = vsel %vm541_vm12, %v2338_v40, %v2290_v44  ;;  %3037 = vst.msk [vmem:[#allocation3 + $0x20] sm:$0xff] %vm3031_vm15, %v5920_v1  ;;  %3039 = vst.msk [vmem:[#allocation3 + $0x30] sm:$0xff] %vm3031_vm15, %v5920_v1 }
 0x1e3   : > { %v5728_v52 = vcombine.low %v2340_v43, %v2355_v0  ;;  %3040 = vst.msk [vmem:[#allocation3 + $0x38] sm:$0xff] %vm3031_vm15, %v5920_v1  ;;  %3042 = vst.msk [vmem:[#allocation3 + $0x48] sm:$0xff] %vm3031_vm15, %v5920_v1 }
 0x1e4   : > { %3043 = vst.msk [vmem:[#allocation3 + $0x50] sm:$0xff] %vm3031_vm15, %v5920_v1 }
 0x1e5   : > { %2362 = vst [vmem:[#allocation2 + $0x18] sm:$0x33] %v5728_v52  ;;  %v2872_v20 = vpop.permute.xlu1 %2871  ;;  %v2837_v9 = vpop.permute.xlu0 %2836  ;;  %3035 = vst.msk [vmem:[#allocation3 + $0x10] sm:$0x3] %vm3034_vm0, %v5920_v1 }
 0x1e6   : > { %v2914_v30 = vsel %vm529_vm8, %v2912_v21, %v2872_v20  ;;  %v2899_v58 = vsel %vm529_vm8, %v2897_v3, %v2837_v9  ;;  %3038 = vst.msk [vmem:[#allocation3 + $0x28] sm:$0x3] %vm3034_vm0, %v5920_v1  ;;  %3041 = vst.msk [vmem:[#allocation3 + $0x40] sm:$0x3] %vm3034_vm0, %v5920_v1 }
 0x1e7   : > { %3044 = vst.msk [vmem:[#allocation3 + $0x58] sm:$0x3] %vm3034_vm0, %v5920_v1 }
 0x1e9   : > { %v2877_v31 = vpop.permute.xlu1 %2876  ;;  %v2842_v57 = vpop.permute.xlu0 %2841 }
 0x1ea   : > { %v2916_v48 = vsel %vm532_vm9, %v2914_v30, %v2877_v31  ;;  %v2901_v41 = vsel %vm532_vm9, %v2899_v58, %v2842_v57 }
 0x1ec   : > { %v5887_v45 = vld [vmem:[#allocation2 + $0x14] ss:$8 sps:$4 sm:$0xff]   ;;  %v5889_v12 = vld [vmem:[#allocation2 + $0x10] ss:$8 sps:$4 sm:$0xff]  }
 0x1ed   : > { %v2882_v55 = vpop.permute.xlu1 %2881  ;;  %v2847_v50 = vpop.permute.xlu0 %2846  ;;  %2974 = vmatprep.subr.bf16.mxu0 %v5887_v45 }
 0x1ee   : > { %2975 = vmatpush1.bf16.msra.mxu0 %v5889_v12  ;;  %v2918_v29 = vsel %vm535_vm10, %v2916_v48, %v2882_v55  ;;  %v2903_v15 = vsel %vm535_vm10, %v2901_v41, %v2847_v50 }
 0x1f1   : > { %v2887_v46 = vpop.permute.xlu1 %2886  ;;  %v2852_v17 = vpop.permute.xlu0 %2851 }
 0x1f2   : > { %v2920_v4 = vsel %vm538_vm11, %v2918_v29, %v2887_v46  ;;  %v2905_v51 = vsel %vm538_vm11, %v2903_v15, %v2852_v17 }
 0x1f5   : > { %v2892_v6 = vpop.permute.xlu1 %2891  ;;  %v2857_v14 = vpop.permute.xlu0 %2856 }
 0x1f6   : > { %v2922_v18 = vsel %vm541_vm12, %v2920_v4, %v2892_v6  ;;  %v2907_v37 = vsel %vm541_vm12, %v2905_v51, %v2857_v14 }
 0x1f7   : > { %v5758_v47 = vcombine.low %v2907_v37, %v2922_v18 }
 0x1f9   : > { %2929 = vst [vmem:[#allocation2 + $0x20] sm:$0x33] %v5758_v47 }
 0x200   : > { %v2935_v60 = vld [vmem:[#allocation2 + $0x20] sm:$0x33] }
 0x201   : > { %v5764_v27 = vcombine.high %v2935_v60, %v2935_v60  ;;  %v5763_v33 = vcombine.low %v2935_v60, %v2935_v60 }
 0x203   : > { %5765 = vmatprep.subr.msk.bf16.mxu0 %vm2965_vm13, %v5764_v27  ;;  %v2967_v22 = vsel %vm2965_vm13, %v5763_v33, 0 }
 0x204   : > { %2977 = vmatpush1.bf16.msra.mxu0 %v2967_v22 }
 0x206   : > { %v3017_v59 = vpop.permute.xlu0 %3016  ;;  %v3025_v24 = vpop.permute.xlu1 %3024 }
 0x207   : > { %5766 = vmatmul.mubr.msk.bf16.vlgmr.msra.gmra.mrb[0].mxu0 %vm2961_vm14, %v2930_v32 }
 0x2da   : > { %v3006_v62 = vpop.f32.mrb[0].mxu0 }
 0x2db   : > { %v3019_v10 = vmul.f32 %v3017_v59, %v3006_v62  ;;  %v3008_v35 = vpop.f32.mrb[1].mxu0 }
 0x2dc   : > { %v3010_v42 = vpop.f32.mrb[2].mxu0  ;;  %v3020_v23 = vmul.f32 %v3017_v59, %v3008_v35 }
 0x2dd   : > { %v3027_v56 = vadd.f32 %v3025_v24, %v3019_v10  ;;  %v3011_v13 = vpop.f32.mrb[3].mxu0 }
 0x2de   : > { %v3028_v5 = vadd.f32 %v3025_v24, %v3020_v23 }
 0x2df   : > { %v3029_v8 = vmax.f32 %v3027_v56, 0.0 }
 0x2e0   : > { %v3030_v61 = vmax.f32 %v3028_v5, 0.0 }
 0x2e1   : > { %3049 = vrot.lane.b32.xlu0 %v3029_v8, %s5917_s14  ;;  %3046 = vrot.lane.b32.xlu1 %v3029_v8, %s5918_s15 }
 0x2e5   : > { %3055 = vrot.lane.b32.xlu0 %v3029_v8, %s5915_s12  ;;  %3052 = vrot.lane.b32.xlu1 %v3029_v8, %s5916_s13 }
 0x2e9   : > { %3061 = vrot.lane.b32.xlu0 %v3029_v8, %s5913_s10  ;;  %3058 = vrot.lane.b32.xlu1 %v3029_v8, %s5914_s11 }
 0x2ed   : > { %3068 = vrot.lane.b32.xlu0 %v3030_v61, %s5918_s15  ;;  %3064 = vrot.lane.b32.xlu1 %v3029_v8, %s5912_s9 }
 0x2f1   : > { %3074 = vrot.lane.b32.xlu0 %v3030_v61, %s5916_s13  ;;  %3071 = vrot.lane.b32.xlu1 %v3030_v61, %s5917_s14 }
 0x2f5   : > { %3080 = vrot.lane.b32.xlu0 %v3030_v61, %s5914_s11  ;;  %3077 = vrot.lane.b32.xlu1 %v3030_v61, %s5915_s12 }
 0x2f9   : > { %3086 = vrot.lane.b32.xlu0 %v3030_v61, %s5912_s9  ;;  %3083 = vrot.lane.b32.xlu1 %v3030_v61, %s5913_s10 }
 0x353   : > { %v3050_v25 = vpop.permute.xlu0 %3049  ;;  %v3047_v53 = vpop.permute.xlu1 %3046 }
 0x354   : > { %v3089_v38 = vcombine.low %v3029_v8, %v3050_v25 }
 0x356   : > { %v3096_v43 = vrot.slane %v3089_v38, %v6215_v49 }
 0x357   : > { %v3056_v28 = vpop.permute.xlu0 %3055  ;;  %v3053_v26 = vpop.permute.xlu1 %3052 }
 0x358   : > { %v3097_v63 = vcombine.low %v3047_v53, %v3053_v26 }
 0x35a   : > { %v3104_v40 = vrot.slane %v3097_v63, %v6215_v49 }
 0x35b   : > { %v3062_v11 = vpop.permute.xlu0 %3061  ;;  %v3059_v34 = vpop.permute.xlu1 %3058 }
 0x35c   : > { %v3105_v7 = vcombine.low %v3056_v28, %v3062_v11  ;;  %v3121_v20 = vcombine.low %v3096_v43, %v3104_v40  ;;  %v3122_v30 = vcombine.high %v3096_v43, %v3104_v40 }
 0x35e   : > { %v3112_v9 = vrot.slane %v3105_v7, %v6215_v49  ;;  %v3129_v55 = vrot.slane %v3121_v20, %v6344_v16  ;;  %v3136_v14 = vrot.slane %v3122_v30, %v6344_v16 }
 0x35f   : > { %v3069_v44 = vpop.permute.xlu0 %3068  ;;  %v3065_v0 = vpop.permute.xlu1 %3064 }
 0x360   : > { %v3113_v52 = vcombine.low %v3059_v34, %v3065_v0 }
 0x362   : > { %v3120_v31 = vrot.slane %v3113_v52, %v6215_v49 }
 0x363   : > { %v3075_v57 = vpop.permute.xlu0 %3074  ;;  %v3072_v45 = vpop.permute.xlu1 %3071 }
 0x364   : > { %v3137_v12 = vcombine.low %v3112_v9, %v3120_v31  ;;  %v3165_v19 = vcombine.low %v3069_v44, %v3075_v57  ;;  %v3157_v39 = vcombine.low %v3030_v61, %v3072_v45  ;;  %v3138_v46 = vcombine.high %v3112_v9, %v3120_v31 }
 0x366   : > { %v3145_v50 = vrot.slane %v3137_v12, %v6344_v16  ;;  %v3172_v58 = vrot.slane %v3165_v19, %v6215_v49  ;;  %v3164_v48 = vrot.slane %v3157_v39, %v6215_v49  ;;  %v3152_v15 = vrot.slane %v3138_v46, %v6344_v16 }
 0x367   : > { %v3081_v21 = vpop.permute.xlu0 %3080  ;;  %v3078_v3 = vpop.permute.xlu1 %3077 }
 0x368   : > { %v3153_v17 = vcombine.low %v3129_v55, %v3145_v50  ;;  %v3154_v6 = vcombine.high %v3129_v55, %v3145_v50  ;;  %v3189_v18 = vcombine.low %v3164_v48, %v3172_v58  ;;  %v3155_v27 = vcombine.low %v3136_v14, %v3152_v15 }
 0x369   : > { %v3156_v59 = vcombine.high %v3136_v14, %v3152_v15  ;;  %v3190_v24 = vcombine.high %v3164_v48, %v3172_v58 }
 0x36a   : > { %3233 = vrot.lane.b32.xlu1 %v3153_v17, %s5921_s22  ;;  %v3197_v33 = vrot.slane %v3189_v18, %v6344_v16 }
 0x36b   : > { %v3087_v41 = vpop.permute.xlu0 %3086  ;;  %v3084_v29 = vpop.permute.xlu1 %3083  ;;  %v3204_v42 = vrot.slane %v3190_v24, %v6344_v16 }
 0x36c   : > { %v3181_v4 = vcombine.low %v3081_v21, %v3087_v41  ;;  %v3173_v51 = vcombine.low %v3078_v3, %v3084_v29 }
 0x36e   : > { %v3188_v37 = vrot.slane %v3181_v4, %v6215_v49  ;;  %v3180_v47 = vrot.slane %v3173_v51, %v6215_v49  ;;  %3237 = vrot.lane.b32.xlu1 %v3154_v6, %s5921_s22 }
 0x370   : > { %v3205_v60 = vcombine.low %v3180_v47, %v3188_v37  ;;  %v3206_v32 = vcombine.high %v3180_v47, %v3188_v37 }
 0x372   : > { %v3213_v22 = vrot.slane %v3205_v60, %v6344_v16  ;;  %3241 = vrot.lane.b32.xlu1 %v3155_v27, %s5921_s22  ;;  %v3220_v10 = vrot.slane %v3206_v32, %v6344_v16 }
 0x374   : > { %v3221_v62 = vcombine.low %v3197_v33, %v3213_v22  ;;  %v3222_v35 = vcombine.high %v3197_v33, %v3213_v22  ;;  %v3223_v56 = vcombine.low %v3204_v42, %v3220_v10  ;;  %v3224_v13 = vcombine.high %v3204_v42, %v3220_v10 }
 0x376   : > { %3245 = vrot.lane.b32.xlu1 %v3156_v59, %s5921_s22  ;;  %3235 = vrot.lane.b32.xlu0 %v3221_v62, %s5921_s22 }
 0x37a   : > { %3239 = vrot.lane.b32.xlu0 %v3222_v35, %s5921_s22 }
 0x37e   : > { %3243 = vrot.lane.b32.xlu0 %v3223_v56, %s5921_s22 }
 0x382   : > { %3247 = vrot.lane.b32.xlu0 %v3224_v13, %s5921_s22 }
 0x3dc   : > { %v3234_v8 = vpop.permute.xlu1 %3233 }
 0x3dd   : > { %3258 = vst.msk [vmem:[#allocation3 + $0x1] sm:$0xff] %vm3257_vm1, %v3234_v8 }
 0x3e0   : > { %v3238_v23 = vpop.permute.xlu1 %3237 }
 0x3e1   : > { %3260 = vst.msk [vmem:[#allocation3 + $0x19] sm:$0xff] %vm3257_vm1, %v3238_v23 }
 0x3e4   : > { %v3242_v5 = vpop.permute.xlu1 %3241  ;;  %v3266_v28 = vld [vmem:[#allocation3] sm:$0xff] }
 0x3e5   : > { %3262 = vst.msk [vmem:[#allocation3 + $0x31] sm:$0xff] %vm3257_vm1, %v3242_v5 }
 0x3e8   : > { %v3236_v61 = vpop.permute.xlu0 %3235  ;;  %v3246_v1 = vpop.permute.xlu1 %3245  ;;  %v3269_v34 = vld [vmem:[#allocation3 + $0x18] sm:$0xff] }
 0x3e9   : > { %3259 = vst.msk [vmem:[#allocation3 + $0x9] sm:$0xff] %vm3257_vm1, %v3236_v61  ;;  %3264 = vst.msk [vmem:[#allocation3 + $0x49] sm:$0xff] %vm3257_vm1, %v3246_v1 }
 0x3ec   : > { %v3240_v25 = vpop.permute.xlu0 %3239  ;;  %v3272_v7 = vld [vmem:[#allocation3 + $0x30] sm:$0xff] }
 0x3ed   : > { %3261 = vst.msk [vmem:[#allocation3 + $0x21] sm:$0xff] %vm3257_vm1, %v3240_v25 }
 0x3f0   : > { %v3244_v53 = vpop.permute.xlu0 %3243  ;;  %v3267_v26 = vld [vmem:[#allocation3 + $0x8] sm:$0xff]  ;;  %v3268_v43 = vld [vmem:[#allocation3 + $0x10] sm:$0x3] }
 0x3f1   : > { %3263 = vst.msk [vmem:[#allocation3 + $0x39] sm:$0xff] %vm3257_vm1, %v3244_v53  ;;  %v7848_v63 = vpack.c.bf16 %v3267_v26, %v3266_v28  ;;  %v3275_v52 = vld [vmem:[#allocation3 + $0x48] sm:$0xff]  ;;  %v3990_v31 = vpack.c.bf16 %v3268_v43, %v3268_v43  ;;  %v7928_v26 = vpack.i.b16 %v8930_v2, %v8930_v2 }
 0x3f3   : > { %3519 = vrot.lane.b32.xlu1 %v7848_v63, %s5908_s30  ;;  %v4739_v12 = vrot.slane %v7848_v63, 1  ;;  %v4740_v55 = vrot.slane %v3990_v31, 1  ;;  %v3996_v48 = vshll.u32 %v7848_v63, 16  ;;  %v4001_v37 = vshll.u32 %v3990_v31, 16 }
 0x3f4   : > { %v3248_v11 = vpop.permute.xlu0 %3247  ;;  %v3270_v38 = vld [vmem:[#allocation3 + $0x20] sm:$0xff]  ;;  %v3271_v45 = vld [vmem:[#allocation3 + $0x28] sm:$0x3]  ;;  %v3286_v47 = vshrl.u32 %v7848_v63, 16 }
 0x3f5   : > { %3265 = vst.msk [vmem:[#allocation3 + $0x51] sm:$0xff] %vm3257_vm1, %v3248_v11  ;;  %v7853_v40 = vpack.c.bf16 %v3270_v38, %v3269_v34  ;;  %v3991_v19 = vpack.c.bf16 %v3271_v45, %v3271_v45  ;;  %v7873_v21 = vsel %vm4738_vm2, %v4739_v12, %v4740_v55  ;;  %v3998_v6 = vrot.slane %v3996_v48, 1 }
 0x3f6   : > { %v4003_v32 = vrot.slane %v4001_v37, 1 }
 0x3f7   : > { %3521 = vrot.lane.b32.xlu0 %v7853_v40, %s5908_s30  ;;  %v4742_v3 = vrot.slane %v7853_v40, 1  ;;  %v4743_v30 = vrot.slane %v3991_v19, 1  ;;  %v4006_v18 = vshll.u32 %v7853_v40, 16  ;;  %v3999_v60 = vor.u32 %v3998_v6, %v3286_v47 }
 0x3f8   : > { %v3273_v44 = vld [vmem:[#allocation3 + $0x38] sm:$0xff]  ;;  %v3274_v57 = vld [vmem:[#allocation3 + $0x40] sm:$0x3]  ;;  %v3287_v24 = vshrl.u32 %v7853_v40, 16  ;;  %v4011_v10 = vshll.u32 %v3991_v19, 16  ;;  %v3284_v11 = vpack.i.b16 %v7853_v40, %v7848_v63 }
 0x3f9   : > { %v7857_v0 = vpack.c.bf16 %v3273_v44, %v3272_v7  ;;  %v3992_v50 = vpack.c.bf16 %v3274_v57, %v3274_v57  ;;  %v7886_v29 = vsel %vm4738_vm2, %v4742_v3, %v4743_v30  ;;  %v4008_v33 = vrot.slane %v4006_v18, 1 }
 0x3fa   : > { %v7911_v35 = vsel %vm3994_vm3, %v3999_v60, %v4003_v32  ;;  %v4013_v23 = vrot.slane %v4011_v10, 1 }
 0x3fb   : > { %3523 = vrot.lane.b32.xlu1 %v7857_v0, %s5908_s30  ;;  %v4745_v46 = vrot.slane %v7857_v0, 1  ;;  %v4746_v17 = vrot.slane %v3992_v50, 1  ;;  %v4016_v14 = vshll.u32 %v7857_v0, 16  ;;  %v3294_v59 = vshrl.u32 %v7857_v0, 16 }
 0x3fc   : > { %v3276_v20 = vld [vmem:[#allocation3 + $0x50] sm:$0xff]  ;;  %v3277_v39 = vld [vmem:[#allocation3 + $0x58] sm:$0x3]  ;;  %v4021_v62 = vshll.u32 %v3992_v50, 16  ;;  %v4009_v56 = vor.u32 %v4008_v33, %v3287_v24 }
 0x3fd   : > { %v7861_v9 = vpack.c.bf16 %v3276_v20, %v3275_v52  ;;  %v3993_v58 = vpack.c.bf16 %v3277_v39, %v3277_v39  ;;  %v7883_v41 = vsel %vm4738_vm2, %v4745_v46, %v4746_v17  ;;  %v4018_v27 = vrot.slane %v4016_v14, 1 }
 0x3fe   : > { %v4023_v8 = vrot.slane %v4021_v62, 1  ;;  %v7924_v53 = vsel %vm3994_vm3, %v4009_v56, %v4013_v23  ;;  %v3311_v52 = vrot.slane %v3284_v11, %v6215_v49  ;;  %v4756_v23 = vshrl.u32 %v7886_v29, 16 }
 0x3ff   : > { %3755 = vrot.lane.b32.xlu1 %v7848_v63, %s5910_s8  ;;  %3525 = vrot.lane.b32.xlu0 %v7861_v9, %s5908_s30  ;;  %v4748_v15 = vrot.slane %v7861_v9, 1  ;;  %v4749_v4 = vrot.slane %v3993_v58, 1  ;;  %v4026_v22 = vshll.u32 %v7861_v9, 16  ;;  %v4019_v42 = vor.u32 %v4018_v27, %v3294_v59 }
 0x400   : > { %v3295_v5 = vshrl.u32 %v7861_v9, 16  ;;  %v4031_v61 = vshll.u32 %v3993_v58, 16  ;;  %v3292_v1 = vpack.i.b16 %v7861_v9, %v7857_v0  ;;  %v3304_v63 = vcombine.high %v3284_v11, %v7928_v26 }
 0x401   : > { %v7894_v51 = vsel %vm4738_vm2, %v4748_v15, %v4749_v4  ;;  %v4028_v13 = vrot.slane %v4026_v22, 1  ;;  %v7921_v25 = vsel %vm3994_vm3, %v4019_v42, %v4023_v8  ;;  %v4763_v8 = vshrl.u32 %v7883_v41, 16 }
 0x402   : > { %v4033_v34 = vrot.slane %v4031_v61, 1  ;;  %v3296_v38 = vpack.i.b16 %v3295_v5, %v3294_v59  ;;  %v3326_v7 = vrot.slane %v3292_v1, %v6215_v49  ;;  %v3319_v44 = vcombine.high %v3292_v1, %v7928_v26 }
 0x403   : > { %3759 = vrot.lane.b32.xlu1 %v7857_v0, %s5910_s8  ;;  %3757 = vrot.lane.b32.xlu0 %v7853_v40, %s5910_s8  ;;  %v4029_v28 = vor.u32 %v4028_v13, %v3295_v5  ;;  %v3288_v0 = vpack.i.b16 %v3287_v24, %v3286_v47  ;;  %v3318_v45 = vrot.slane %v3304_v63, %v6215_v49  ;;  %v4764_v24 = vshrl.u32 %v7894_v51, 16 }
 0x404   : > { %v3392_v40 = vrot.slane %v3296_v38, %v6215_v49  ;;  %v3335_v20 = vcombine.high %v3311_v52, %v3326_v7  ;;  %v3385_v31 = vcombine.high %v3296_v38, %v7928_v26  ;;  %v3334_v39 = vcombine.low %v3311_v52, %v3326_v7 }
 0x405   : > { %v7939_v43 = vsel %vm3994_vm3, %v4029_v28, %v4033_v34  ;;  %v3377_v57 = vrot.slane %v3288_v0, %v6215_v49  ;;  %v3370_v12 = vcombine.high %v3288_v0, %v7928_v26  ;;  %v4761_v4 = vpack.i.b16 %v7894_v51, %v7883_v41 }
 0x406   : > { %v3349_v50 = vrot.slane %v3335_v20, %v6344_v16  ;;  %v3399_v3 = vrot.slane %v3385_v31, %v6215_v49  ;;  %v7966_v58 = vrot.slane %v3334_v39, %v6344_v16  ;;  %v4753_v47 = vpack.i.b16 %v7886_v29, %v7873_v21 }
 0x407   : > { %4978 = vrot.lane.b32.xlu1 %v7873_v21, %s5908_s30  ;;  %3761 = vrot.lane.b32.xlu0 %v7861_v9, %s5910_s8  ;;  %v3333_v9 = vrot.slane %v3319_v44, %v6215_v49  ;;  %v3400_v55 = vcombine.low %v3377_v57, %v3392_v40  ;;  %v3384_v46 = vrot.slane %v3370_v12, %v6215_v49  ;;  %v4755_v61 = vshrl.u32 %v7873_v21, 16 }
 0x408   : > { %v3366_v6 = vcombine.high %v7966_v58, %v8930_v2  ;;  %v3401_v18 = vcombine.high %v3377_v57, %v3392_v40  ;;  %v4782_v60 = vcombine.high %v4761_v4, %v7928_v26  ;;  %v4789_v27 = vrot.slane %v4761_v4, %v6215_v49 }
 0x409   : > { %v3351_v19 = vcombine.high %v3318_v45, %v3333_v9  ;;  %v3408_v17 = vrot.slane %v3400_v55, %v6344_v16  ;;  %v3416_v48 = vcombine.low %v3384_v46, %v3399_v3  ;;  %v3350_v15 = vcombine.low %v3318_v45, %v3333_v9 }
 0x40a   : > { %v3415_v33 = vrot.slane %v3401_v18, %v6344_v16  ;;  %v3417_v32 = vcombine.high %v3384_v46, %v3399_v3  ;;  %v4767_v59 = vcombine.high %v4753_v47, %v7928_v26  ;;  %v4774_v62 = vrot.slane %v4753_v47, %v6215_v49 }
 0x40b   : > { %4982 = vrot.lane.b32.xlu1 %v7883_v41, %s5908_s30  ;;  %4980 = vrot.lane.b32.xlu0 %v7886_v29, %s5908_s30  ;;  %v3365_v30 = vrot.slane %v3351_v19, %v6344_v16  ;;  %v3424_v14 = vrot.slane %v3416_v48, %v6344_v16  ;;  %v7976_v37 = vrot.slane %v3350_v15, %v6344_v16  ;;  %v4048_v47 = vshrl.u32 %v7939_v43, 16 }
 0x40c   : > { %v3367_v10 = vcombine.high %v3349_v50, %v8930_v2  ;;  %v3431_v42 = vrot.slane %v3417_v32, %v6344_v16  ;;  %v4798_v56 = vcombine.high %v4774_v62, %v4789_v27  ;;  %v4796_v13 = vrot.slane %v4782_v60, %v6215_v49 }
 0x40d   : > { %v3368_v22 = vcombine.high %v7976_v37, %v8930_v2  ;;  %v4781_v5 = vrot.slane %v4767_v59, %v6215_v49  ;;  %v3369_v28 = vcombine.high %v3365_v30, %v8930_v2  ;;  %v4757_v34 = vpack.i.b16 %v4756_v23, %v4755_v61 }
 0x40e   : > { %v4812_v1 = vrot.slane %v4798_v56, %v6344_v16  ;;  %v3433_v0 = vcombine.high %v3415_v33, %v8930_v2  ;;  %v3434_v52 = vcombine.high %v3424_v14, %v8930_v2  ;;  %v4797_v40 = vcombine.low %v4774_v62, %v4789_v27 }
 0x40f   : > { %5214 = vrot.lane.b32.xlu1 %v7873_v21, %s5910_s8  ;;  %4984 = vrot.lane.b32.xlu0 %v7894_v51, %s5908_s30  ;;  %v4814_v11 = vcombine.high %v4781_v5, %v4796_v13  ;;  %v4833_v21 = vcombine.high %v4757_v34, %v7928_v26  ;;  %v4840_v44 = vrot.slane %v4757_v34, %v6215_v49  ;;  %v4047_v32 = vshrl.u32 %v7921_v25, 16 }
 0x410   : > { %v3435_v31 = vcombine.high %v3431_v42, %v8930_v2  ;;  %v8022_v45 = vrot.slane %v4797_v40, %v6344_v16  ;;  %v4813_v55 = vcombine.low %v4781_v5, %v4796_v13  ;;  %v4830_v60 = vcombine.high %v4812_v1, %v8930_v2 }
 0x411   : > { %v4828_v38 = vrot.slane %v4814_v11, %v6344_v16  ;;  %v4847_v9 = vrot.slane %v4833_v21, %v6215_v49  ;;  %v4040_v59 = vshrl.u32 %v7924_v53, 16 }
 0x412   : > { %v4829_v19 = vcombine.high %v8022_v45, %v8930_v2  ;;  %v8032_v46 = vrot.slane %v4813_v55, %v6344_v16 }
 0x413   : > { %5218 = vrot.lane.b32.xlu1 %v7883_v41, %s5910_s8  ;;  %5216 = vrot.lane.b32.xlu0 %v7886_v29, %s5910_s8  ;;  %v3432_v29 = vcombine.high %v3408_v17, %v8930_v2 }
 0x414   : > { %v4831_v4 = vcombine.high %v8032_v46, %v8930_v2 }
 0x417   : > { %4498 = vrot.lane.b32.xlu1 %v7911_v35, %s5910_s8  ;;  %5220 = vrot.lane.b32.xlu0 %v7894_v51, %s5910_s8  ;;  %v4765_v51 = vpack.i.b16 %v4764_v24, %v4763_v8  ;;  %v4039_v24 = vshrl.u32 %v7911_v35, 16 }
 0x419   : > { %v4848_v41 = vcombine.high %v4765_v51, %v7928_v26  ;;  %v4855_v7 = vrot.slane %v4765_v51, %v6215_v49  ;;  %v4041_v13 = vpack.i.b16 %v4040_v59, %v4039_v24 }
 0x41b   : > { %4502 = vrot.lane.b32.xlu1 %v7921_v25, %s5910_s8  ;;  %4500 = vrot.lane.b32.xlu0 %v7924_v53, %s5910_s8  ;;  %v4863_v63 = vcombine.low %v4840_v44, %v4855_v7  ;;  %v4862_v20 = vrot.slane %v4848_v41, %v6215_v49  ;;  %v4864_v3 = vcombine.high %v4840_v44, %v4855_v7 }
 0x41c   : > { %v4124_v5 = vrot.slane %v4041_v13, %v6215_v49 }
 0x41d   : > { %v4871_v57 = vrot.slane %v4863_v63, %v6344_v16  ;;  %v4879_v12 = vcombine.low %v4847_v9, %v4862_v20  ;;  %v4878_v15 = vrot.slane %v4864_v3, %v6344_v16 }
 0x41f   : > { %4263 = vrot.lane.b32.xlu1 %v7911_v35, %s5908_s30  ;;  %4504 = vrot.lane.b32.xlu0 %v7939_v43, %s5910_s8  ;;  %v4887_v39 = vrot.slane %v4879_v12, %v6344_v16  ;;  %v4896_v61 = vcombine.high %v4878_v15, %v8930_v2  ;;  %s5786_s8 = sshll.u32 %s9083_s25, 3 }
 0x421   : > { %v4897_v51 = vcombine.high %v4887_v39, %v8930_v2 }
 0x423   : > { %4267 = vrot.lane.b32.xlu1 %v7921_v25, %s5908_s30  ;;  %4265 = vrot.lane.b32.xlu0 %v7924_v53, %s5908_s30 }
 0x427   : > { %4269 = vrot.lane.b32.xlu0 %v7939_v43, %s5908_s30  ;;  %3446 = vrot.lane.b32.xlu1 %v3349_v50, %s5915_s12  ;;  %v4045_v50 = vpack.i.b16 %v7939_v43, %v7921_v25  ;;  %v4049_v43 = vpack.i.b16 %v4048_v47, %v4047_v32 }
 0x429   : > { %v4073_v48 = vrot.slane %v4045_v50, %v6215_v49  ;;  %v4132_v25 = vcombine.high %v4049_v43, %v7928_v26  ;;  %v4139_v23 = vrot.slane %v4049_v43, %v6215_v49 }
 0x42b   : > { %3437 = vrot.lane.b32.xlu1 %v3408_v17, %s5912_s9  ;;  %3467 = vrot.lane.b32.xlu0 %v3365_v30, %s5915_s12  ;;  %v4037_v17 = vpack.i.b16 %v7924_v53, %v7911_v35  ;;  %v4066_v30 = vcombine.high %v4045_v50, %v7928_v26  ;;  %v4895_v53 = vcombine.high %v4871_v57, %v8930_v2 }
 0x42c   : > { %v4117_v35 = vcombine.high %v4041_v13, %v7928_v26  ;;  %v4146_v11 = vrot.slane %v4132_v25, %v6215_v49 }
 0x42d   : > { %v4058_v18 = vrot.slane %v4037_v17, %v6215_v49 }
 0x42e   : > { %v4131_v34 = vrot.slane %v4117_v35, %v6215_v49 }
 0x42f   : > { %3440 = vrot.lane.b32.xlu1 %v3366_v6, %s5913_s10  ;;  %3458 = vrot.lane.b32.xlu0 %v3424_v14, %s5912_s9  ;;  %v4880_v6 = vcombine.high %v4847_v9, %v4862_v20  ;;  %v4051_v14 = vcombine.high %v4037_v17, %v7928_v26 }
 0x430   : > { %v4163_v7 = vcombine.low %v4131_v34, %v4146_v11 }
 0x431   : > { %v4894_v27 = vrot.slane %v4880_v6, %v6344_v16  ;;  %v4065_v62 = vrot.slane %v4051_v14, %v6215_v49 }
 0x433   : > { %3449 = vrot.lane.b32.xlu1 %v3415_v33, %s5916_s13  ;;  %3461 = vrot.lane.b32.xlu0 %v3368_v22, %s5913_s10  ;;  %v4082_v33 = vcombine.high %v4058_v18, %v4073_v48  ;;  %v4080_v22 = vrot.slane %v4066_v30, %v6215_v49  ;;  %v4898_v41 = vcombine.high %v4894_v27, %v8930_v2 }
 0x435   : > { %v4098_v56 = vcombine.high %v4065_v62, %v4080_v22  ;;  %v4097_v21 = vcombine.low %v4065_v62, %v4080_v22 }
 0x437   : > { %3452 = vrot.lane.b32.xlu1 %v3367_v10, %s5917_s14  ;;  %3470 = vrot.lane.b32.xlu0 %v3431_v42, %s5916_s13  ;;  %v4096_v10 = vrot.slane %v4082_v33, %v6344_v16  ;;  %v4832_v42 = vcombine.high %v4828_v38, %v8930_v2  ;;  %v4112_v8 = vrot.slane %v4098_v56, %v6344_v16 }
 0x438   : > { %v8086_v63 = vrot.slane %v4097_v21, %v6344_v16 }
 0x439   : > { %v4114_v55 = vcombine.high %v4096_v10, %v8930_v2  ;;  %v4116_v30 = vcombine.high %v4112_v8, %v8930_v2 }
 0x43a   : > { %9069 = vst [vmem:[#allocation9_spill] sm:$0xff] %v8086_v63  ;;  %v4115_v9 = vcombine.high %v8086_v63, %v8930_v2 }
 0x43b   : > { %4909 = vrot.lane.b32.xlu1 %v4812_v1, %s5915_s12  ;;  %3473 = vrot.lane.b32.xlu0 %v3369_v28, %s5917_s14  ;;  %v4147_v1 = vcombine.low %v4124_v5, %v4139_v23  ;;  %v4081_v28 = vcombine.low %v4058_v18, %v4073_v48 }
 0x43f   : > { %3443 = vrot.lane.b32.xlu1 %v3432_v29, %s5914_s11  ;;  %4930 = vrot.lane.b32.xlu0 %v4828_v38, %s5915_s12  ;;  %v4155_v29 = vrot.slane %v4147_v1, %v6344_v16  ;;  %v8078_v38 = vrot.slane %v4081_v28, %v6344_v16 }
 0x441   : > { %v4113_v44 = vcombine.high %v8078_v38, %v8930_v2  ;;  %v4179_v17 = vcombine.high %v4155_v29, %v8930_v2 }
 0x443   : > { %3455 = vrot.lane.b32.xlu1 %v3433_v0, %s5918_s15  ;;  %3464 = vrot.lane.b32.xlu0 %v3434_v52, %s5914_s11  ;;  %v4171_v0 = vrot.slane %v4163_v7, %v6344_v16  ;;  %v4148_v52 = vcombine.high %v4124_v5, %v4139_v23 }
 0x445   : > { %v4162_v20 = vrot.slane %v4148_v52, %v6344_v16  ;;  %v4181_v62 = vcombine.high %v4171_v0, %v8930_v2 }
 0x447   : > { %4900 = vrot.lane.b32.xlu1 %v4871_v57, %s5912_s9  ;;  %3476 = vrot.lane.b32.xlu0 %v3435_v31, %s5918_s15  ;;  %v4164_v31 = vcombine.high %v4131_v34, %v4146_v11  ;;  %v4180_v59 = vcombine.high %v4162_v20, %v8930_v2 }
 0x449   : > { %v4178_v50 = vrot.slane %v4164_v31, %v6344_v16 }
 0x44b   : > { %4903 = vrot.lane.b32.xlu1 %v4829_v19, %s5913_s10  ;;  %4921 = vrot.lane.b32.xlu0 %v4887_v39, %s5912_s9  ;;  %v4182_v23 = vcombine.high %v4178_v50, %v8930_v2 }
 0x44f   : > { %4912 = vrot.lane.b32.xlu1 %v4878_v15, %s5916_s13  ;;  %4924 = vrot.lane.b32.xlu0 %v4831_v4, %s5913_s10 }
 0x453   : > { %4915 = vrot.lane.b32.xlu1 %v4830_v60, %s5917_s14  ;;  %4933 = vrot.lane.b32.xlu0 %v4894_v27, %s5916_s13 }
 0x457   : > { %4193 = vrot.lane.b32.xlu1 %v4096_v10, %s5915_s12  ;;  %4936 = vrot.lane.b32.xlu0 %v4832_v42, %s5917_s14 }
 0x45b   : > { %4906 = vrot.lane.b32.xlu1 %v4895_v53, %s5914_s11  ;;  %4214 = vrot.lane.b32.xlu0 %v4112_v8, %s5915_s12 }
 0x45f   : > { %4918 = vrot.lane.b32.xlu1 %v4896_v61, %s5918_s15  ;;  %4927 = vrot.lane.b32.xlu0 %v4897_v51, %s5914_s11 }
 0x463   : > { %4184 = vrot.lane.b32.xlu1 %v4155_v29, %s5912_s9  ;;  %4939 = vrot.lane.b32.xlu0 %v4898_v41, %s5918_s15 }
 0x465   : > { %v3520_v40 = vpop.permute.xlu1 %3519 }
 0x466   : > { %v3531_v27 = vshrl.u32 %v3520_v40, 16 }
 0x467   : > { %4187 = vrot.lane.b32.xlu1 %v4113_v44, %s5913_s10  ;;  %4205 = vrot.lane.b32.xlu0 %v4171_v0, %s5912_s9 }
 0x469   : > { %v3522_v57 = vpop.permute.xlu0 %3521 }
 0x46a   : > { %v3529_v19 = vpack.i.b16 %v3522_v57, %v3520_v40  ;;  %v3532_v4 = vshrl.u32 %v3522_v57, 16 }
 0x46b   : > { %4196 = vrot.lane.b32.xlu1 %v4162_v20, %s5916_s13  ;;  %4208 = vrot.lane.b32.xlu0 %v4115_v9, %s5913_s10 }
 0x46c   : > { %v3543_v6 = vcombine.high %v3529_v19, %v7928_v26  ;;  %v8105_v18 = vrot.slane %v3529_v19, %v6215_v49  ;;  %v3533_v10 = vpack.i.b16 %v3532_v4, %v3531_v27 }
 0x46d   : > { %v3524_v12 = vpop.permute.xlu1 %3523 }
 0x46e   : > { %v3539_v14 = vshrl.u32 %v3524_v12, 16  ;;  %v3557_v42 = vrot.slane %v3543_v6, %v6215_v49  ;;  %v3609_v1 = vcombine.high %v3533_v10, %v7928_v26  ;;  %v8135_v21 = vrot.slane %v3533_v10, %v6215_v49 }
 0x46f   : > { %4199 = vrot.lane.b32.xlu1 %v4114_v55, %s5917_s14  ;;  %4217 = vrot.lane.b32.xlu0 %v4178_v50, %s5916_s13 }
 0x470   : > { %v3623_v55 = vrot.slane %v3609_v1, %v6215_v49 }
 0x471   : > { %v3526_v39 = vpop.permute.xlu0 %3525  ;;  %v3756_v3 = vpop.permute.xlu1 %3755 }
 0x472   : > { %v3537_v48 = vpack.i.b16 %v3526_v39, %v3524_v12  ;;  %v3540_v15 = vshrl.u32 %v3526_v39, 16  ;;  %v3767_v0 = vshrl.u32 %v3756_v3, 16 }
 0x473   : > { %4190 = vrot.lane.b32.xlu1 %v4179_v17, %s5914_s11  ;;  %4220 = vrot.lane.b32.xlu0 %v4116_v30, %s5917_s14 }
 0x474   : > { %v3558_v47 = vcombine.high %v3537_v48, %v7928_v26  ;;  %v3565_v60 = vrot.slane %v3537_v48, %v6215_v49  ;;  %v3541_v33 = vpack.i.b16 %v3540_v15, %v3539_v14 }
 0x475   : > { %v3758_v22 = vpop.permute.xlu0 %3757  ;;  %v3760_v32 = vpop.permute.xlu1 %3759 }
 0x476   : > { %v3572_v24 = vrot.slane %v3558_v47, %v6215_v49  ;;  %v3574_v43 = vcombine.high %v8105_v18, %v3565_v60  ;;  %v3765_v56 = vpack.i.b16 %v3758_v22, %v3756_v3  ;;  %v3624_v25 = vcombine.high %v3541_v33, %v7928_v26 }
 0x477   : > { %4202 = vrot.lane.b32.xlu1 %v4180_v59, %s5918_s15  ;;  %4211 = vrot.lane.b32.xlu0 %v4181_v62, %s5914_s11  ;;  %v8126_v28 = vrot.slane %v3541_v33, %v6215_v49  ;;  %v3768_v11 = vshrl.u32 %v3758_v22, 16  ;;  %v3775_v41 = vshrl.u32 %v3760_v32, 16  ;;  %v3573_v50 = vcombine.low %v8105_v18, %v3565_v60 }
 0x478   : > { %v8117_v13 = vrot.slane %v3574_v43, %v6344_v16  ;;  %v3590_v35 = vcombine.high %v3557_v42, %v3572_v24  ;;  %v3779_v5 = vcombine.high %v3765_v56, %v7928_v26  ;;  %v3786_v34 = vrot.slane %v3765_v56, %v6215_v49 }
 0x479   : > { %v3762_v53 = vpop.permute.xlu0 %3761  ;;  %v8120_v8 = vpop.permute.xlu1 %4978  ;;  %v8138_v44 = vrot.slane %v3624_v25, %v6215_v49  ;;  %v3769_v19 = vpack.i.b16 %v3768_v11, %v3767_v0  ;;  %v3639_v17 = vcombine.low %v8135_v21, %v8126_v28  ;;  %v3589_v15 = vcombine.low %v3557_v42, %v3572_v24 }
 0x47a   : > { %v3773_v61 = vpack.i.b16 %v3762_v53, %v3760_v32  ;;  %v3776_v51 = vshrl.u32 %v3762_v53, 16  ;;  %v8145_v20 = vrot.slane %v3590_v35, %v6344_v16  ;;  %v3793_v9 = vrot.slane %v3779_v5, %v6215_v49 }
 0x47b   : > { %4223 = vrot.lane.b32.xlu0 %v4182_v23, %s5918_s15  ;;  %3685 = vrot.lane.b32.xlu1 %v8117_v13, %s5915_s12  ;;  %v3655_v14 = vcombine.low %v3623_v55, %v8138_v44  ;;  %v3845_v18 = vcombine.high %v3769_v19, %v7928_v26  ;;  %v8174_v60 = vrot.slane %v3639_v17, %v6344_v16 }
 0x47c   : > { %v3794_v29 = vcombine.high %v3773_v61, %v7928_v26  ;;  %v3801_v7 = vrot.slane %v3773_v61, %v6215_v49  ;;  %v3777_v31 = vpack.i.b16 %v3776_v51, %v3775_v41  ;;  %v8177_v27 = vrot.slane %v3573_v50, %v6344_v16 }
 0x47d   : > { %v8140_v52 = vpop.permute.xlu0 %4980  ;;  %v8142_v40 = vpop.permute.xlu1 %4982  ;;  %v3852_v32 = vrot.slane %v3769_v19, %v6215_v49  ;;  %v8188_v62 = vrot.slane %v3655_v14, %v6344_v16  ;;  %v8191_v24 = vrot.slane %v3589_v15, %v6344_v16  ;;  %v3859_v43 = vrot.slane %v3845_v18, %v6215_v49 }
 0x47e   : > { %v3808_v57 = vrot.slane %v3794_v29, %v6215_v49  ;;  %v3810_v12 = vcombine.high %v3786_v34, %v3801_v7  ;;  %v3860_v4 = vcombine.high %v3777_v31, %v7928_v26  ;;  %v3867_v47 = vrot.slane %v3777_v31, %v6215_v49  ;;  %9070 = vst [vmem:[#allocation10_spill] sm:$0xff] %v8177_v27 }
 0x47f   : > { %3706 = vrot.lane.b32.xlu0 %v8145_v20, %s5915_s12  ;;  %9071 = vst [vmem:[#allocation25_spill] sm:$0xff] %v8191_v24  ;;  %v3809_v10 = vcombine.low %v3786_v34, %v3801_v7  ;;  %v3605_v42 = vcombine.high %v8177_v27, %v8930_v2  ;;  %v3607_v35 = vcombine.high %v8191_v24, %v8930_v2  ;;  %v4998_v54 = vshrl.u32 %v8142_v40, 16 }
 0x480   : > { %v8154_v39 = vrot.slane %v3810_v12, %v6344_v16  ;;  %v3826_v3 = vcombine.high %v3793_v9, %v3808_v57  ;;  %v3874_v59 = vrot.slane %v3860_v4, %v6215_v49  ;;  %v3875_v56 = vcombine.low %v3852_v32, %v3867_v47 }
 0x481   : > { %v8158_v30 = vpop.permute.xlu0 %4984  ;;  %v8160_v48 = vpop.permute.xlu1 %5214  ;;  %v3825_v23 = vcombine.low %v3793_v9, %v3808_v57  ;;  %v8210_v51 = vrot.slane %v3809_v10, %v6344_v16  ;;  %v3640_v7 = vcombine.high %v8135_v21, %v8126_v28  ;;  %v3656_v57 = vcombine.high %v3623_v55, %v8138_v44 }
 0x482   : > { %3921 = vrot.lane.b32.xlu1 %v8154_v39, %s5915_s12  ;;  %v8166_v6 = vrot.slane %v3826_v3, %v6344_v16  ;;  %v3891_v5 = vcombine.low %v3859_v43, %v3874_v59  ;;  %v8207_v61 = vrot.slane %v3875_v56, %v6344_v16  ;;  %v4996_v28 = vpack.i.b16 %v8158_v30, %v8142_v40 }
 0x483   : > { %9072 = vst [vmem:[#allocation17_spill] sm:$0xff] %v8210_v51  ;;  %v8222_v41 = vrot.slane %v3825_v23, %v6344_v16  ;;  %v3841_v29 = vcombine.high %v8210_v51, %v8930_v2  ;;  %v8240_v12 = vrot.slane %v3640_v7, %v6344_v16  ;;  %v8251_v21 = vrot.slane %v3656_v57, %v6344_v16 }
 0x484   : > { %3942 = vrot.lane.b32.xlu0 %v8166_v6, %s5915_s12  ;;  %v8219_v34 = vrot.slane %v3891_v5, %v6344_v16  ;;  %v4988_v44 = vpack.i.b16 %v8140_v52, %v8120_v8  ;;  %v3606_v55 = vcombine.high %v8117_v13, %v8930_v2  ;;  %v3876_v3 = vcombine.high %v3852_v32, %v3867_v47 }
 0x485   : > { %v8179_v33 = vpop.permute.xlu0 %5216  ;;  %v8181_v22 = vpop.permute.xlu1 %5218  ;;  %9073 = vst [vmem:[#allocation11_spill] sm:$0xff] %v8222_v41  ;;  %v3843_v31 = vcombine.high %v8222_v41, %v8930_v2  ;;  %v5017_v4 = vcombine.high %v4996_v28, %v7928_v26  ;;  %v3608_v18 = vcombine.high %v8145_v20, %v8930_v2  ;;  %v3892_v10 = vcombine.high %v3859_v43, %v3874_v59 }
 0x486   : > { %3676 = vrot.lane.b32.xlu1 %v8174_v60, %s5912_s9  ;;  %v8271_v13 = vrot.slane %v4996_v28, %v6215_v49  ;;  %v5224_v47 = vpack.i.b16 %v8179_v33, %v8160_v48  ;;  %v8277_v32 = vrot.slane %v3876_v3, %v6344_v16  ;;  %v3842_v57 = vcombine.high %v8154_v39, %v8930_v2 }
 0x487   : > { %v8285_v20 = vrot.slane %v5017_v4, %v6215_v49  ;;  %v8291_v43 = vrot.slane %v3892_v10, %v6344_v16  ;;  %v3844_v4 = vcombine.high %v8166_v6, %v8930_v2  ;;  %v4990_v41 = vshrl.u32 %v8120_v8, 16 }
 0x488   : > { %3697 = vrot.lane.b32.xlu0 %v8188_v62, %s5912_s9  ;;  %v5238_v7 = vcombine.high %v5224_v47, %v7928_v26 }
 0x489   : > { %v8198_v25 = vpop.permute.xlu0 %5220  ;;  %v8200_v53 = vpop.permute.xlu1 %4498 }
 0x48a   : > { %3679 = vrot.lane.b32.xlu1 %v3605_v42, %s5913_s10  ;;  %v5232_v14 = vpack.i.b16 %v8198_v25, %v8181_v22  ;;  %v5002_v42 = vcombine.high %v4988_v44, %v7928_v26 }
 0x48c   : > { %3700 = vrot.lane.b32.xlu0 %v3607_v35, %s5913_s10  ;;  %v8282_v35 = vrot.slane %v4988_v44, %v6215_v49  ;;  %v5253_v59 = vcombine.high %v5232_v14, %v7928_v26  ;;  %v8294_v5 = vrot.slane %v5002_v42, %v6215_v49 }
 0x48d   : > { %v8212_v1 = vpop.permute.xlu0 %4500  ;;  %v8214_v11 = vpop.permute.xlu1 %4502 }
 0x48e   : > { %3912 = vrot.lane.b32.xlu1 %v8207_v61, %s5912_s9  ;;  %v8310_v3 = vrot.slane %v5253_v59, %v6215_v49 }
 0x490   : > { %3933 = vrot.lane.b32.xlu0 %v8219_v34, %s5912_s9 }
 0x491   : > { %v8230_v0 = vpop.permute.xlu0 %4504  ;;  %v8232_v9 = vpop.permute.xlu1 %4263 }
 0x492   : > { %3915 = vrot.lane.b32.xlu1 %v3841_v29, %s5913_s10  ;;  %v5033_v29 = vcombine.high %v8282_v35, %v8271_v13 }
 0x494   : > { %3936 = vrot.lane.b32.xlu0 %v3843_v31, %s5913_s10  ;;  %v8300_v31 = vrot.slane %v5232_v14, %v6215_v49  ;;  %v5049_v14 = vcombine.high %v8294_v5, %v8285_v20  ;;  %v8324_v10 = vrot.slane %v5033_v29, %v6344_v16 }
 0x495   : > { %v8242_v50 = vpop.permute.xlu0 %4265  ;;  %v8244_v19 = vpop.permute.xlu1 %4267 }
 0x496   : > { %3688 = vrot.lane.b32.xlu1 %v8240_v12, %s5916_s13  ;;  %v8329_v6 = vrot.slane %v5049_v14, %v6344_v16  ;;  %v4991_v14 = vshrl.u32 %v8140_v52, 16 }
 0x498   : > { %3709 = vrot.lane.b32.xlu0 %v8251_v21, %s5916_s13  ;;  %v4992_v52 = vpack.i.b16 %v4991_v14, %v4990_v41 }
 0x499   : > { %v8259_v17 = vpop.permute.xlu0 %4269  ;;  %v8261_v15 = vpop.permute.xlu1 %3446 }
 0x49a   : > { %3691 = vrot.lane.b32.xlu1 %v3606_v55, %s5917_s14  ;;  %v8307_v55 = vrot.slane %v5224_v47, %v6215_v49 }
 0x49c   : > { %3712 = vrot.lane.b32.xlu0 %v3608_v18, %s5917_s14  ;;  %v8318_v18 = vrot.slane %v5238_v7, %v6215_v49  ;;  %v5269_v39 = vcombine.high %v8307_v55, %v8300_v31 }
 0x49d   : > { %v8279_v56 = vpop.permute.xlu0 %3467  ;;  %v3438_v23 = vpop.permute.xlu1 %3437 }
 0x49e   : > { %3924 = vrot.lane.b32.xlu1 %v8277_v32, %s5916_s13  ;;  %v5285_v59 = vcombine.high %v8318_v18, %v8310_v3  ;;  %v8336_v7 = vrot.slane %v5269_v39, %v6344_v16  ;;  %v3671_v39 = vcombine.high %v8174_v60, %v9074_v36  ;;  %v3480_v40 = vsel %vm522_vm6, %v7966_v58, %v3438_v23 }
 0x49f   : > { %v3907_v60 = vcombine.high %v8207_v61, %v9074_v36  ;;  %v5068_v58 = vcombine.high %v4992_v52, %v7928_v26 }
 0x4a0   : > { %3945 = vrot.lane.b32.xlu0 %v8291_v43, %s5916_s13  ;;  %v8342_v2 = vrot.slane %v5285_v59, %v6344_v16  ;;  %v3673_v59 = vcombine.high %v8188_v62, %v9074_v36  ;;  %v3909_v62 = vcombine.high %v8219_v34, %v9074_v36 }
 0x4a1   : > { %v3459_v28 = vpop.permute.xlu0 %3458  ;;  %v3441_v44 = vpop.permute.xlu1 %3440 }
 0x4a2   : > { %3927 = vrot.lane.b32.xlu1 %v3842_v57, %s5917_s14  ;;  %v3482_v8 = vsel %vm526_vm7, %v3480_v40, %v3441_v44  ;;  %v3495_v23 = vsel %vm522_vm6, %v7976_v37, %v3459_v28  ;;  %v3674_v37 = vcombine.high %v8251_v21, %v9074_v36  ;;  %v5082_v28 = vrot.slane %v5068_v58, %v6215_v49 }
 0x4a3   : > { %v3908_v40 = vcombine.high %v8277_v32, %v9074_v36  ;;  %v5048_v21 = vcombine.low %v8294_v5, %v8285_v20  ;;  %v5234_v20 = vshrl.u32 %v8181_v22, 16 }
 0x4a4   : > { %3948 = vrot.lane.b32.xlu0 %v3844_v4, %s5917_s14  ;;  %v4999_v4 = vshrl.u32 %v8158_v30, 16 }
 0x4a5   : > { %v3462_v42 = vpop.permute.xlu0 %3461  ;;  %v3450_v47 = vpop.permute.xlu1 %3449  ;;  %v8421_v22 = vrot.slane %v5048_v21, %v6344_v16 }
 0x4a6   : > { %5144 = vrot.lane.b32.xlu1 %v8324_v10, %s5915_s12  ;;  %v5000_v24 = vpack.i.b16 %v4999_v4, %v4998_v54  ;;  %v3497_v14 = vsel %vm526_vm7, %v3495_v23, %v3462_v42 }
 0x4a8   : > { %5165 = vrot.lane.b32.xlu0 %v8329_v6, %s5915_s12  ;;  %v5083_v54 = vcombine.high %v5000_v24, %v7928_v26  ;;  %v5090_v61 = vrot.slane %v5000_v24, %v6215_v49 }
 0x4a9   : > { %v3471_v57 = vpop.permute.xlu0 %3470  ;;  %v3453_v29 = vpop.permute.xlu1 %3452 }
 0x4aa   : > { %5380 = vrot.lane.b32.xlu1 %v8336_v7, %s5915_s12 }
 0x4ac   : > { %5401 = vrot.lane.b32.xlu0 %v8342_v2, %s5915_s12 }
 0x4ad   : > { %v3474_v51 = vpop.permute.xlu0 %3473  ;;  %v8351_v30 = vpop.permute.xlu1 %4909 }
 0x4ae   : > { %3682 = vrot.lane.b32.xlu1 %v3671_v39, %s5914_s11 }
 0x4b0   : > { %3703 = vrot.lane.b32.xlu0 %v3673_v59, %s5914_s11  ;;  %v5075_v59 = vrot.slane %v4992_v52, %v6215_v49 }
 0x4b1   : > { %v8362_v27 = vpop.permute.xlu0 %4930  ;;  %v3444_v63 = vpop.permute.xlu1 %3443 }
 0x4b2   : > { %v3484_v4 = vsel %vm529_vm8, %v3482_v8, %v3444_v63  ;;  %3918 = vrot.lane.b32.xlu1 %v3907_v60, %s5914_s11  ;;  %v3672_v63 = vcombine.high %v8240_v12, %v9074_v36  ;;  %v5098_v60 = vcombine.low %v5075_v59, %v5090_v61  ;;  %v5235_v8 = vshrl.u32 %v8198_v25, 16 }
 0x4b3   : > { %v3486_v41 = vsel %vm532_vm9, %v3484_v4, %v8261_v15  ;;  %v5097_v15 = vrot.slane %v5083_v54, %v6215_v49 }
 0x4b4   : > { %3939 = vrot.lane.b32.xlu0 %v3909_v62, %s5914_s11  ;;  %v3488_v44 = vsel %vm535_vm10, %v3486_v41, %v3450_v47  ;;  %v5032_v47 = vcombine.low %v8282_v35, %v8271_v13  ;;  %v3910_v35 = vcombine.high %v8291_v43, %v9074_v36  ;;  %v5227_v62 = vshrl.u32 %v8179_v33, 16 }
 0x4b5   : > { %v3465_v34 = vpop.permute.xlu0 %3464  ;;  %v3456_v39 = vpop.permute.xlu1 %3455  ;;  %v3490_v42 = vsel %vm538_vm11, %v3488_v44, %v3453_v29  ;;  %v5114_v32 = vcombine.low %v5082_v28, %v5097_v15  ;;  %v8409_v25 = vrot.slane %v5098_v60, %v6344_v16  ;;  %v5226_v41 = vshrl.u32 %v8160_v48, 16 }
 0x4b6   : > { %v3499_v24 = vsel %vm529_vm8, %v3497_v14, %v3465_v34  ;;  %3694 = vrot.lane.b32.xlu1 %v3672_v63, %s5918_s15  ;;  %v3492_v4 = vsel %vm541_vm12, %v3490_v42, %v3456_v39  ;;  %v5236_v43 = vpack.i.b16 %v5235_v8, %v5234_v20  ;;  %v5099_v63 = vcombine.high %v5075_v59, %v5090_v61 }
 0x4b7   : > { %v3501_v12 = vsel %vm532_vm9, %v3499_v24, %v8279_v56  ;;  %v8418_v33 = vrot.slane %v5114_v32, %v6344_v16  ;;  %v5228_v23 = vpack.i.b16 %v5227_v62, %v5226_v41  ;;  %v5066_v39 = vcombine.high %v8421_v22, %v9074_v36 }
 0x4b8   : > { %3715 = vrot.lane.b32.xlu0 %v3674_v37, %s5918_s15  ;;  %v3503_v52 = vsel %vm535_vm10, %v3501_v12, %v3471_v57  ;;  %v5319_v34 = vcombine.high %v5236_v43, %v7928_v26  ;;  %v5115_v24 = vcombine.high %v5082_v28, %v5097_v15  ;;  %v5326_v12 = vrot.slane %v5236_v43, %v6215_v49 }
 0x4b9   : > { %v3505_v56 = vsel %vm538_vm11, %v3503_v52, %v3474_v51  ;;  %v3477_v54 = vpop.permute.xlu0 %3476  ;;  %v4901_v29 = vpop.permute.xlu1 %4900  ;;  %v8412_v51 = vrot.slane %v5032_v47, %v6344_v16  ;;  %v5304_v37 = vcombine.high %v5228_v23, %v7928_v26  ;;  %v8435_v42 = vrot.slane %v5099_v63, %v6344_v16 }
 0x4ba   : > { %v3507_v13 = vsel %vm541_vm12, %v3505_v56, %v3477_v54  ;;  %3930 = vrot.lane.b32.xlu1 %v3908_v40, %s5918_s15  ;;  %v5311_v47 = vrot.slane %v5228_v23, %v6215_v49  ;;  %v5333_v52 = vrot.slane %v5319_v34, %v6215_v49  ;;  %v8442_v15 = vrot.slane %v5115_v24, %v6344_v16 }
 0x4bb   : > { %v5767_v57 = vcombine.low %v3492_v4, %v3507_v13  ;;  %v5064_v44 = vcombine.high %v8412_v51, %v9074_v36  ;;  %v5318_v28 = vrot.slane %v5304_v37, %v6215_v49  ;;  %v5268_v40 = vcombine.low %v8307_v55, %v8300_v31 }
 0x4bc   : > { %3951 = vrot.lane.b32.xlu0 %v3910_v35, %s5918_s15  ;;  %v5065_v60 = vcombine.high %v8324_v10, %v9074_v36  ;;  %v5334_v21 = vcombine.low %v5311_v47, %v5326_v12  ;;  %v5284_v54 = vcombine.low %v8318_v18, %v8310_v3  ;;  %v5067_v4 = vcombine.high %v8329_v6, %v9074_v36 }
 0x4bd   : > { %3514 = vst [vmem:[#allocation4] sm:$0x33] %v5767_v57  ;;  %v4922_v5 = vpop.permute.xlu0 %4921  ;;  %v4904_v58 = vpop.permute.xlu1 %4903  ;;  %v5350_v13 = vcombine.low %v5318_v28, %v5333_v52  ;;  %v4943_v31 = vsel %vm522_vm6, %v8022_v45, %v4901_v29  ;;  %v8465_v10 = vrot.slane %v5268_v40, %v6344_v16  ;;  %v4516_v41 = vpack.i.b16 %v8230_v0, %v8214_v11 }
 0x4be   : > { %5135 = vrot.lane.b32.xlu1 %v8409_v25, %s5912_s9  ;;  %v8462_v55 = vrot.slane %v5334_v21, %v6344_v16  ;;  %v4945_v35 = vsel %vm526_vm7, %v4943_v31, %v4904_v58  ;;  %v8477_v6 = vrot.slane %v5284_v54, %v6344_v16  ;;  %v4958_v57 = vsel %vm522_vm6, %v8032_v46, %v4922_v5 }
 0x4bf   : > { %v8474_v45 = vrot.slane %v5350_v13, %v6344_v16  ;;  %v5300_v20 = vcombine.high %v8465_v10, %v9074_v36  ;;  %v5335_v58 = vcombine.high %v5311_v47, %v5326_v12  ;;  %v5351_v5 = vcombine.high %v5318_v28, %v5333_v52 }
 0x4c0   : > { %5156 = vrot.lane.b32.xlu0 %v8418_v33, %s5912_s9  ;;  %v5302_v46 = vcombine.high %v8477_v6, %v9074_v36  ;;  %v4508_v63 = vpack.i.b16 %v8212_v1, %v8200_v53  ;;  %v4537_v24 = vcombine.high %v4516_v41, %v7928_v26  ;;  %v4281_v52 = vpack.i.b16 %v8259_v17, %v8244_v19 }
 0x4c1   : > { %v4925_v14 = vpop.permute.xlu0 %4924  ;;  %v4913_v48 = vpop.permute.xlu1 %4912  ;;  %v4273_v21 = vpack.i.b16 %v8242_v50, %v8232_v9 }
 0x4c2   : > { %5138 = vrot.lane.b32.xlu1 %v5064_v44, %s5913_s10  ;;  %v4960_v43 = vsel %vm526_vm7, %v4958_v57, %v4925_v14  ;;  %v4522_v28 = vcombine.high %v4508_v63, %v7928_v26  ;;  %v8527_v13 = vrot.slane %v4508_v63, %v6215_v49  ;;  %v8530_v31 = vrot.slane %v4537_v24, %v6215_v49 }
 0x4c3   : > { %v8543_v57 = vrot.slane %v4281_v52, %v6215_v49 }
 0x4c4   : > { %5159 = vrot.lane.b32.xlu0 %v5066_v39, %s5913_s10  ;;  %v8503_v39 = vrot.slane %v5335_v58, %v6344_v16 }
 0x4c5   : > { %v4934_v61 = vpop.permute.xlu0 %4933  ;;  %v4916_v59 = vpop.permute.xlu1 %4915 }
 0x4c6   : > { %5147 = vrot.lane.b32.xlu1 %v8435_v42, %s5916_s13 }
 0x4c8   : > { %5168 = vrot.lane.b32.xlu0 %v8442_v15, %s5916_s13 }
 0x4c9   : > { %v4937_v8 = vpop.permute.xlu0 %4936  ;;  %v8451_v56 = vpop.permute.xlu1 %4193 }
 0x4ca   : > { %5150 = vrot.lane.b32.xlu1 %v5065_v60, %s5917_s14  ;;  %v8518_v60 = vrot.slane %v4516_v41, %v6215_v49  ;;  %v8550_v41 = vrot.slane %v4273_v21, %v6215_v49 }
 0x4cc   : > { %5171 = vrot.lane.b32.xlu0 %v5067_v4, %s5917_s14 }
 0x4cd   : > { %v8468_v3 = vpop.permute.xlu0 %4214  ;;  %v4907_v18 = vpop.permute.xlu1 %4906 }
 0x4ce   : > { %v4947_v32 = vsel %vm529_vm8, %v4945_v35, %v4907_v18  ;;  %5371 = vrot.lane.b32.xlu1 %v8462_v55, %s5912_s9  ;;  %v4302_v35 = vcombine.high %v4281_v52, %v7928_v26  ;;  %v5303_v18 = vcombine.high %v8342_v2, %v9074_v36 }
 0x4cf   : > { %v4949_v29 = vsel %vm532_vm9, %v4947_v32, %v8351_v30  ;;  %v8537_v32 = vrot.slane %v4522_v28, %v6215_v49 }
 0x4d0   : > { %5392 = vrot.lane.b32.xlu0 %v8474_v45, %s5912_s9  ;;  %v4951_v62 = vsel %vm535_vm10, %v4949_v29, %v4913_v48  ;;  %v4287_v29 = vcombine.high %v4273_v21, %v7928_v26 }
 0x4d1   : > { %v4928_v23 = vpop.permute.xlu0 %4927  ;;  %v4919_v44 = vpop.permute.xlu1 %4918  ;;  %v4953_v34 = vsel %vm538_vm11, %v4951_v62, %v4916_v59  ;;  %v5130_v62 = vcombine.high %v8409_v25, %v9074_v36  ;;  %v4511_v25 = vshrl.u32 %v8212_v1, 16 }
 0x4d2   : > { %v4962_v30 = vsel %vm529_vm8, %v4960_v43, %v4928_v23  ;;  %5374 = vrot.lane.b32.xlu1 %v5300_v20, %s5913_s10  ;;  %v4519_v20 = vshrl.u32 %v8230_v0, 16  ;;  %v8553_v43 = vrot.slane %v4302_v35, %v6215_v49  ;;  %v5132_v23 = vcombine.high %v8418_v33, %v9074_v36 }
 0x4d3   : > { %v4964_v48 = vsel %vm532_vm9, %v4962_v30, %v8362_v27  ;;  %v4955_v27 = vsel %vm541_vm12, %v4953_v34, %v4919_v44  ;;  %v4569_v44 = vcombine.high %v8537_v32, %v8530_v31  ;;  %v4518_v0 = vshrl.u32 %v8214_v11, 16 }
 0x4d4   : > { %5395 = vrot.lane.b32.xlu0 %v5302_v46, %s5913_s10  ;;  %v4966_v14 = vsel %vm535_vm10, %v4964_v48, %v4934_v61  ;;  %v8514_v61 = vrot.slane %v5351_v5, %v6344_v16  ;;  %v8563_v30 = vrot.slane %v4287_v29, %v6215_v49  ;;  %v4318_v46 = vcombine.high %v8550_v41, %v8543_v57 }
 0x4d5   : > { %v4968_v37 = vsel %vm538_vm11, %v4966_v14, %v4937_v8  ;;  %v4940_v12 = vpop.permute.xlu0 %4939  ;;  %v4185_v47 = vpop.permute.xlu1 %4184  ;;  %v5301_v8 = vcombine.high %v8336_v7, %v9074_v36  ;;  %v4553_v7 = vcombine.high %v8527_v13, %v8518_v60  ;;  %v4510_v33 = vshrl.u32 %v8200_v53, 16 }
 0x4d6   : > { %v4970_v59 = vsel %vm541_vm12, %v4968_v37, %v4940_v12  ;;  %5383 = vrot.lane.b32.xlu1 %v8503_v39, %s5916_s13  ;;  %v4520_v34 = vpack.i.b16 %v4519_v20, %v4518_v0  ;;  %v8575_v1 = vrot.slane %v4569_v44, %v6344_v16  ;;  %v4334_v11 = vcombine.high %v8563_v30, %v8553_v43 }
 0x4d7   : > { %v5773_v40 = vcombine.low %v4955_v27, %v4970_v59  ;;  %v8569_v5 = vrot.slane %v4553_v7, %v6344_v16  ;;  %v4512_v14 = vpack.i.b16 %v4511_v25, %v4510_v33  ;;  %v4227_v24 = vsel %vm522_vm6, %v8078_v38, %v4185_v47 }
 0x4d8   : > { %5404 = vrot.lane.b32.xlu0 %v8514_v61, %s5916_s13  ;;  %v8584_v53 = vrot.slane %v4318_v46, %v6344_v16  ;;  %v4284_v37 = vshrl.u32 %v8259_v17, 16  ;;  %v4603_v59 = vcombine.high %v4520_v34, %v7928_v26  ;;  %v8593_v38 = vrot.slane %v4334_v11, %v6344_v16 }
 0x4d9   : > { %4977 = vst [vmem:[#allocation4 + $0x18] sm:$0x33] %v5773_v40  ;;  %v4206_v54 = vpop.permute.xlu0 %4205  ;;  %v4188_v4 = vpop.permute.xlu1 %4187  ;;  %v4588_v47 = vcombine.high %v4512_v14, %v7928_v26  ;;  %v8597_v40 = vrot.slane %v4520_v34, %v6215_v49  ;;  %v4283_v17 = vshrl.u32 %v8244_v19, 16  ;;  %v5131_v7 = vcombine.high %v8435_v42, %v9074_v36 }
 0x4da   : > { %5386 = vrot.lane.b32.xlu1 %v5301_v8, %s5917_s14  ;;  %v4229_v12 = vsel %vm526_vm7, %v4227_v24, %v4188_v4  ;;  %v4276_v8 = vshrl.u32 %v8242_v50, 16  ;;  %v9075_v4 = vld [vmem:[#allocation9_spill] sm:$0xff]  ;;  %v4275_v29 = vshrl.u32 %v8232_v9, 16  ;;  %v8616_v50 = vrot.slane %v4603_v59, %v6215_v49 }
 0x4db   : > { %v4242_v35 = vsel %vm522_vm6, %v9075_v4, %v4206_v54  ;;  %v5133_v42 = vcombine.high %v8442_v15, %v9074_v36  ;;  %v8623_v9 = vrot.slane %v4588_v47, %v6215_v49  ;;  %v5366_v46 = vcombine.high %v8462_v55, %v9074_v36 }
 0x4dc   : > { %5407 = vrot.lane.b32.xlu0 %v5303_v18, %s5917_s14  ;;  %v4277_v25 = vpack.i.b16 %v4276_v8, %v4275_v29  ;;  %v4568_v33 = vcombine.low %v8537_v32, %v8530_v31  ;;  %v5368_v55 = vcombine.high %v8474_v45, %v9074_v36  ;;  %v4317_v47 = vcombine.low %v8550_v41, %v8543_v57 }
 0x4dd   : > { %v4209_v58 = vpop.permute.xlu0 %4208  ;;  %v4197_v2 = vpop.permute.xlu1 %4196  ;;  %v4333_v4 = vcombine.low %v8563_v30, %v8553_v43 }
 0x4de   : > { %5141 = vrot.lane.b32.xlu1 %v5130_v62, %s5914_s11  ;;  %v4285_v62 = vpack.i.b16 %v4284_v37, %v4283_v17  ;;  %v4244_v19 = vsel %vm526_vm7, %v4242_v35, %v4209_v58  ;;  %v4552_v58 = vcombine.low %v8527_v13, %v8518_v60  ;;  %v4353_v31 = vcombine.high %v4277_v25, %v7928_v26 }
 0x4df   : > { %v8666_v59 = vrot.slane %v4568_v33, %v6344_v16  ;;  %v8695_v30 = vrot.slane %v4333_v4, %v6344_v16 }
 0x4e0   : > { %5162 = vrot.lane.b32.xlu0 %v5132_v23, %s5914_s11  ;;  %v4368_v60 = vcombine.high %v4285_v62, %v7928_v26  ;;  %v4375_v32 = vrot.slane %v4285_v62, %v6215_v49  ;;  %v8656_v37 = vrot.slane %v4552_v58, %v6344_v16 }
 0x4e1   : > { %v4218_v63 = vpop.permute.xlu0 %4217  ;;  %v4200_v48 = vpop.permute.xlu1 %4199 }
 0x4e2   : > { %4664 = vrot.lane.b32.xlu1 %v8569_v5, %s5915_s12 }
 0x4e4   : > { %4685 = vrot.lane.b32.xlu0 %v8575_v1, %s5915_s12 }
 0x4e5   : > { %v4221_v52 = vpop.permute.xlu0 %4220  ;;  %v4191_v27 = vpop.permute.xlu1 %4190 }
 0x4e6   : > { %v4231_v28 = vsel %vm529_vm8, %v4229_v12, %v4191_v27  ;;  %4429 = vrot.lane.b32.xlu1 %v8584_v53, %s5915_s12  ;;  %v4382_v27 = vrot.slane %v4368_v60, %v6215_v49 }
 0x4e7   : > { %v4233_v21 = vsel %vm532_vm9, %v4231_v28, %v8451_v56  ;;  %v8613_v56 = vrot.slane %v4512_v14, %v6215_v49  ;;  %v4367_v28 = vrot.slane %v4353_v31, %v6215_v49 }
 0x4e8   : > { %4450 = vrot.lane.b32.xlu0 %v8593_v38, %s5915_s12  ;;  %v4235_v18 = vsel %vm535_vm10, %v4233_v21, %v4197_v2  ;;  %v4584_v21 = vcombine.high %v8656_v37, %v9074_v36 }
 0x4e9   : > { %v4212_v20 = vpop.permute.xlu0 %4211  ;;  %v4203_v23 = vpop.permute.xlu1 %4202  ;;  %v4237_v44 = vsel %vm538_vm11, %v4235_v18, %v4200_v48  ;;  %v4618_v15 = vcombine.low %v8613_v56, %v8597_v40  ;;  %v4399_v18 = vcombine.low %v4367_v28, %v4382_v27 }
 0x4ea   : > { %v4246_v54 = vsel %vm529_vm8, %v4244_v19, %v4212_v20  ;;  %5153 = vrot.lane.b32.xlu1 %v5131_v7, %s5918_s15  ;;  %v4239_v48 = vsel %vm541_vm12, %v4237_v44, %v4203_v23  ;;  %v8688_v7 = vrot.slane %v4317_v47, %v6344_v16  ;;  %v4619_v20 = vcombine.high %v8613_v56, %v8597_v40 }
 0x4eb   : > { %v4248_v2 = vsel %vm532_vm9, %v4246_v54, %v8468_v3  ;;  %v8653_v24 = vrot.slane %v4618_v15, %v6344_v16  ;;  %v4407_v43 = vrot.slane %v4399_v18, %v6344_v16  ;;  %v4351_v23 = vcombine.high %v8695_v30, %v9074_v36 }
 0x4ec   : > { %5174 = vrot.lane.b32.xlu0 %v5133_v42, %s5918_s15  ;;  %v4250_v0 = vsel %vm535_vm10, %v4248_v2, %v4218_v63  ;;  %v4634_v63 = vcombine.low %v8623_v9, %v8616_v50  ;;  %v4349_v19 = vcombine.high %v8688_v7, %v9074_v36  ;;  %v4635_v42 = vcombine.high %v8623_v9, %v8616_v50 }
 0x4ed   : > { %v4252_v3 = vsel %vm538_vm11, %v4250_v0, %v4221_v52  ;;  %v4224_v13 = vpop.permute.xlu0 %4223  ;;  %v8649_v14 = vpop.permute.xlu1 %3685  ;;  %v4360_v52 = vrot.slane %v4277_v25, %v6215_v49  ;;  %v4586_v49 = vcombine.high %v8666_v59, %v9074_v36  ;;  %v4633_v2 = vrot.slane %v4619_v20, %v6344_v16 }
 0x4ee   : > { %v4254_v34 = vsel %vm541_vm12, %v4252_v3, %v4224_v13  ;;  %5377 = vrot.lane.b32.xlu1 %v5366_v46, %s5914_s11  ;;  %v4642_v26 = vrot.slane %v4634_v63, %v6344_v16  ;;  %v4649_v40 = vrot.slane %v4635_v42, %v6344_v16  ;;  %v4585_v25 = vcombine.high %v8569_v5, %v9074_v36 }
 0x4ef   : > { %v5770_v11 = vcombine.low %v4239_v48, %v4254_v34  ;;  %v4383_v8 = vcombine.low %v4360_v52, %v4375_v32  ;;  %v4384_v0 = vcombine.high %v4360_v52, %v4375_v32  ;;  %v4587_v50 = vcombine.high %v8575_v1, %v9074_v36 }
 0x4f0   : > { %5398 = vrot.lane.b32.xlu0 %v5368_v55, %s5914_s11  ;;  %v4400_v9 = vcombine.high %v4367_v28, %v4382_v27  ;;  %v4350_v13 = vcombine.high %v8584_v53, %v9074_v36  ;;  %v4352_v1 = vcombine.high %v8593_v38, %v9074_v36  ;;  %v4650_v55 = vcombine.high %v8653_v24, %v9074_v36 }
 0x4f1   : > { %v4260_v12 = vrot.slane %v5770_v11, 6  ;;  %v8658_v45 = vpop.permute.xlu0 %3706  ;;  %v4391_v41 = vrot.slane %v4383_v8, %v6344_v16  ;;  %v4398_v33 = vrot.slane %v4384_v0, %v6344_v16  ;;  %v4417_v38 = vcombine.high %v4407_v43, %v9074_v36  ;;  %v5538_v0 = vld [vmem:[%s8898_s6] sm:$0xf] }
 0x4f2   : > { %4655 = vrot.lane.b32.xlu1 %v8653_v24, %s5912_s9  ;;  %v4414_v3 = vrot.slane %v4400_v9, %v6344_v16  ;;  %v4652_v16 = vcombine.high %v4642_v26, %v9074_v36  ;;  %v4651_v24 = vcombine.high %v4633_v2, %v9074_v36  ;;  %v4653_v52 = vcombine.high %v4649_v40, %v9074_v36 }
 0x4f3   : > { %4262 = vst [vmem:[#allocation4 + $0x8] sm:$0xcc] %v4260_v12  ;;  %v4415_v11 = vcombine.high %v4391_v41, %v9074_v36  ;;  %v5367_v18 = vcombine.high %v8503_v39, %v9074_v36  ;;  %v5530_v39 = vld [vmem:[%s8897_s5] sm:$0xf] }
 0x4f4   : > { %4676 = vrot.lane.b32.xlu0 %v4642_v26, %s5912_s9  ;;  %v8672_v17 = vpop.permute.xlu1 %3921  ;;  %v4416_v26 = vcombine.high %v4398_v33, %v9074_v36  ;;  %v4418_v47 = vcombine.high %v4414_v3, %v9074_v36 }
 0x4f6   : > { %v8678_v35 = vpop.permute.xlu0 %3942  ;;  %4658 = vrot.lane.b32.xlu1 %v4584_v21, %s5913_s10  ;;  %v9076_v21 = vld [vmem:[#allocation10_spill] sm:$0xff] }
 0x4f8   : > { %4679 = vrot.lane.b32.xlu0 %v4586_v49, %s5913_s10  ;;  %v8684_v57 = vpop.permute.xlu1 %3676 }
 0x4f9   : > { %v3719_v8 = vsel %vm522_vm6, %v9076_v21, %v8684_v57  ;;  %v5369_v57 = vcombine.high %v8514_v61, %v9074_v36  ;;  %v9079_v61 = vld [vmem:[#allocation11_spill] sm:$0xff] }
 0x4fa   : > { %v8690_v29 = vpop.permute.xlu0 %3697  ;;  %4420 = vrot.lane.b32.xlu1 %v4391_v41, %s5912_s9  ;;  %v9077_v41 = vld [vmem:[#allocation25_spill] sm:$0xff] }
 0x4fc   : > { %4441 = vrot.lane.b32.xlu0 %v4407_v43, %s5912_s9  ;;  %v3680_v62 = vpop.permute.xlu1 %3679  ;;  %v3734_v43 = vsel %vm522_vm6, %v9077_v41, %v8690_v29 }
 0x4fd   : > { %v3721_v4 = vsel %vm526_vm7, %v3719_v8, %v3680_v62  ;;  %v9078_v62 = vld [vmem:[#allocation17_spill] sm:$0xff] }
 0x4fe   : > { %v3701_v54 = vpop.permute.xlu0 %3700  ;;  %4423 = vrot.lane.b32.xlu1 %v4349_v19, %s5913_s10 }
 0x4ff   : > { %v3736_v20 = vsel %vm526_vm7, %v3734_v43, %v3701_v54 }
 0x500   : > { %4444 = vrot.lane.b32.xlu0 %v4351_v23, %s5913_s10  ;;  %v3913_v58 = vpop.permute.xlu1 %3912 }
 0x501   : > { %v3955_v42 = vsel %vm522_vm6, %v9078_v62, %v3913_v58 }
 0x502   : > { %v8709_v44 = vpop.permute.xlu0 %3933  ;;  %4667 = vrot.lane.b32.xlu1 %v4633_v2, %s5916_s13 }
 0x503   : > { %v3970_v58 = vsel %vm522_vm6, %v9079_v61, %v8709_v44 }
 0x504   : > { %4688 = vrot.lane.b32.xlu0 %v4649_v40, %s5916_s13  ;;  %v3916_v56 = vpop.permute.xlu1 %3915 }
 0x505   : > { %v3957_v29 = vsel %vm526_vm7, %v3955_v42, %v3916_v56 }
 0x506   : > { %v8716_v46 = vpop.permute.xlu0 %3936  ;;  %4670 = vrot.lane.b32.xlu1 %v4585_v25, %s5917_s14 }
 0x507   : > { %v3972_v56 = vsel %vm526_vm7, %v3970_v58, %v8716_v46 }
 0x508   : > { %4691 = vrot.lane.b32.xlu0 %v4587_v50, %s5917_s14  ;;  %v3689_v15 = vpop.permute.xlu1 %3688 }
 0x50a   : > { %v3710_v60 = vpop.permute.xlu0 %3709  ;;  %4432 = vrot.lane.b32.xlu1 %v4398_v33, %s5916_s13 }
 0x50c   : > { %4453 = vrot.lane.b32.xlu0 %v4414_v3, %s5916_s13  ;;  %v3692_v5 = vpop.permute.xlu1 %3691 }
 0x50e   : > { %v3713_v48 = vpop.permute.xlu0 %3712  ;;  %4435 = vrot.lane.b32.xlu1 %v4350_v13, %s5917_s14 }
 0x510   : > { %4456 = vrot.lane.b32.xlu0 %v4352_v1, %s5917_s14  ;;  %v3925_v34 = vpop.permute.xlu1 %3924 }
 0x512   : > { %v3946_v63 = vpop.permute.xlu0 %3945  ;;  %4661 = vrot.lane.b32.xlu1 %v4650_v55, %s5914_s11 }
 0x514   : > { %4682 = vrot.lane.b32.xlu0 %v4652_v16, %s5914_s11  ;;  %v3928_v53 = vpop.permute.xlu1 %3927 }
 0x516   : > { %v3949_v31 = vpop.permute.xlu0 %3948  ;;  %4426 = vrot.lane.b32.xlu1 %v4415_v11, %s5914_s11 }
 0x518   : > { %4447 = vrot.lane.b32.xlu0 %v4417_v38, %s5914_s11  ;;  %v8741_v32 = vpop.permute.xlu1 %5144  ;;  %s278_s11 = scalar_lea.vmem %s8899_s7, %s5786_s8 }
 0x51a   : > { %v8744_v12 = vpop.permute.xlu0 %5165  ;;  %4673 = vrot.lane.b32.xlu1 %v4651_v24, %s5918_s15 }
 0x51c   : > { %4694 = vrot.lane.b32.xlu0 %v4653_v52, %s5918_s15  ;;  %v8749_v27 = vpop.permute.xlu1 %5380 }
 0x51e   : > { %v8752_v28 = vpop.permute.xlu0 %5401  ;;  %4438 = vrot.lane.b32.xlu1 %v4416_v26, %s5918_s15 }
 0x520   : > { %4459 = vrot.lane.b32.xlu0 %v4418_v47, %s5918_s15  ;;  %v3683_v49 = vpop.permute.xlu1 %3682 }
 0x521   : > { %v3723_v19 = vsel %vm529_vm8, %v3721_v4, %v3683_v49 }
 0x522   : > { %v3704_v23 = vpop.permute.xlu0 %3703  ;;  %5389 = vrot.lane.b32.xlu1 %v5367_v18, %s5918_s15  ;;  %v3725_v54 = vsel %vm532_vm9, %v3723_v19, %v8649_v14 }
 0x523   : > { %v3738_v2 = vsel %vm529_vm8, %v3736_v20, %v3704_v23  ;;  %v3727_v50 = vsel %vm535_vm10, %v3725_v54, %v3689_v15 }
 0x524   : > { %v3740_v40 = vsel %vm532_vm9, %v3738_v2, %v8658_v45  ;;  %5410 = vrot.lane.b32.xlu0 %v5369_v57, %s5918_s15  ;;  %v3919_v36 = vpop.permute.xlu1 %3918  ;;  %v3729_v13 = vsel %vm538_vm11, %v3727_v50, %v3692_v5 }
 0x525   : > { %v3959_v25 = vsel %vm529_vm8, %v3957_v29, %v3919_v36  ;;  %v3742_v9 = vsel %vm535_vm10, %v3740_v40, %v3710_v60 }
 0x526   : > { %v3940_v14 = vpop.permute.xlu0 %3939  ;;  %5533 = vperm.xlu1 %5883, %v5530_v39   ;;  %v3961_v44 = vsel %vm532_vm9, %v3959_v25, %v8672_v17  ;;  %v3744_v46 = vsel %vm538_vm11, %v3742_v9, %v3713_v48 }
 0x527   : > { %v3974_v45 = vsel %vm529_vm8, %v3972_v56, %v3940_v14  ;;  %v3963_v15 = vsel %vm535_vm10, %v3961_v44, %v3925_v34 }
 0x528   : > { %v3976_v33 = vsel %vm532_vm9, %v3974_v45, %v8678_v35  ;;  %5541 = vperm.xlu0 %5882, %v5538_v0   ;;  %v3695_v3 = vpop.permute.xlu1 %3694  ;;  %v3965_v35 = vsel %vm538_vm11, %v3963_v15, %v3928_v53 }
 0x529   : > { %v3731_v55 = vsel %vm541_vm12, %v3729_v13, %v3695_v3  ;;  %v3978_v60 = vsel %vm535_vm10, %v3976_v33, %v3946_v63 }
 0x52a   : > { %v3716_v1 = vpop.permute.xlu0 %3715  ;;  %v3980_v24 = vsel %vm538_vm11, %v3978_v60, %v3949_v31 }
 0x52b   : > { %v3746_v16 = vsel %vm541_vm12, %v3744_v46, %v3716_v1 }
 0x52c   : > { %v5768_v11 = vcombine.low %v3731_v55, %v3746_v16  ;;  %v3931_v17 = vpop.permute.xlu1 %3930 }
 0x52d   : > { %v3967_v5 = vsel %vm541_vm12, %v3965_v35, %v3931_v17 }
 0x52e   : > { %v3752_v38 = vrot.slane %v5768_v11, 6  ;;  %v3952_v52 = vpop.permute.xlu0 %3951 }
 0x52f   : > { %v3982_v48 = vsel %vm541_vm12, %v3980_v24, %v3952_v52 }
 0x530   : > { %3754 = vst [vmem:[#allocation4] sm:$0xcc] %v3752_v38  ;;  %v5769_v26 = vcombine.low %v3967_v5, %v3982_v48  ;;  %v5136_v47 = vpop.permute.xlu1 %5135 }
 0x531   : > { %v5178_v61 = vsel %vm522_vm6, %v8412_v51, %v5136_v47 }
 0x532   : > { %3989 = vst [vmem:[#allocation4 + $0x8] sm:$0x33] %v5769_v26  ;;  %v5157_v21 = vpop.permute.xlu0 %5156 }
 0x534   : > { %v5139_v34 = vpop.permute.xlu1 %5138 }
 0x535   : > { %v5180_v58 = vsel %vm526_vm7, %v5178_v61, %v5139_v34 }
 0x536   : > { %v5160_v8 = vpop.permute.xlu0 %5159 }
 0x538   : > { %v5148_v63 = vpop.permute.xlu1 %5147 }
 0x539   : > { %v5892_v4 = vld [vmem:[#allocation4 + $0x4] ss:$8 sps:$4 sm:$0xff]   ;;  %v5894_v49 = vld [vmem:[#allocation4] ss:$8 sps:$4 sm:$0xff]  }
 0x53a   : > { %v5169_v18 = vpop.permute.xlu0 %5168  ;;  %5489 = vmatprep.subr.bf16.mxu1 %v5892_v4 }
 0x53b   : > { %5490 = vmatpush1.bf16.msra.mxu1 %v5894_v49 }
 0x53c   : > { %v5151_v53 = vpop.permute.xlu1 %5150 }
 0x53e   : > { %v5172_v31 = vpop.permute.xlu0 %5171 }
 0x540   : > { %v5372_v41 = vpop.permute.xlu1 %5371 }
 0x541   : > { %v5414_v19 = vsel %vm522_vm6, %v8465_v10, %v5372_v41  ;;  %v5193_v10 = vsel %vm522_vm6, %v8421_v22, %v5157_v21 }
 0x542   : > { %v5393_v43 = vpop.permute.xlu0 %5392  ;;  %v5195_v25 = vsel %vm526_vm7, %v5193_v10, %v5160_v8 }
 0x543   : > { %v5429_v57 = vsel %vm522_vm6, %v8477_v6, %v5393_v43 }
 0x544   : > { %v5375_v20 = vpop.permute.xlu1 %5374 }
 0x545   : > { %v5416_v23 = vsel %vm526_vm7, %v5414_v19, %v5375_v20 }
 0x546   : > { %v5396_v62 = vpop.permute.xlu0 %5395 }
 0x547   : > { %v5431_v42 = vsel %vm526_vm7, %v5429_v57, %v5396_v62 }
 0x548   : > { %v5384_v2 = vpop.permute.xlu1 %5383 }
 0x54a   : > { %v5405_v39 = vpop.permute.xlu0 %5404 }
 0x54c   : > { %v5387_v29 = vpop.permute.xlu1 %5386 }
 0x54e   : > { %v5408_v54 = vpop.permute.xlu0 %5407 }
 0x550   : > { %v5142_v40 = vpop.permute.xlu1 %5141 }
 0x551   : > { %v5182_v0 = vsel %vm529_vm8, %v5180_v58, %v5142_v40 }
 0x552   : > { %v5163_v36 = vpop.permute.xlu0 %5162  ;;  %v5184_v45 = vsel %vm532_vm9, %v5182_v0, %v8741_v32 }
 0x553   : > { %v5197_v56 = vsel %vm529_vm8, %v5195_v25, %v5163_v36  ;;  %v5186_v22 = vsel %vm535_vm10, %v5184_v45, %v5148_v63 }
 0x554   : > { %v4665_v6 = vpop.permute.xlu1 %4664  ;;  %v5199_v50 = vsel %vm532_vm9, %v5197_v56, %v8744_v12  ;;  %v5188_v3 = vsel %vm538_vm11, %v5186_v22, %v5151_v53 }
 0x555   : > { %v5201_v44 = vsel %vm535_vm10, %v5199_v50, %v5169_v18 }
 0x556   : > { %v4686_v14 = vpop.permute.xlu0 %4685  ;;  %v5203_v13 = vsel %vm538_vm11, %v5201_v44, %v5172_v31 }
 0x558   : > { %v4430_v51 = vpop.permute.xlu1 %4429 }
 0x55a   : > { %v4451_v9 = vpop.permute.xlu0 %4450 }
 0x55c   : > { %v5154_v33 = vpop.permute.xlu1 %5153 }
 0x55d   : > { %v5190_v1 = vsel %vm541_vm12, %v5188_v3, %v5154_v33 }
 0x55e   : > { %v5175_v46 = vpop.permute.xlu0 %5174 }
 0x55f   : > { %v5205_v55 = vsel %vm541_vm12, %v5203_v13, %v5175_v46 }
 0x560   : > { %v5774_v32 = vcombine.low %v5190_v1, %v5205_v55  ;;  %v5378_v16 = vpop.permute.xlu1 %5377 }
 0x561   : > { %v5418_v12 = vsel %vm529_vm8, %v5416_v23, %v5378_v16 }
 0x562   : > { %v5211_v15 = vrot.slane %v5774_v32, 6  ;;  %v5420_v60 = vsel %vm532_vm9, %v5418_v12, %v8749_v27  ;;  %v5399_v11 = vpop.permute.xlu0 %5398 }
 0x563   : > { %v5433_v17 = vsel %vm529_vm8, %v5431_v42, %v5399_v11  ;;  %v5422_v38 = vsel %vm535_vm10, %v5420_v60, %v5384_v2 }
 0x564   : > { %5213 = vst [vmem:[#allocation4 + $0x18] sm:$0xcc] %v5211_v15  ;;  %v5435_v35 = vsel %vm532_vm9, %v5433_v17, %v8752_v28  ;;  %v4656_v24 = vpop.permute.xlu1 %4655  ;;  %v5424_v52 = vsel %vm538_vm11, %v5422_v38, %v5387_v29 }
 0x565   : > { %v5437_v5 = vsel %vm535_vm10, %v5435_v35, %v5405_v39  ;;  %v4698_v19 = vsel %vm522_vm6, %v8656_v37, %v4656_v24 }
 0x566   : > { %v4677_v48 = vpop.permute.xlu0 %4676  ;;  %v5439_v26 = vsel %vm538_vm11, %v5437_v5, %v5408_v54 }
 0x567   : > { %v4713_v57 = vsel %vm522_vm6, %v8666_v59, %v4677_v48 }
 0x568   : > { %v4659_v47 = vpop.permute.xlu1 %4658 }
 0x569   : > { %v4700_v20 = vsel %vm526_vm7, %v4698_v19, %v4659_v47 }
 0x56a   : > { %v4680_v21 = vpop.permute.xlu0 %4679 }
 0x56b   : > { %v4715_v42 = vsel %vm526_vm7, %v4713_v57, %v4680_v21 }
 0x56c   : > { %v4421_v27 = vpop.permute.xlu1 %4420 }
 0x56d   : > { %v4463_v39 = vsel %vm522_vm6, %v8688_v7, %v4421_v27 }
 0x56e   : > { %v4442_v34 = vpop.permute.xlu0 %4441 }
 0x56f   : > { %v4478_v59 = vsel %vm522_vm6, %v8695_v30, %v4442_v34 }
 0x570   : > { %v4424_v8 = vpop.permute.xlu1 %4423 }
 0x571   : > { %v4465_v54 = vsel %vm526_vm7, %v4463_v39, %v4424_v8 }
 0x572   : > { %v4445_v63 = vpop.permute.xlu0 %4444 }
 0x573   : > { %v4480_v10 = vsel %vm526_vm7, %v4478_v59, %v4445_v63 }
 0x574   : > { %v4668_v4 = vpop.permute.xlu1 %4667 }
 0x576   : > { %v4689_v49 = vpop.permute.xlu0 %4688 }
 0x578   : > { %v4671_v18 = vpop.permute.xlu1 %4670 }
 0x57a   : > { %v4692_v53 = vpop.permute.xlu0 %4691 }
 0x57c   : > { %v4433_v31 = vpop.permute.xlu1 %4432 }
 0x57e   : > { %v4454_v28 = vpop.permute.xlu0 %4453 }
 0x580   : > { %v4436_v41 = vpop.permute.xlu1 %4435 }
 0x582   : > { %v4457_v43 = vpop.permute.xlu0 %4456 }
 0x584   : > { %v4662_v23 = vpop.permute.xlu1 %4661 }
 0x585   : > { %v4702_v62 = vsel %vm529_vm8, %v4700_v20, %v4662_v23 }
 0x586   : > { %v4683_v2 = vpop.permute.xlu0 %4682  ;;  %v4704_v37 = vsel %vm532_vm9, %v4702_v62, %v4665_v6 }
 0x587   : > { %v4717_v29 = vsel %vm529_vm8, %v4715_v42, %v4683_v2  ;;  %v4706_v7 = vsel %vm535_vm10, %v4704_v37, %v4668_v4 }
 0x588   : > { %v4719_v40 = vsel %vm532_vm9, %v4717_v29, %v4686_v14  ;;  %v4427_v36 = vpop.permute.xlu1 %4426  ;;  %v4708_v45 = vsel %vm538_vm11, %v4706_v7, %v4671_v18  ;;  %v9080_v18 = vld [vmem:[#allocation14_spill] sm:$0xff] }
 0x589   : > { %v4467_v61 = vsel %vm529_vm8, %v4465_v54, %v4427_v36  ;;  %v4721_v0 = vsel %vm535_vm10, %v4719_v40, %v4689_v49 }
 0x58a   : > { %v4448_v58 = vpop.permute.xlu0 %4447  ;;  %v4469_v56 = vsel %vm532_vm9, %v4467_v61, %v4430_v51  ;;  %v4723_v30 = vsel %vm538_vm11, %v4721_v0, %v4692_v53  ;;  %v5546_v53 = vunpack.c.l.bf16 %v9080_v18 }
 0x58b   : > { %v4482_v25 = vsel %vm529_vm8, %v4480_v10, %v4448_v58  ;;  %v4471_v33 = vsel %vm535_vm10, %v4469_v56, %v4433_v31 }
 0x58c   : > { %v4484_v6 = vsel %vm532_vm9, %v4482_v25, %v4451_v9  ;;  %v4674_v14 = vpop.permute.xlu1 %4673  ;;  %v4473_v51 = vsel %vm538_vm11, %v4471_v33, %v4436_v41  ;;  %v9081_v41 = vld [vmem:[#allocation13_spill] sm:$0xff] }
 0x58d   : > { %v4710_v22 = vsel %vm541_vm12, %v4708_v45, %v4674_v14  ;;  %v4486_v3 = vsel %vm535_vm10, %v4484_v6, %v4454_v28 }
 0x58e   : > { %v4695_v50 = vpop.permute.xlu0 %4694  ;;  %v4488_v9 = vsel %vm538_vm11, %v4486_v3, %v4457_v43  ;;  %v5547_v43 = vunpack.c.l.bf16 %v9081_v41 }
 0x58f   : > { %v4725_v44 = vsel %vm541_vm12, %v4723_v30, %v4695_v50 }
 0x590   : > { %v5772_v13 = vcombine.low %v4710_v22, %v4725_v44  ;;  %v4439_v46 = vpop.permute.xlu1 %4438 }
 0x591   : > { %v4475_v32 = vsel %vm541_vm12, %v4473_v51, %v4439_v46 }
 0x592   : > { %v4731_v1 = vrot.slane %v5772_v13, 6  ;;  %v4460_v55 = vpop.permute.xlu0 %4459 }
 0x593   : > { %v4490_v16 = vsel %vm541_vm12, %v4488_v9, %v4460_v55 }
 0x594   : > { %4733 = vst [vmem:[#allocation4 + $0x10] sm:$0xcc] %v4731_v1  ;;  %v5771_v12 = vcombine.low %v4475_v32, %v4490_v16  ;;  %v5390_v15 = vpop.permute.xlu1 %5389 }
 0x595   : > { %v5426_v11 = vsel %vm541_vm12, %v5424_v52, %v5390_v15  ;;  %v5449_v52 = vld [vmem:[%s8896_s4] sm:$0x3] }
 0x596   : > { %4497 = vst [vmem:[#allocation4 + $0x10] sm:$0x33] %v5771_v12  ;;  %v5411_v60 = vpop.permute.xlu0 %5410 }
 0x597   : > { %v5441_v17 = vsel %vm541_vm12, %v5439_v26, %v5411_v60 }
 0x598   : > { %v5775_v38 = vcombine.low %v5426_v11, %v5441_v17 }
 0x59a   : > { %5448 = vst [vmem:[#allocation4 + $0x20] sm:$0x33] %v5775_v38 }
 0x59d   : > { %v5895_v35 = vld [vmem:[#allocation4 + $0x14] ss:$8 sps:$4 sm:$0xff]   ;;  %v5897_v24 = vld [vmem:[#allocation4 + $0x10] ss:$8 sps:$4 sm:$0xff]  }
 0x59e   : > { %5491 = vmatprep.subr.bf16.mxu1 %v5895_v35 }
 0x59f   : > { %5492 = vmatpush1.bf16.msra.mxu1 %v5897_v24 }
 0x5a1   : > { %v5454_v5 = vld [vmem:[#allocation4 + $0x20] sm:$0x33] }
 0x5a2   : > { %v5781_v48 = vcombine.high %v5454_v5, %v5454_v5  ;;  %v5780_v47 = vcombine.low %v5454_v5, %v5454_v5 }
 0x5a4   : > { %5782 = vmatprep.subr.msk.bf16.mxu1 %vm2965_vm13, %v5781_v48  ;;  %v5484_v21 = vsel %vm2965_vm13, %v5780_v47, 0 }
 0x5a5   : > { %5494 = vmatpush1.bf16.msra.mxu1 %v5484_v21  ;;  %v5534_v26 = vpop.permute.xlu1 %5533 }
 0x5a7   : > { %v5542_v63 = vpop.permute.xlu0 %5541 }
 0x5a8   : > { %5783 = vmatmul.mubr.msk.bf16.vlgmr.msra.gmra.mrb[0].mxu1 %vm2961_vm14, %v5449_v52 }
 0x67b   : > { %v5523_v27 = vpop.f32.mrb[0].mxu1 }
 0x67c   : > { %v5536_v34 = vmul.f32 %v5534_v26, %v5523_v27  ;;  %v5525_v8 = vpop.f32.mrb[1].mxu1 }
 0x67d   : > { %v5537_v4 = vmul.f32 %v5534_v26, %v5525_v8  ;;  %v5527_v49 = vpop.f32.mrb[2].mxu1 }
 0x67e   : > { %v5544_v31 = vadd.f32 %v5542_v63, %v5536_v34  ;;  %v5528_v28 = vpop.f32.mrb[3].mxu1 }
 0x67f   : > { %v5545_v19 = vadd.f32 %v5542_v63, %v5537_v4 }
 0x680   : > { %v5548_v20 = vadd.f32 %v5546_v53, %v5544_v31 }
 0x681   : > { %v5549_v23 = vadd.f32 %v5547_v43, %v5545_v19 }
 0x682   : > { %v5550_v57 = vmax.f32 %v5548_v20, 0.0 }
 0x683   : > { %v5551_v62 = vmax.f32 %v5549_v23, 0.0 }
 0x685   : > { %v5554_v42 = vcombine.low %v5550_v57, %v5551_v62 }
 0x687   : > { %5556 = vst [vmem:[%s278_s11] sm:$0xff] %v5554_v42 }
 0x688 PF: > { %s17_s24 = sadd.s32 1, %s5906_s24  }
 0x689   : > { %p14_p4 = scmp.ge.s32.totalorder %s17_s24, 4  }
 0x68b   :  { %16 = sbr.rel (!%p14_p4) target bundleno = 1 (0x1), region = 78 }

</bundles_post_ra>
